<compile_context>
chip_gen: v5e
topology: v5e:2x2
jax: 0.10.0
libtpu: 0.0.40
codegen_flags: <defaults>
</compile_context>

<pallas_src>
import math
from functools import partial

import jax
import jax.numpy as jnp
from jax import lax
from jax.experimental import pallas as pl
from jax.experimental.pallas import tpu as pltpu  # noqa: F401  (TPU backend assumed)

# ----- model hyper-parameters (small, consistent with the module's __init__) -----
NTOKEN = 50          # ntoken
NUM_CLASSES = 527    # encoder head size (AudioTransformer1 num_classes)
NHID = 32            # config.decoder.nhid
NHEAD = 4            # config.decoder.nhead
NLAYERS = 2          # config.decoder.nlayers
DIM_FF = 64          # config.decoder.dim_feedforward
NTOKEN_PAD = 128     # lane-dense logits buffer, sliced back to NTOKEN outside
# config.decoder.activation == "relu" (PyTorch TransformerDecoderLayer default)


# ---------------- packed per-layer weight-slab layout (width = 128 lanes) ----------------
def _round8(n):
    return (n + 7) & ~7


_LAYER_LAYOUT = {}
_off = 0
for _name, _shape in [
    ("sa_in_w", (NHID, 3 * NHID)), ("sa_in_b", (1, 3 * NHID)),
    ("sa_out_w", (NHID, NHID)),    ("sa_out_b", (1, NHID)),
    ("ca_q_w", (NHID, NHID)),      ("ca_q_b", (1, NHID)),
    ("ca_kv_w", (NHID, 2 * NHID)), ("ca_kv_b", (1, 2 * NHID)),
    ("ca_out_w", (NHID, NHID)),    ("ca_out_b", (1, NHID)),
    ("l1_w", (NHID, DIM_FF)),      ("l1_b", (1, DIM_FF)),
    ("l2_w", (DIM_FF, NHID)),      ("l2_b", (1, NHID)),
    ("n1_w", (1, NHID)), ("n1_b", (1, NHID)),
    ("n2_w", (1, NHID)), ("n2_b", (1, NHID)),
    ("n3_w", (1, NHID)), ("n3_b", (1, NHID)),
]:
    _LAYER_LAYOUT[_name] = (_off, _shape[0], _shape[1])   # (row offset, rows, cols)
    _off += _round8(_shape[0])                            # keep slices 8-row aligned
LAYER_SLAB_ROWS = _round8(_off)
LAYER_SLAB_COLS = 128


# =============================== fused Pallas kernel ===============================

def _mae_act_fused_kernel(
    src_ref,        # (B*S, n_mels)           spectrogram frames
    tok_ref,        # (B*T, 1) int32          target token ids
    pe_ref,         # (B*T, D)                positional encoding, pre-tiled over batch
    causal_ref,     # (T, T)                  additive causal mask (hoisted to host)
    enc_w_ref,      # (n_mels, NUM_CLASSES)   stand-in encoder projection
    enc_b_ref,      # (1, NUM_CLASSES)
    enc_lin_w_ref,  # (NUM_CLASSES, D)        self.encoder_linear
    enc_lin_b_ref,  # (1, D)
    word_emb_ref,   # (NTOKEN, D)             nn.Embedding weight
    slab_ref,       # (NLAYERS*LAYER_SLAB_ROWS, 128)  packed decoder-layer params
    dec_fc_w_ref,   # (D, NTOKEN_PAD)         nn.Linear(nhid, ntoken), lane-padded
    dec_fc_b_ref,   # (1, NTOKEN_PAD)
    out_ref,        # (B*T, NTOKEN_PAD)       lane-dense logits
    *, B, T, S, nhead):
    D = pe_ref.shape[1]
    hd = D // nhead
    scale = 1.0 / math.sqrt(hd)

    def mm(a, b):
        # MXU matmul: bf16 operands (v6e/v7x native), f32 accumulation.
        return jnp.dot(a.astype(jnp.bfloat16), b.astype(jnp.bfloat16),
                       preferred_element_type=jnp.float32)

    def layernorm(v, w, b):
        mu = jnp.mean(v, axis=-1, keepdims=True)
        var = jnp.mean((v - mu) ** 2, axis=-1, keepdims=True)
        return (v - mu) * lax.rsqrt(var + 1e-5) * w + b

    def attention(q, k, v, out_w, out_b, nq, nk, mask):
        # q: (B*nq, D), k/v: (B*nk, D); scores batched over B, static head loop,
        # concat-free output projection (per-head partial projections are summed).
        q3 = q.reshape(B, nq, D)
        k3 = k.reshape(B, nk, D)
        v3 = v.reshape(B, nk, D)
        attn = jnp.zeros((B * nq, D), jnp.float32)
        for h in range(nhead):
            sl = slice(h * hd, (h + 1) * hd)
            s = jnp.einsum("bqd,bkd->bqk", q3[:, :, sl], k3[:, :, sl],
                           preferred_element_type=jnp.float32) * scale
            if mask is not None:
                s = s + mask[None, :, :]
            s = s - jnp.max(s, axis=-1, keepdims=True)
            p = jnp.exp(s)
            p = p * pl.reciprocal(jnp.sum(p, axis=-1, keepdims=True), approx=True)
            o = jnp.einsum("bqk,bkd->bqd", p, v3[:, :, sl],
                           preferred_element_type=jnp.float32)
            attn = attn + mm(o.reshape(B * nq, hd), out_w[sl, :])
        return attn + out_b

    # -------- encode: stand-in frame projection -> encoder_linear -> ReLU --------
    # TODO(synk): AudioTransformer1 (ViT audio encoder) source is not provided in the
    # reference; a deterministic per-frame linear projection to 527 classes stands in.
    e = mm(src_ref[...], enc_w_ref[...]) + enc_b_ref[...]
    mem = jnp.maximum(mm(e, enc_lin_w_ref[...]) + enc_lin_b_ref[...], 0.0)   # (B*S, D)

    # -------- word embedding (one-hot gather on the MXU) + positional encoding --------
    tok = tok_ref[...]                                                       # (B*T, 1)
    vocab = lax.broadcasted_iota(jnp.int32, (tok.shape[0], word_emb_ref.shape[0]), 1)
    onehot = (vocab == tok).astype(jnp.float32)
    x = jnp.dot(onehot, word_emb_ref[...], preferred_element_type=jnp.float32)
    x = x * math.sqrt(D) + pe_ref[...]                                       # (B*T, D)

    causal = causal_ref[...]

    # -------- transformer decoder layers (post-norm, ReLU, eval-mode dropout) --------
    for l in range(NLAYERS):
        base = l * LAYER_SLAB_ROWS

        def W(name, _base=base):
            off, r, c = _LAYER_LAYOUT[name]
            return slab_ref[_base + off:_base + off + r, 0:c]

        # self-attention (causal); QKV as ONE matmul
        qkv = mm(x, W("sa_in_w")) + W("sa_in_b")                             # (B*T, 3D)
        sa = attention(qkv[:, 0:D], qkv[:, D:2 * D], qkv[:, 2 * D:3 * D],
                       W("sa_out_w"), W("sa_out_b"), T, T, causal)
        x = layernorm(x + sa, W("n1_w"), W("n1_b"))

        # cross-attention over encoder memory (no mask); KV as ONE matmul
        q = mm(x, W("ca_q_w")) + W("ca_q_b")                                 # (B*T, D)
        kv = mm(mem, W("ca_kv_w")) + W("ca_kv_b")                            # (B*S, 2D)
        ca = attention(q, kv[:, 0:D], kv[:, D:2 * D],
                       W("ca_out_w"), W("ca_out_b"), T, S, None)
        x = layernorm(x + ca, W("n2_w"), W("n2_b"))

        # feed-forward (ReLU)
        ff = jnp.maximum(mm(x, W("l1_w")) + W("l1_b"), 0.0)
        ff = mm(ff, W("l2_w")) + W("l2_b")
        x = layernorm(x + ff, W("n3_w"), W("n3_b"))

    # -------- decoder head: lane-dense 128-wide logits (sliced to ntoken outside) --------
    out_ref[...] = (mm(x, dec_fc_w_ref[...]) + dec_fc_b_ref[...]).astype(out_ref.dtype)


# =============================== host-side helpers ===============================

def positional_encoding(max_len, d_model):
    position = jnp.arange(max_len, dtype=jnp.float32)[:, None]
    div_term = jnp.exp(jnp.arange(0, d_model, 2, dtype=jnp.float32)
                       * (-math.log(10000.0) / d_model))
    pe = jnp.zeros((max_len, d_model), jnp.float32)
    pe = pe.at[:, 0::2].set(jnp.sin(position * div_term))
    pe = pe.at[:, 1::2].set(jnp.cos(position * div_term))
    return pe


def causal_mask(T):
    idx = jnp.arange(T)
    return jnp.where(idx[None, :] <= idx[:, None], 0.0, -1e30).astype(jnp.float32)


def pack_params(params):
    """One-time host-side packing of parameters into the kernel's fused inputs."""
    slab = jnp.zeros((NLAYERS * LAYER_SLAB_ROWS, LAYER_SLAB_COLS), jnp.float32)
    for l, lp in enumerate(params["layers"]):
        entries = dict(lp)
        # pre-split cross-attention in-projection into Q and KV parts (free, host-side)
        entries["ca_q_w"] = lp["ca_in_w"][:, :NHID]
        entries["ca_q_b"] = lp["ca_in_b"][:, :NHID]
        entries["ca_kv_w"] = lp["ca_in_w"][:, NHID:]
        entries["ca_kv_b"] = lp["ca_in_b"][:, NHID:]
        base = l * LAYER_SLAB_ROWS
        for name, (off, r, c) in _LAYER_LAYOUT.items():
            slab = slab.at[base + off:base + off + r, 0:c].set(entries[name].reshape(r, c))
    dec_fc_w = jnp.zeros((NHID, NTOKEN_PAD), jnp.float32).at[:, :NTOKEN].set(params["dec_fc_w"])
    dec_fc_b = jnp.zeros((1, NTOKEN_PAD), jnp.float32).at[:, :NTOKEN].set(params["dec_fc_b"])
    return {
        "enc_w": params["enc_w"], "enc_b": params["enc_b"],
        "enc_lin_w": params["enc_lin_w"], "enc_lin_b": params["enc_lin_b"],
        "word_emb": params["word_emb"],
        "layer_slab": slab,
        "dec_fc_w": dec_fc_w, "dec_fc_b": dec_fc_b,
        "pe": positional_encoding(2000, NHID),
    }


@jax.jit
def mae_act_forward(packed, src, tgt_tokens):
    """src: (B, S, n_mels) float32 ; tgt_tokens: (B, T) int32
       returns logits (T, B, NTOKEN) matching the PyTorch forward output."""
    B, S, n_mels = src.shape
    _, T = tgt_tokens.shape

    src_flat = src.reshape(B * S, n_mels).astype(jnp.float32)
    tok = tgt_tokens.reshape(B * T, 1).astype(jnp.int32)
    pe_bt = jnp.tile(packed["pe"][:T], (B, 1))          # (B*T, D), hoisted out of kernel
    mask = causal_mask(T)

    logits_pad = pl.pallas_call(
        partial(_mae_act_fused_kernel, B=B, T=T, S=S, nhead=NHEAD),
        out_shape=jax.ShapeDtypeStruct((B * T, NTOKEN_PAD), jnp.float32),
    )(src_flat, tok, pe_bt, mask,
      packed["enc_w"], packed["enc_b"], packed["enc_lin_w"], packed["enc_lin_b"],
      packed["word_emb"], packed["layer_slab"], packed["dec_fc_w"], packed["dec_fc_b"])

    logits = logits_pad.reshape(B, T, NTOKEN_PAD)[:, :, :NTOKEN]
    return logits.transpose(1, 0, 2)                     # (T, B, ntoken)


# =============================== pure-JAX reference ===============================

def mae_act_reference(params, src, tgt_tokens):
    """Pure-JAX mirror of the fused kernel (same bf16-operand matmul convention)."""
    B, S, n_mels = src.shape
    _, T = tgt_tokens.shape
    D, H, hd = NHID, NHEAD, NHID // NHEAD

    def mm(a, b):
        return jnp.dot(a.astype(jnp.bfloat16), b.astype(jnp.bfloat16),
                       preferred_element_type=jnp.float32)

    def ln(v, w, b):
        mu = jnp.mean(v, -1, keepdims=True)
        var = jnp.mean((v - mu) ** 2, -1, keepdims=True)
        return (v - mu) * lax.rsqrt(var + 1e-5) * w + b

    e = mm(src.reshape(B * S, n_mels), params["enc_w"]) + params["enc_b"]
    mem = jnp.maximum(mm(e, params["enc_lin_w"]) + params["enc_lin_b"], 0.0).reshape(B, S, D)

    pe = positional_encoding(2000, D)[:T]
    x = jnp.take(params["word_emb"], tgt_tokens, axis=0) * math.sqrt(D) + pe[None]
    mask = causal_mask(T)

    def attn(xq, xkv, in_w, in_b, out_w, out_b, m):
        Tq, Tk = xq.shape[1], xkv.shape[1]
        q = mm(xq.reshape(-1, D), in_w[:, :D]) + in_b[:, :D]
        k = mm(xkv.reshape(-1, D), in_w[:, D:2 * D]) + in_b[:, D:2 * D]
        v = mm(xkv.reshape(-1, D), in_w[:, 2 * D:]) + in_b[:, 2 * D:]
        q = q.reshape(B, Tq, H, hd).transpose(0, 2, 1, 3)
        k = k.reshape(B, Tk, H, hd).transpose(0, 2, 1, 3)
        v = v.reshape(B, Tk, H, hd).transpose(0, 2, 1, 3)
        s = jnp.einsum("bhqd,bhkd->bhqk", q, k) / math.sqrt(hd)
        if m is not None:
            s = s + m
        p = jax.nn.softmax(s, axis=-1)
        o = jnp.einsum("bhqk,bhkd->bhqd", p, v).transpose(0, 2, 1, 3).reshape(-1, D)
        return (mm(o, out_w) + out_b).reshape(B, Tq, D)

    for lp in params["layers"]:
        sa = attn(x, x, lp["sa_in_w"], lp["sa_in_b"], lp["sa_out_w"], lp["sa_out_b"], mask)
        x = ln(x + sa, lp["n1_w"], lp["n1_b"])
        ca = attn(x, mem, lp["ca_in_w"], lp["ca_in_b"], lp["ca_out_w"], lp["ca_out_b"], None)
        x = ln(x + ca, lp["n2_w"], lp["n2_b"])
        ff = jnp.maximum(mm(x.reshape(-1, D), lp["l1_w"]) + lp["l1_b"], 0.0)
        ff = (mm(ff, lp["l2_w"]) + lp["l2_b"]).reshape(B, T, D)
        x = ln(x + ff, lp["n3_w"], lp["n3_b"])

    logits = mm(x.reshape(-1, D), params["dec_fc_w"]) + params["dec_fc_b"]
    return logits.reshape(B, T, NTOKEN).transpose(1, 0, 2)


# =============================== parameter init ===============================

def init_params(key):
    ks = iter(jax.random.split(key, 64))

    def dense(shape, scale=0.05):
        return (scale * jax.random.normal(next(ks), shape)).astype(jnp.float32)

    params = {
        "enc_w": dense((16, NUM_CLASSES)),                   # stand-in encoder projection
        "enc_b": jnp.zeros((1, NUM_CLASSES), jnp.float32),
        "enc_lin_w": dense((NUM_CLASSES, NHID)),             # nn.Linear(527, nhid)
        "enc_lin_b": dense((1, NHID)),
        "word_emb": dense((NTOKEN, NHID), scale=1.0),        # nn.Embedding(ntoken, nhid)
        "dec_fc_w": dense((NHID, NTOKEN)),                   # nn.Linear(nhid, ntoken)
        "dec_fc_b": dense((1, NTOKEN)),
        "layers": [],
    }
    for _ in range(NLAYERS):
        params["layers"].append({
            "sa_in_w": dense((NHID, 3 * NHID)), "sa_in_b": dense((1, 3 * NHID)),
            "sa_out_w": dense((NHID, NHID)),    "sa_out_b": dense((1, NHID)),
            "ca_in_w": dense((NHID, 3 * NHID)), "ca_in_b": dense((1, 3 * NHID)),
            "ca_out_w": dense((NHID, NHID)),    "ca_out_b": dense((1, NHID)),
            "l1_w": dense((NHID, DIM_FF)),      "l1_b": dense((1, DIM_FF)),
            "l2_w": dense((DIM_FF, NHID)),      "l2_b": dense((1, NHID)),
            "n1_w": jnp.ones((1, NHID), jnp.float32), "n1_b": jnp.zeros((1, NHID), jnp.float32),
            "n2_w": jnp.ones((1, NHID), jnp.float32), "n2_b": jnp.zeros((1, NHID), jnp.float32),
            "n3_w": jnp.ones((1, NHID), jnp.float32), "n3_b": jnp.zeros((1, NHID), jnp.float32),
        })
    return params


if __name__ == "__main__":
    key = jax.random.PRNGKey(0)
    pk, sk, tk = jax.random.split(key, 3)

    B, T_SRC, N_MELS, T_TGT = 2, 8, 16, 8
    params = init_params(pk)
    packed = pack_params(params)

    src = jax.random.normal(sk, (B, T_SRC, N_MELS), jnp.float32)          # spectrogram
    tgt = jax.random.randint(tk, (B, T_TGT), 0, NTOKEN, dtype=jnp.int32)  # token ids

    out = mae_act_forward(packed, src, tgt)
    out = jax.block_until_ready(out)

    assert out.shape == (T_TGT, B, NTOKEN), out.shape
    assert out.dtype == jnp.float32
    assert bool(jnp.all(jnp.isfinite(out)))

    ref = mae_act_reference(params, src, tgt)
    err = float(jnp.max(jnp.abs(out - ref)))
    assert err < 2e-2, f"max |kernel - reference| = {err}"

    print("KERNEL_OK")
</pallas_src>

<mosaic_0001>
module attributes {stable_mosaic.version = 11 : i64} {
  func.func @_mae_act_fused_kernel(%arg0: memref<16x16xf32, #tpu.memory_space<vmem>>, %arg1: memref<16x1xi32, #tpu.memory_space<vmem>>, %arg2: memref<16x32xf32, #tpu.memory_space<vmem>>, %arg3: memref<8x8xf32, #tpu.memory_space<vmem>>, %arg4: memref<16x527xf32, #tpu.memory_space<vmem>>, %arg5: memref<1x527xf32, #tpu.memory_space<vmem>>, %arg6: memref<527x32xf32, #tpu.memory_space<vmem>>, %arg7: memref<1x32xf32, #tpu.memory_space<vmem>>, %arg8: memref<50x32xf32, #tpu.memory_space<vmem>>, %arg9: memref<720x128xf32, #tpu.memory_space<vmem>>, %arg10: memref<32x128xf32, #tpu.memory_space<vmem>>, %arg11: memref<1x128xf32, #tpu.memory_space<vmem>>, %arg12: memref<16x128xf32, #tpu.memory_space<vmem>>) attributes {dimension_semantics = [], scalar_prefetch = 0 : i64, scratch_operands = 0 : i64, tpu.core_type = #tpu.core_type<tc>} {
    %c0 = arith.constant 0 : index
    %c0_0 = arith.constant 0 : index
    %0 = vector.load %arg0[%c0, %c0_0] : memref<16x16xf32, #tpu.memory_space<vmem>>, vector<16x16xf32>
    %c0_1 = arith.constant 0 : index
    %c0_2 = arith.constant 0 : index
    %1 = vector.load %arg4[%c0_1, %c0_2] : memref<16x527xf32, #tpu.memory_space<vmem>>, vector<16x527xf32>
    %2 = arith.truncf %0 : vector<16x16xf32> to vector<16x16xbf16>
    %3 = arith.truncf %1 : vector<16x527xf32> to vector<16x527xbf16>
    %cst = arith.constant dense<0.000000e+00> : vector<16x527xf32>
    %4 = tpu.matmul %2, %3, %cst {dimension_numbers = #tpu.dot_dimension_numbers<[1], [0], [0], [1], [0, 0, 1, 1], [], []>} : vector<16x16xbf16>, vector<16x527xbf16>, vector<16x527xf32> -> vector<16x527xf32>
    %c0_3 = arith.constant 0 : index
    %c0_4 = arith.constant 0 : index
    %5 = vector.load %arg5[%c0_3, %c0_4] : memref<1x527xf32, #tpu.memory_space<vmem>>, vector<1x527xf32>
    %6 = vector.broadcast %5 : vector<1x527xf32> to vector<16x527xf32>
    %7 = arith.addf %4, %6 : vector<16x527xf32>
    %c0_5 = arith.constant 0 : index
    %c0_6 = arith.constant 0 : index
    %8 = vector.load %arg6[%c0_5, %c0_6] : memref<527x32xf32, #tpu.memory_space<vmem>>, vector<527x32xf32>
    %9 = arith.truncf %7 : vector<16x527xf32> to vector<16x527xbf16>
    %10 = arith.truncf %8 : vector<527x32xf32> to vector<527x32xbf16>
    %cst_7 = arith.constant dense<0.000000e+00> : vector<16x32xf32>
    %11 = tpu.matmul %9, %10, %cst_7 {dimension_numbers = #tpu.dot_dimension_numbers<[1], [0], [0], [1], [0, 0, 1, 1], [], []>} : vector<16x527xbf16>, vector<527x32xbf16>, vector<16x32xf32> -> vector<16x32xf32>
    %c0_8 = arith.constant 0 : index
    %c0_9 = arith.constant 0 : index
    %12 = vector.load %arg7[%c0_8, %c0_9] : memref<1x32xf32, #tpu.memory_space<vmem>>, vector<1x32xf32>
    %13 = vector.broadcast %12 : vector<1x32xf32> to vector<16x32xf32>
    %14 = arith.addf %11, %13 : vector<16x32xf32>
    %cst_10 = arith.constant 0.000000e+00 : f32
    %15 = vector.broadcast %cst_10 : f32 to vector<16x32xf32>
    %16 = arith.maximumf %14, %15 : vector<16x32xf32>
    %c0_11 = arith.constant 0 : index
    %c0_12 = arith.constant 0 : index
    %17 = vector.load %arg1[%c0_11, %c0_12] : memref<16x1xi32, #tpu.memory_space<vmem>>, vector<16x1xi32>
    %18 = tpu.iota {dimensions = array<i32: 1>} : vector<16x50xi32>
    %19 = vector.broadcast %17 : vector<16x1xi32> to vector<16x50xi32>
    %20 = arith.cmpi eq, %18, %19 : vector<16x50xi32>
    %21 = arith.extui %20 : vector<16x50xi1> to vector<16x50xi32>
    %22 = arith.sitofp %21 : vector<16x50xi32> to vector<16x50xf32>
    %c0_13 = arith.constant 0 : index
    %c0_14 = arith.constant 0 : index
    %23 = vector.load %arg8[%c0_13, %c0_14] : memref<50x32xf32, #tpu.memory_space<vmem>>, vector<50x32xf32>
    %cst_15 = arith.constant dense<0.000000e+00> : vector<16x32xf32>
    %24 = tpu.matmul %22, %23, %cst_15 {dimension_numbers = #tpu.dot_dimension_numbers<[1], [0], [0], [1], [0, 0, 1, 1], [], []>} : vector<16x50xf32>, vector<50x32xf32>, vector<16x32xf32> -> vector<16x32xf32>
    %cst_16 = arith.constant 5.65685415 : f32
    %25 = vector.broadcast %cst_16 : f32 to vector<16x32xf32>
    %26 = arith.mulf %24, %25 : vector<16x32xf32>
    %c0_17 = arith.constant 0 : index
    %c0_18 = arith.constant 0 : index
    %27 = vector.load %arg2[%c0_17, %c0_18] : memref<16x32xf32, #tpu.memory_space<vmem>>, vector<16x32xf32>
    %28 = arith.addf %26, %27 : vector<16x32xf32>
    %c0_19 = arith.constant 0 : index
    %c0_20 = arith.constant 0 : index
    %29 = vector.load %arg3[%c0_19, %c0_20] : memref<8x8xf32, #tpu.memory_space<vmem>>, vector<8x8xf32>
    %c0_21 = arith.constant 0 : index
    %c0_22 = arith.constant 0 : index
    %30 = vector.load %arg9[%c0_21, %c0_22] : memref<720x128xf32, #tpu.memory_space<vmem>>, vector<32x96xf32>
    %31 = arith.truncf %28 : vector<16x32xf32> to vector<16x32xbf16>
    %32 = arith.truncf %30 : vector<32x96xf32> to vector<32x96xbf16>
    %cst_23 = arith.constant dense<0.000000e+00> : vector<16x96xf32>
    %33 = tpu.matmul %31, %32, %cst_23 {dimension_numbers = #tpu.dot_dimension_numbers<[1], [0], [0], [1], [0, 0, 1, 1], [], []>} : vector<16x32xbf16>, vector<32x96xbf16>, vector<16x96xf32> -> vector<16x96xf32>
    %c32 = arith.constant 32 : index
    %c0_24 = arith.constant 0 : index
    %34 = vector.load %arg9[%c32, %c0_24] : memref<720x128xf32, #tpu.memory_space<vmem>>, vector<1x96xf32>
    %35 = vector.broadcast %34 : vector<1x96xf32> to vector<16x96xf32>
    %36 = arith.addf %33, %35 : vector<16x96xf32>
    %37 = vector.extract_strided_slice %36 {offsets = [0, 0], sizes = [16, 32], strides = [1, 1]} : vector<16x96xf32> to vector<16x32xf32>
    %38 = vector.extract_strided_slice %36 {offsets = [0, 32], sizes = [16, 32], strides = [1, 1]} : vector<16x96xf32> to vector<16x32xf32>
    %39 = vector.extract_strided_slice %36 {offsets = [0, 64], sizes = [16, 32], strides = [1, 1]} : vector<16x96xf32> to vector<16x32xf32>
    %c40 = arith.constant 40 : index
    %c0_25 = arith.constant 0 : index
    %40 = vector.load %arg9[%c40, %c0_25] : memref<720x128xf32, #tpu.memory_space<vmem>>, vector<32x32xf32>
    %c72 = arith.constant 72 : index
    %c0_26 = arith.constant 0 : index
    %41 = vector.load %arg9[%c72, %c0_26] : memref<720x128xf32, #tpu.memory_space<vmem>>, vector<1x32xf32>
    %42 = vector.shape_cast %37 : vector<16x32xf32> to vector<2x8x32xf32>
    %43 = vector.shape_cast %38 : vector<16x32xf32> to vector<2x8x32xf32>
    %44 = vector.shape_cast %39 : vector<16x32xf32> to vector<2x8x32xf32>
    %cst_27 = arith.constant 0.000000e+00 : f32
    %45 = vector.broadcast %cst_27 : f32 to vector<16x32xf32>
    %46 = vector.extract_strided_slice %42 {offsets = [0, 0, 0], sizes = [2, 8, 8], strides = [1, 1, 1]} : vector<2x8x32xf32> to vector<2x8x8xf32>
    %47 = vector.extract_strided_slice %43 {offsets = [0, 0, 0], sizes = [2, 8, 8], strides = [1, 1, 1]} : vector<2x8x32xf32> to vector<2x8x8xf32>
    "tpu.trace_start"() <{level = 10 : i32, message = "bqd,bkd->bqk"}> : () -> ()
    %cst_28 = arith.constant dense<0.000000e+00> : vector<2x8x8xf32>
    %48 = tpu.matmul %46, %47, %cst_28 {dimension_numbers = #tpu.dot_dimension_numbers<[2], [2], [1], [1], [0, 0, 0, 1, 1, 1], [0], [0]>} : vector<2x8x8xf32>, vector<2x8x8xf32>, vector<2x8x8xf32> -> vector<2x8x8xf32>
    "tpu.trace_stop"() : () -> ()
    %cst_29 = arith.constant 0.353553385 : f32
    %49 = vector.broadcast %cst_29 : f32 to vector<2x8x8xf32>
    %50 = arith.mulf %48, %49 : vector<2x8x8xf32>
    %51 = vector.shape_cast %29 : vector<8x8xf32> to vector<1x8x8xf32>
    %52 = vector.broadcast %51 : vector<1x8x8xf32> to vector<2x8x8xf32>
    %53 = arith.addf %50, %52 : vector<2x8x8xf32>
    %cst_30 = arith.constant dense<0xFF800000> : vector<2x8xf32>
    %54 = vector.multi_reduction <maximumf>, %53, %cst_30 [2] : vector<2x8x8xf32> to vector<2x8xf32>
    %55 = vector.shape_cast %54 : vector<2x8xf32> to vector<2x8x1xf32>
    %56 = vector.broadcast %55 : vector<2x8x1xf32> to vector<2x8x8xf32>
    %57 = arith.subf %53, %56 : vector<2x8x8xf32>
    %58 = math.exp %57 : vector<2x8x8xf32>
    %cst_31 = arith.constant dense<0.000000e+00> : vector<2x8xf32>
    %59 = vector.multi_reduction <add>, %58, %cst_31 [2] : vector<2x8x8xf32> to vector<2x8xf32>
    %60 = vector.shape_cast %59 : vector<2x8xf32> to vector<2x8x1xf32>
    %61 = tpu.reciprocal %60 {approx = true} : vector<2x8x1xf32> -> vector<2x8x1xf32>
    %62 = vector.broadcast %61 : vector<2x8x1xf32> to vector<2x8x8xf32>
    %63 = arith.mulf %58, %62 : vector<2x8x8xf32>
    %64 = vector.extract_strided_slice %44 {offsets = [0, 0, 0], sizes = [2, 8, 8], strides = [1, 1, 1]} : vector<2x8x32xf32> to vector<2x8x8xf32>
    "tpu.trace_start"() <{level = 10 : i32, message = "bqk,bkd->bqd"}> : () -> ()
    %cst_32 = arith.constant dense<0.000000e+00> : vector<2x8x8xf32>
    %65 = tpu.matmul %63, %64, %cst_32 {dimension_numbers = #tpu.dot_dimension_numbers<[2], [1], [1], [2], [0, 0, 0, 1, 1, 2], [0], [0]>} : vector<2x8x8xf32>, vector<2x8x8xf32>, vector<2x8x8xf32> -> vector<2x8x8xf32>
    "tpu.trace_stop"() : () -> ()
    %66 = vector.shape_cast %65 : vector<2x8x8xf32> to vector<16x8xf32>
    %67 = vector.extract_strided_slice %40 {offsets = [0, 0], sizes = [8, 32], strides = [1, 1]} : vector<32x32xf32> to vector<8x32xf32>
    %68 = arith.truncf %66 : vector<16x8xf32> to vector<16x8xbf16>
    %69 = arith.truncf %67 : vector<8x32xf32> to vector<8x32xbf16>
    %cst_33 = arith.constant dense<0.000000e+00> : vector<16x32xf32>
    %70 = tpu.matmul %68, %69, %cst_33 {dimension_numbers = #tpu.dot_dimension_numbers<[1], [0], [0], [1], [0, 0, 1, 1], [], []>} : vector<16x8xbf16>, vector<8x32xbf16>, vector<16x32xf32> -> vector<16x32xf32>
    %71 = arith.addf %45, %70 : vector<16x32xf32>
    %72 = vector.extract_strided_slice %42 {offsets = [0, 0, 8], sizes = [2, 8, 8], strides = [1, 1, 1]} : vector<2x8x32xf32> to vector<2x8x8xf32>
    %73 = vector.extract_strided_slice %43 {offsets = [0, 0, 8], sizes = [2, 8, 8], strides = [1, 1, 1]} : vector<2x8x32xf32> to vector<2x8x8xf32>
    "tpu.trace_start"() <{level = 10 : i32, message = "bqd,bkd->bqk"}> : () -> ()
    %cst_34 = arith.constant dense<0.000000e+00> : vector<2x8x8xf32>
    %74 = tpu.matmul %72, %73, %cst_34 {dimension_numbers = #tpu.dot_dimension_numbers<[2], [2], [1], [1], [0, 0, 0, 1, 1, 1], [0], [0]>} : vector<2x8x8xf32>, vector<2x8x8xf32>, vector<2x8x8xf32> -> vector<2x8x8xf32>
    "tpu.trace_stop"() : () -> ()
    %cst_35 = arith.constant 0.353553385 : f32
    %75 = vector.broadcast %cst_35 : f32 to vector<2x8x8xf32>
    %76 = arith.mulf %74, %75 : vector<2x8x8xf32>
    %77 = vector.shape_cast %29 : vector<8x8xf32> to vector<1x8x8xf32>
    %78 = vector.broadcast %77 : vector<1x8x8xf32> to vector<2x8x8xf32>
    %79 = arith.addf %76, %78 : vector<2x8x8xf32>
    %cst_36 = arith.constant dense<0xFF800000> : vector<2x8xf32>
    %80 = vector.multi_reduction <maximumf>, %79, %cst_36 [2] : vector<2x8x8xf32> to vector<2x8xf32>
    %81 = vector.shape_cast %80 : vector<2x8xf32> to vector<2x8x1xf32>
    %82 = vector.broadcast %81 : vector<2x8x1xf32> to vector<2x8x8xf32>
    %83 = arith.subf %79, %82 : vector<2x8x8xf32>
    %84 = math.exp %83 : vector<2x8x8xf32>
    %cst_37 = arith.constant dense<0.000000e+00> : vector<2x8xf32>
    %85 = vector.multi_reduction <add>, %84, %cst_37 [2] : vector<2x8x8xf32> to vector<2x8xf32>
    %86 = vector.shape_cast %85 : vector<2x8xf32> to vector<2x8x1xf32>
    %87 = tpu.reciprocal %86 {approx = true} : vector<2x8x1xf32> -> vector<2x8x1xf32>
    %88 = vector.broadcast %87 : vector<2x8x1xf32> to vector<2x8x8xf32>
    %89 = arith.mulf %84, %88 : vector<2x8x8xf32>
    %90 = vector.extract_strided_slice %44 {offsets = [0, 0, 8], sizes = [2, 8, 8], strides = [1, 1, 1]} : vector<2x8x32xf32> to vector<2x8x8xf32>
    "tpu.trace_start"() <{level = 10 : i32, message = "bqk,bkd->bqd"}> : () -> ()
    %cst_38 = arith.constant dense<0.000000e+00> : vector<2x8x8xf32>
    %91 = tpu.matmul %89, %90, %cst_38 {dimension_numbers = #tpu.dot_dimension_numbers<[2], [1], [1], [2], [0, 0, 0, 1, 1, 2], [0], [0]>} : vector<2x8x8xf32>, vector<2x8x8xf32>, vector<2x8x8xf32> -> vector<2x8x8xf32>
    "tpu.trace_stop"() : () -> ()
    %92 = vector.shape_cast %91 : vector<2x8x8xf32> to vector<16x8xf32>
    %93 = vector.extract_strided_slice %40 {offsets = [8, 0], sizes = [8, 32], strides = [1, 1]} : vector<32x32xf32> to vector<8x32xf32>
    %94 = arith.truncf %92 : vector<16x8xf32> to vector<16x8xbf16>
    %95 = arith.truncf %93 : vector<8x32xf32> to vector<8x32xbf16>
    %cst_39 = arith.constant dense<0.000000e+00> : vector<16x32xf32>
    %96 = tpu.matmul %94, %95, %cst_39 {dimension_numbers = #tpu.dot_dimension_numbers<[1], [0], [0], [1], [0, 0, 1, 1], [], []>} : vector<16x8xbf16>, vector<8x32xbf16>, vector<16x32xf32> -> vector<16x32xf32>
    %97 = arith.addf %71, %96 : vector<16x32xf32>
    %98 = vector.extract_strided_slice %42 {offsets = [0, 0, 16], sizes = [2, 8, 8], strides = [1, 1, 1]} : vector<2x8x32xf32> to vector<2x8x8xf32>
    %99 = vector.extract_strided_slice %43 {offsets = [0, 0, 16], sizes = [2, 8, 8], strides = [1, 1, 1]} : vector<2x8x32xf32> to vector<2x8x8xf32>
    "tpu.trace_start"() <{level = 10 : i32, message = "bqd,bkd->bqk"}> : () -> ()
    %cst_40 = arith.constant dense<0.000000e+00> : vector<2x8x8xf32>
    %100 = tpu.matmul %98, %99, %cst_40 {dimension_numbers = #tpu.dot_dimension_numbers<[2], [2], [1], [1], [0, 0, 0, 1, 1, 1], [0], [0]>} : vector<2x8x8xf32>, vector<2x8x8xf32>, vector<2x8x8xf32> -> vector<2x8x8xf32>
    "tpu.trace_stop"() : () -> ()
    %cst_41 = arith.constant 0.353553385 : f32
    %101 = vector.broadcast %cst_41 : f32 to vector<2x8x8xf32>
    %102 = arith.mulf %100, %101 : vector<2x8x8xf32>
    %103 = vector.shape_cast %29 : vector<8x8xf32> to vector<1x8x8xf32>
    %104 = vector.broadcast %103 : vector<1x8x8xf32> to vector<2x8x8xf32>
    %105 = arith.addf %102, %104 : vector<2x8x8xf32>
    %cst_42 = arith.constant dense<0xFF800000> : vector<2x8xf32>
    %106 = vector.multi_reduction <maximumf>, %105, %cst_42 [2] : vector<2x8x8xf32> to vector<2x8xf32>
    %107 = vector.shape_cast %106 : vector<2x8xf32> to vector<2x8x1xf32>
    %108 = vector.broadcast %107 : vector<2x8x1xf32> to vector<2x8x8xf32>
    %109 = arith.subf %105, %108 : vector<2x8x8xf32>
    %110 = math.exp %109 : vector<2x8x8xf32>
    %cst_43 = arith.constant dense<0.000000e+00> : vector<2x8xf32>
    %111 = vector.multi_reduction <add>, %110, %cst_43 [2] : vector<2x8x8xf32> to vector<2x8xf32>
    %112 = vector.shape_cast %111 : vector<2x8xf32> to vector<2x8x1xf32>
    %113 = tpu.reciprocal %112 {approx = true} : vector<2x8x1xf32> -> vector<2x8x1xf32>
    %114 = vector.broadcast %113 : vector<2x8x1xf32> to vector<2x8x8xf32>
    %115 = arith.mulf %110, %114 : vector<2x8x8xf32>
    %116 = vector.extract_strided_slice %44 {offsets = [0, 0, 16], sizes = [2, 8, 8], strides = [1, 1, 1]} : vector<2x8x32xf32> to vector<2x8x8xf32>
    "tpu.trace_start"() <{level = 10 : i32, message = "bqk,bkd->bqd"}> : () -> ()
    %cst_44 = arith.constant dense<0.000000e+00> : vector<2x8x8xf32>
    %117 = tpu.matmul %115, %116, %cst_44 {dimension_numbers = #tpu.dot_dimension_numbers<[2], [1], [1], [2], [0, 0, 0, 1, 1, 2], [0], [0]>} : vector<2x8x8xf32>, vector<2x8x8xf32>, vector<2x8x8xf32> -> vector<2x8x8xf32>
    "tpu.trace_stop"() : () -> ()
    %118 = vector.shape_cast %117 : vector<2x8x8xf32> to vector<16x8xf32>
    %119 = vector.extract_strided_slice %40 {offsets = [16, 0], sizes = [8, 32], strides = [1, 1]} : vector<32x32xf32> to vector<8x32xf32>
    %120 = arith.truncf %118 : vector<16x8xf32> to vector<16x8xbf16>
    %121 = arith.truncf %119 : vector<8x32xf32> to vector<8x32xbf16>
    %cst_45 = arith.constant dense<0.000000e+00> : vector<16x32xf32>
    %122 = tpu.matmul %120, %121, %cst_45 {dimension_numbers = #tpu.dot_dimension_numbers<[1], [0], [0], [1], [0, 0, 1, 1], [], []>} : vector<16x8xbf16>, vector<8x32xbf16>, vector<16x32xf32> -> vector<16x32xf32>
    %123 = arith.addf %97, %122 : vector<16x32xf32>
    %124 = vector.extract_strided_slice %42 {offsets = [0, 0, 24], sizes = [2, 8, 8], strides = [1, 1, 1]} : vector<2x8x32xf32> to vector<2x8x8xf32>
    %125 = vector.extract_strided_slice %43 {offsets = [0, 0, 24], sizes = [2, 8, 8], strides = [1, 1, 1]} : vector<2x8x32xf32> to vector<2x8x8xf32>
    "tpu.trace_start"() <{level = 10 : i32, message = "bqd,bkd->bqk"}> : () -> ()
    %cst_46 = arith.constant dense<0.000000e+00> : vector<2x8x8xf32>
    %126 = tpu.matmul %124, %125, %cst_46 {dimension_numbers = #tpu.dot_dimension_numbers<[2], [2], [1], [1], [0, 0, 0, 1, 1, 1], [0], [0]>} : vector<2x8x8xf32>, vector<2x8x8xf32>, vector<2x8x8xf32> -> vector<2x8x8xf32>
    "tpu.trace_stop"() : () -> ()
    %cst_47 = arith.constant 0.353553385 : f32
    %127 = vector.broadcast %cst_47 : f32 to vector<2x8x8xf32>
    %128 = arith.mulf %126, %127 : vector<2x8x8xf32>
    %129 = vector.shape_cast %29 : vector<8x8xf32> to vector<1x8x8xf32>
    %130 = vector.broadcast %129 : vector<1x8x8xf32> to vector<2x8x8xf32>
    %131 = arith.addf %128, %130 : vector<2x8x8xf32>
    %cst_48 = arith.constant dense<0xFF800000> : vector<2x8xf32>
    %132 = vector.multi_reduction <maximumf>, %131, %cst_48 [2] : vector<2x8x8xf32> to vector<2x8xf32>
    %133 = vector.shape_cast %132 : vector<2x8xf32> to vector<2x8x1xf32>
    %134 = vector.broadcast %133 : vector<2x8x1xf32> to vector<2x8x8xf32>
    %135 = arith.subf %131, %134 : vector<2x8x8xf32>
    %136 = math.exp %135 : vector<2x8x8xf32>
    %cst_49 = arith.constant dense<0.000000e+00> : vector<2x8xf32>
    %137 = vector.multi_reduction <add>, %136, %cst_49 [2] : vector<2x8x8xf32> to vector<2x8xf32>
    %138 = vector.shape_cast %137 : vector<2x8xf32> to vector<2x8x1xf32>
    %139 = tpu.reciprocal %138 {approx = true} : vector<2x8x1xf32> -> vector<2x8x1xf32>
    %140 = vector.broadcast %139 : vector<2x8x1xf32> to vector<2x8x8xf32>
    %141 = arith.mulf %136, %140 : vector<2x8x8xf32>
    %142 = vector.extract_strided_slice %44 {offsets = [0, 0, 24], sizes = [2, 8, 8], strides = [1, 1, 1]} : vector<2x8x32xf32> to vector<2x8x8xf32>
    "tpu.trace_start"() <{level = 10 : i32, message = "bqk,bkd->bqd"}> : () -> ()
    %cst_50 = arith.constant dense<0.000000e+00> : vector<2x8x8xf32>
    %143 = tpu.matmul %141, %142, %cst_50 {dimension_numbers = #tpu.dot_dimension_numbers<[2], [1], [1], [2], [0, 0, 0, 1, 1, 2], [0], [0]>} : vector<2x8x8xf32>, vector<2x8x8xf32>, vector<2x8x8xf32> -> vector<2x8x8xf32>
    "tpu.trace_stop"() : () -> ()
    %144 = vector.shape_cast %143 : vector<2x8x8xf32> to vector<16x8xf32>
    %145 = vector.extract_strided_slice %40 {offsets = [24, 0], sizes = [8, 32], strides = [1, 1]} : vector<32x32xf32> to vector<8x32xf32>
    %146 = arith.truncf %144 : vector<16x8xf32> to vector<16x8xbf16>
    %147 = arith.truncf %145 : vector<8x32xf32> to vector<8x32xbf16>
    %cst_51 = arith.constant dense<0.000000e+00> : vector<16x32xf32>
    %148 = tpu.matmul %146, %147, %cst_51 {dimension_numbers = #tpu.dot_dimension_numbers<[1], [0], [0], [1], [0, 0, 1, 1], [], []>} : vector<16x8xbf16>, vector<8x32xbf16>, vector<16x32xf32> -> vector<16x32xf32>
    %149 = arith.addf %123, %148 : vector<16x32xf32>
    %150 = vector.broadcast %41 : vector<1x32xf32> to vector<16x32xf32>
    %151 = arith.addf %149, %150 : vector<16x32xf32>
    %152 = arith.addf %28, %151 : vector<16x32xf32>
    %c312 = arith.constant 312 : index
    %c0_52 = arith.constant 0 : index
    %153 = vector.load %arg9[%c312, %c0_52] : memref<720x128xf32, #tpu.memory_space<vmem>>, vector<1x32xf32>
    %c320 = arith.constant 320 : index
    %c0_53 = arith.constant 0 : index
    %154 = vector.load %arg9[%c320, %c0_53] : memref<720x128xf32, #tpu.memory_space<vmem>>, vector<1x32xf32>
    %cst_54 = arith.constant dense<0.000000e+00> : vector<16xf32>
    %155 = vector.multi_reduction <add>, %152, %cst_54 [1] : vector<16x32xf32> to vector<16xf32>
    %156 = vector.shape_cast %155 : vector<16xf32> to vector<16x1xf32>
    %cst_55 = arith.constant 3.200000e+01 : f32
    %157 = vector.broadcast %cst_55 : f32 to vector<16x1xf32>
    %158 = arith.divf %156, %157 : vector<16x1xf32>
    %159 = vector.broadcast %158 : vector<16x1xf32> to vector<16x32xf32>
    %160 = arith.subf %152, %159 : vector<16x32xf32>
    %161 = arith.mulf %160, %160 : vector<16x32xf32>
    %cst_56 = arith.constant dense<0.000000e+00> : vector<16xf32>
    %162 = vector.multi_reduction <add>, %161, %cst_56 [1] : vector<16x32xf32> to vector<16xf32>
    %163 = vector.shape_cast %162 : vector<16xf32> to vector<16x1xf32>
    %cst_57 = arith.constant 3.200000e+01 : f32
    %164 = vector.broadcast %cst_57 : f32 to vector<16x1xf32>
    %165 = arith.divf %163, %164 : vector<16x1xf32>
    %166 = vector.broadcast %158 : vector<16x1xf32> to vector<16x32xf32>
    %167 = arith.subf %152, %166 : vector<16x32xf32>
    %cst_58 = arith.constant 9.99999974E-6 : f32
    %168 = vector.broadcast %cst_58 : f32 to vector<16x1xf32>
    %169 = arith.addf %165, %168 : vector<16x1xf32>
    %170 = math.rsqrt %169 : vector<16x1xf32>
    %171 = vector.broadcast %170 : vector<16x1xf32> to vector<16x32xf32>
    %172 = arith.mulf %167, %171 : vector<16x32xf32>
    %173 = vector.broadcast %153 : vector<1x32xf32> to vector<16x32xf32>
    %174 = arith.mulf %172, %173 : vector<16x32xf32>
    %175 = vector.broadcast %154 : vector<1x32xf32> to vector<16x32xf32>
    %176 = arith.addf %174, %175 : vector<16x32xf32>
    %c80 = arith.constant 80 : index
    %c0_59 = arith.constant 0 : index
    %177 = vector.load %arg9[%c80, %c0_59] : memref<720x128xf32, #tpu.memory_space<vmem>>, vector<32x32xf32>
    %178 = arith.truncf %176 : vector<16x32xf32> to vector<16x32xbf16>
    %179 = arith.truncf %177 : vector<32x32xf32> to vector<32x32xbf16>
    %cst_60 = arith.constant dense<0.000000e+00> : vector<16x32xf32>
    %180 = tpu.matmul %178, %179, %cst_60 {dimension_numbers = #tpu.dot_dimension_numbers<[1], [0], [0], [1], [0, 0, 1, 1], [], []>} : vector<16x32xbf16>, vector<32x32xbf16>, vector<16x32xf32> -> vector<16x32xf32>
    %c112 = arith.constant 112 : index
    %c0_61 = arith.constant 0 : index
    %181 = vector.load %arg9[%c112, %c0_61] : memref<720x128xf32, #tpu.memory_space<vmem>>, vector<1x32xf32>
    %182 = vector.broadcast %181 : vector<1x32xf32> to vector<16x32xf32>
    %183 = arith.addf %180, %182 : vector<16x32xf32>
    %c120 = arith.constant 120 : index
    %c0_62 = arith.constant 0 : index
    %184 = vector.load %arg9[%c120, %c0_62] : memref<720x128xf32, #tpu.memory_space<vmem>>, vector<32x64xf32>
    %185 = arith.truncf %16 : vector<16x32xf32> to vector<16x32xbf16>
    %186 = arith.truncf %184 : vector<32x64xf32> to vector<32x64xbf16>
    %cst_63 = arith.constant dense<0.000000e+00> : vector<16x64xf32>
    %187 = tpu.matmul %185, %186, %cst_63 {dimension_numbers = #tpu.dot_dimension_numbers<[1], [0], [0], [1], [0, 0, 1, 1], [], []>} : vector<16x32xbf16>, vector<32x64xbf16>, vector<16x64xf32> -> vector<16x64xf32>
    %c152 = arith.constant 152 : index
    %c0_64 = arith.constant 0 : index
    %188 = vector.load %arg9[%c152, %c0_64] : memref<720x128xf32, #tpu.memory_space<vmem>>, vector<1x64xf32>
    %189 = vector.broadcast %188 : vector<1x64xf32> to vector<16x64xf32>
    %190 = arith.addf %187, %189 : vector<16x64xf32>
    %191 = vector.extract_strided_slice %190 {offsets = [0, 0], sizes = [16, 32], strides = [1, 1]} : vector<16x64xf32> to vector<16x32xf32>
    %192 = vector.extract_strided_slice %190 {offsets = [0, 32], sizes = [16, 32], strides = [1, 1]} : vector<16x64xf32> to vector<16x32xf32>
    %c160 = arith.constant 160 : index
    %c0_65 = arith.constant 0 : index
    %193 = vector.load %arg9[%c160, %c0_65] : memref<720x128xf32, #tpu.memory_space<vmem>>, vector<32x32xf32>
    %c192 = arith.constant 192 : index
    %c0_66 = arith.constant 0 : index
    %194 = vector.load %arg9[%c192, %c0_66] : memref<720x128xf32, #tpu.memory_space<vmem>>, vector<1x32xf32>
    %195 = vector.shape_cast %183 : vector<16x32xf32> to vector<2x8x32xf32>
    %196 = vector.shape_cast %191 : vector<16x32xf32> to vector<2x8x32xf32>
    %197 = vector.shape_cast %192 : vector<16x32xf32> to vector<2x8x32xf32>
    %cst_67 = arith.constant 0.000000e+00 : f32
    %198 = vector.broadcast %cst_67 : f32 to vector<16x32xf32>
    %199 = vector.extract_strided_slice %195 {offsets = [0, 0, 0], sizes = [2, 8, 8], strides = [1, 1, 1]} : vector<2x8x32xf32> to vector<2x8x8xf32>
    %200 = vector.extract_strided_slice %196 {offsets = [0, 0, 0], sizes = [2, 8, 8], strides = [1, 1, 1]} : vector<2x8x32xf32> to vector<2x8x8xf32>
    "tpu.trace_start"() <{level = 10 : i32, message = "bqd,bkd->bqk"}> : () -> ()
    %cst_68 = arith.constant dense<0.000000e+00> : vector<2x8x8xf32>
    %201 = tpu.matmul %199, %200, %cst_68 {dimension_numbers = #tpu.dot_dimension_numbers<[2], [2], [1], [1], [0, 0, 0, 1, 1, 1], [0], [0]>} : vector<2x8x8xf32>, vector<2x8x8xf32>, vector<2x8x8xf32> -> vector<2x8x8xf32>
    "tpu.trace_stop"() : () -> ()
    %cst_69 = arith.constant 0.353553385 : f32
    %202 = vector.broadcast %cst_69 : f32 to vector<2x8x8xf32>
    %203 = arith.mulf %201, %202 : vector<2x8x8xf32>
    %cst_70 = arith.constant dense<0xFF800000> : vector<2x8xf32>
    %204 = vector.multi_reduction <maximumf>, %203, %cst_70 [2] : vector<2x8x8xf32> to vector<2x8xf32>
    %205 = vector.shape_cast %204 : vector<2x8xf32> to vector<2x8x1xf32>
    %206 = vector.broadcast %205 : vector<2x8x1xf32> to vector<2x8x8xf32>
    %207 = arith.subf %203, %206 : vector<2x8x8xf32>
    %208 = math.exp %207 : vector<2x8x8xf32>
    %cst_71 = arith.constant dense<0.000000e+00> : vector<2x8xf32>
    %209 = vector.multi_reduction <add>, %208, %cst_71 [2] : vector<2x8x8xf32> to vector<2x8xf32>
    %210 = vector.shape_cast %209 : vector<2x8xf32> to vector<2x8x1xf32>
    %211 = tpu.reciprocal %210 {approx = true} : vector<2x8x1xf32> -> vector<2x8x1xf32>
    %212 = vector.broadcast %211 : vector<2x8x1xf32> to vector<2x8x8xf32>
    %213 = arith.mulf %208, %212 : vector<2x8x8xf32>
    %214 = vector.extract_strided_slice %197 {offsets = [0, 0, 0], sizes = [2, 8, 8], strides = [1, 1, 1]} : vector<2x8x32xf32> to vector<2x8x8xf32>
    "tpu.trace_start"() <{level = 10 : i32, message = "bqk,bkd->bqd"}> : () -> ()
    %cst_72 = arith.constant dense<0.000000e+00> : vector<2x8x8xf32>
    %215 = tpu.matmul %213, %214, %cst_72 {dimension_numbers = #tpu.dot_dimension_numbers<[2], [1], [1], [2], [0, 0, 0, 1, 1, 2], [0], [0]>} : vector<2x8x8xf32>, vector<2x8x8xf32>, vector<2x8x8xf32> -> vector<2x8x8xf32>
    "tpu.trace_stop"() : () -> ()
    %216 = vector.shape_cast %215 : vector<2x8x8xf32> to vector<16x8xf32>
    %217 = vector.extract_strided_slice %193 {offsets = [0, 0], sizes = [8, 32], strides = [1, 1]} : vector<32x32xf32> to vector<8x32xf32>
    %218 = arith.truncf %216 : vector<16x8xf32> to vector<16x8xbf16>
    %219 = arith.truncf %217 : vector<8x32xf32> to vector<8x32xbf16>
    %cst_73 = arith.constant dense<0.000000e+00> : vector<16x32xf32>
    %220 = tpu.matmul %218, %219, %cst_73 {dimension_numbers = #tpu.dot_dimension_numbers<[1], [0], [0], [1], [0, 0, 1, 1], [], []>} : vector<16x8xbf16>, vector<8x32xbf16>, vector<16x32xf32> -> vector<16x32xf32>
    %221 = arith.addf %198, %220 : vector<16x32xf32>
    %222 = vector.extract_strided_slice %195 {offsets = [0, 0, 8], sizes = [2, 8, 8], strides = [1, 1, 1]} : vector<2x8x32xf32> to vector<2x8x8xf32>
    %223 = vector.extract_strided_slice %196 {offsets = [0, 0, 8], sizes = [2, 8, 8], strides = [1, 1, 1]} : vector<2x8x32xf32> to vector<2x8x8xf32>
    "tpu.trace_start"() <{level = 10 : i32, message = "bqd,bkd->bqk"}> : () -> ()
    %cst_74 = arith.constant dense<0.000000e+00> : vector<2x8x8xf32>
    %224 = tpu.matmul %222, %223, %cst_74 {dimension_numbers = #tpu.dot_dimension_numbers<[2], [2], [1], [1], [0, 0, 0, 1, 1, 1], [0], [0]>} : vector<2x8x8xf32>, vector<2x8x8xf32>, vector<2x8x8xf32> -> vector<2x8x8xf32>
    "tpu.trace_stop"() : () -> ()
    %cst_75 = arith.constant 0.353553385 : f32
    %225 = vector.broadcast %cst_75 : f32 to vector<2x8x8xf32>
    %226 = arith.mulf %224, %225 : vector<2x8x8xf32>
    %cst_76 = arith.constant dense<0xFF800000> : vector<2x8xf32>
    %227 = vector.multi_reduction <maximumf>, %226, %cst_76 [2] : vector<2x8x8xf32> to vector<2x8xf32>
    %228 = vector.shape_cast %227 : vector<2x8xf32> to vector<2x8x1xf32>
    %229 = vector.broadcast %228 : vector<2x8x1xf32> to vector<2x8x8xf32>
    %230 = arith.subf %226, %229 : vector<2x8x8xf32>
    %231 = math.exp %230 : vector<2x8x8xf32>
    %cst_77 = arith.constant dense<0.000000e+00> : vector<2x8xf32>
    %232 = vector.multi_reduction <add>, %231, %cst_77 [2] : vector<2x8x8xf32> to vector<2x8xf32>
    %233 = vector.shape_cast %232 : vector<2x8xf32> to vector<2x8x1xf32>
    %234 = tpu.reciprocal %233 {approx = true} : vector<2x8x1xf32> -> vector<2x8x1xf32>
    %235 = vector.broadcast %234 : vector<2x8x1xf32> to vector<2x8x8xf32>
    %236 = arith.mulf %231, %235 : vector<2x8x8xf32>
    %237 = vector.extract_strided_slice %197 {offsets = [0, 0, 8], sizes = [2, 8, 8], strides = [1, 1, 1]} : vector<2x8x32xf32> to vector<2x8x8xf32>
    "tpu.trace_start"() <{level = 10 : i32, message = "bqk,bkd->bqd"}> : () -> ()
    %cst_78 = arith.constant dense<0.000000e+00> : vector<2x8x8xf32>
    %238 = tpu.matmul %236, %237, %cst_78 {dimension_numbers = #tpu.dot_dimension_numbers<[2], [1], [1], [2], [0, 0, 0, 1, 1, 2], [0], [0]>} : vector<2x8x8xf32>, vector<2x8x8xf32>, vector<2x8x8xf32> -> vector<2x8x8xf32>
    "tpu.trace_stop"() : () -> ()
    %239 = vector.shape_cast %238 : vector<2x8x8xf32> to vector<16x8xf32>
    %240 = vector.extract_strided_slice %193 {offsets = [8, 0], sizes = [8, 32], strides = [1, 1]} : vector<32x32xf32> to vector<8x32xf32>
    %241 = arith.truncf %239 : vector<16x8xf32> to vector<16x8xbf16>
    %242 = arith.truncf %240 : vector<8x32xf32> to vector<8x32xbf16>
    %cst_79 = arith.constant dense<0.000000e+00> : vector<16x32xf32>
    %243 = tpu.matmul %241, %242, %cst_79 {dimension_numbers = #tpu.dot_dimension_numbers<[1], [0], [0], [1], [0, 0, 1, 1], [], []>} : vector<16x8xbf16>, vector<8x32xbf16>, vector<16x32xf32> -> vector<16x32xf32>
    %244 = arith.addf %221, %243 : vector<16x32xf32>
    %245 = vector.extract_strided_slice %195 {offsets = [0, 0, 16], sizes = [2, 8, 8], strides = [1, 1, 1]} : vector<2x8x32xf32> to vector<2x8x8xf32>
    %246 = vector.extract_strided_slice %196 {offsets = [0, 0, 16], sizes = [2, 8, 8], strides = [1, 1, 1]} : vector<2x8x32xf32> to vector<2x8x8xf32>
    "tpu.trace_start"() <{level = 10 : i32, message = "bqd,bkd->bqk"}> : () -> ()
    %cst_80 = arith.constant dense<0.000000e+00> : vector<2x8x8xf32>
    %247 = tpu.matmul %245, %246, %cst_80 {dimension_numbers = #tpu.dot_dimension_numbers<[2], [2], [1], [1], [0, 0, 0, 1, 1, 1], [0], [0]>} : vector<2x8x8xf32>, vector<2x8x8xf32>, vector<2x8x8xf32> -> vector<2x8x8xf32>
    "tpu.trace_stop"() : () -> ()
    %cst_81 = arith.constant 0.353553385 : f32
    %248 = vector.broadcast %cst_81 : f32 to vector<2x8x8xf32>
    %249 = arith.mulf %247, %248 : vector<2x8x8xf32>
    %cst_82 = arith.constant dense<0xFF800000> : vector<2x8xf32>
    %250 = vector.multi_reduction <maximumf>, %249, %cst_82 [2] : vector<2x8x8xf32> to vector<2x8xf32>
    %251 = vector.shape_cast %250 : vector<2x8xf32> to vector<2x8x1xf32>
    %252 = vector.broadcast %251 : vector<2x8x1xf32> to vector<2x8x8xf32>
    %253 = arith.subf %249, %252 : vector<2x8x8xf32>
    %254 = math.exp %253 : vector<2x8x8xf32>
    %cst_83 = arith.constant dense<0.000000e+00> : vector<2x8xf32>
    %255 = vector.multi_reduction <add>, %254, %cst_83 [2] : vector<2x8x8xf32> to vector<2x8xf32>
    %256 = vector.shape_cast %255 : vector<2x8xf32> to vector<2x8x1xf32>
    %257 = tpu.reciprocal %256 {approx = true} : vector<2x8x1xf32> -> vector<2x8x1xf32>
    %258 = vector.broadcast %257 : vector<2x8x1xf32> to vector<2x8x8xf32>
    %259 = arith.mulf %254, %258 : vector<2x8x8xf32>
    %260 = vector.extract_strided_slice %197 {offsets = [0, 0, 16], sizes = [2, 8, 8], strides = [1, 1, 1]} : vector<2x8x32xf32> to vector<2x8x8xf32>
    "tpu.trace_start"() <{level = 10 : i32, message = "bqk,bkd->bqd"}> : () -> ()
    %cst_84 = arith.constant dense<0.000000e+00> : vector<2x8x8xf32>
    %261 = tpu.matmul %259, %260, %cst_84 {dimension_numbers = #tpu.dot_dimension_numbers<[2], [1], [1], [2], [0, 0, 0, 1, 1, 2], [0], [0]>} : vector<2x8x8xf32>, vector<2x8x8xf32>, vector<2x8x8xf32> -> vector<2x8x8xf32>
    "tpu.trace_stop"() : () -> ()
    %262 = vector.shape_cast %261 : vector<2x8x8xf32> to vector<16x8xf32>
    %263 = vector.extract_strided_slice %193 {offsets = [16, 0], sizes = [8, 32], strides = [1, 1]} : vector<32x32xf32> to vector<8x32xf32>
    %264 = arith.truncf %262 : vector<16x8xf32> to vector<16x8xbf16>
    %265 = arith.truncf %263 : vector<8x32xf32> to vector<8x32xbf16>
    %cst_85 = arith.constant dense<0.000000e+00> : vector<16x32xf32>
    %266 = tpu.matmul %264, %265, %cst_85 {dimension_numbers = #tpu.dot_dimension_numbers<[1], [0], [0], [1], [0, 0, 1, 1], [], []>} : vector<16x8xbf16>, vector<8x32xbf16>, vector<16x32xf32> -> vector<16x32xf32>
    %267 = arith.addf %244, %266 : vector<16x32xf32>
    %268 = vector.extract_strided_slice %195 {offsets = [0, 0, 24], sizes = [2, 8, 8], strides = [1, 1, 1]} : vector<2x8x32xf32> to vector<2x8x8xf32>
    %269 = vector.extract_strided_slice %196 {offsets = [0, 0, 24], sizes = [2, 8, 8], strides = [1, 1, 1]} : vector<2x8x32xf32> to vector<2x8x8xf32>
    "tpu.trace_start"() <{level = 10 : i32, message = "bqd,bkd->bqk"}> : () -> ()
    %cst_86 = arith.constant dense<0.000000e+00> : vector<2x8x8xf32>
    %270 = tpu.matmul %268, %269, %cst_86 {dimension_numbers = #tpu.dot_dimension_numbers<[2], [2], [1], [1], [0, 0, 0, 1, 1, 1], [0], [0]>} : vector<2x8x8xf32>, vector<2x8x8xf32>, vector<2x8x8xf32> -> vector<2x8x8xf32>
    "tpu.trace_stop"() : () -> ()
    %cst_87 = arith.constant 0.353553385 : f32
    %271 = vector.broadcast %cst_87 : f32 to vector<2x8x8xf32>
    %272 = arith.mulf %270, %271 : vector<2x8x8xf32>
    %cst_88 = arith.constant dense<0xFF800000> : vector<2x8xf32>
    %273 = vector.multi_reduction <maximumf>, %272, %cst_88 [2] : vector<2x8x8xf32> to vector<2x8xf32>
    %274 = vector.shape_cast %273 : vector<2x8xf32> to vector<2x8x1xf32>
    %275 = vector.broadcast %274 : vector<2x8x1xf32> to vector<2x8x8xf32>
    %276 = arith.subf %272, %275 : vector<2x8x8xf32>
    %277 = math.exp %276 : vector<2x8x8xf32>
    %cst_89 = arith.constant dense<0.000000e+00> : vector<2x8xf32>
    %278 = vector.multi_reduction <add>, %277, %cst_89 [2] : vector<2x8x8xf32> to vector<2x8xf32>
    %279 = vector.shape_cast %278 : vector<2x8xf32> to vector<2x8x1xf32>
    %280 = tpu.reciprocal %279 {approx = true} : vector<2x8x1xf32> -> vector<2x8x1xf32>
    %281 = vector.broadcast %280 : vector<2x8x1xf32> to vector<2x8x8xf32>
    %282 = arith.mulf %277, %281 : vector<2x8x8xf32>
    %283 = vector.extract_strided_slice %197 {offsets = [0, 0, 24], sizes = [2, 8, 8], strides = [1, 1, 1]} : vector<2x8x32xf32> to vector<2x8x8xf32>
    "tpu.trace_start"() <{level = 10 : i32, message = "bqk,bkd->bqd"}> : () -> ()
    %cst_90 = arith.constant dense<0.000000e+00> : vector<2x8x8xf32>
    %284 = tpu.matmul %282, %283, %cst_90 {dimension_numbers = #tpu.dot_dimension_numbers<[2], [1], [1], [2], [0, 0, 0, 1, 1, 2], [0], [0]>} : vector<2x8x8xf32>, vector<2x8x8xf32>, vector<2x8x8xf32> -> vector<2x8x8xf32>
    "tpu.trace_stop"() : () -> ()
    %285 = vector.shape_cast %284 : vector<2x8x8xf32> to vector<16x8xf32>
    %286 = vector.extract_strided_slice %193 {offsets = [24, 0], sizes = [8, 32], strides = [1, 1]} : vector<32x32xf32> to vector<8x32xf32>
    %287 = arith.truncf %285 : vector<16x8xf32> to vector<16x8xbf16>
    %288 = arith.truncf %286 : vector<8x32xf32> to vector<8x32xbf16>
    %cst_91 = arith.constant dense<0.000000e+00> : vector<16x32xf32>
    %289 = tpu.matmul %287, %288, %cst_91 {dimension_numbers = #tpu.dot_dimension_numbers<[1], [0], [0], [1], [0, 0, 1, 1], [], []>} : vector<16x8xbf16>, vector<8x32xbf16>, vector<16x32xf32> -> vector<16x32xf32>
    %290 = arith.addf %267, %289 : vector<16x32xf32>
    %291 = vector.broadcast %194 : vector<1x32xf32> to vector<16x32xf32>
    %292 = arith.addf %290, %291 : vector<16x32xf32>
    %293 = arith.addf %176, %292 : vector<16x32xf32>
    %c328 = arith.constant 328 : index
    %c0_92 = arith.constant 0 : index
    %294 = vector.load %arg9[%c328, %c0_92] : memref<720x128xf32, #tpu.memory_space<vmem>>, vector<1x32xf32>
    %c336 = arith.constant 336 : index
    %c0_93 = arith.constant 0 : index
    %295 = vector.load %arg9[%c336, %c0_93] : memref<720x128xf32, #tpu.memory_space<vmem>>, vector<1x32xf32>
    %cst_94 = arith.constant dense<0.000000e+00> : vector<16xf32>
    %296 = vector.multi_reduction <add>, %293, %cst_94 [1] : vector<16x32xf32> to vector<16xf32>
    %297 = vector.shape_cast %296 : vector<16xf32> to vector<16x1xf32>
    %cst_95 = arith.constant 3.200000e+01 : f32
    %298 = vector.broadcast %cst_95 : f32 to vector<16x1xf32>
    %299 = arith.divf %297, %298 : vector<16x1xf32>
    %300 = vector.broadcast %299 : vector<16x1xf32> to vector<16x32xf32>
    %301 = arith.subf %293, %300 : vector<16x32xf32>
    %302 = arith.mulf %301, %301 : vector<16x32xf32>
    %cst_96 = arith.constant dense<0.000000e+00> : vector<16xf32>
    %303 = vector.multi_reduction <add>, %302, %cst_96 [1] : vector<16x32xf32> to vector<16xf32>
    %304 = vector.shape_cast %303 : vector<16xf32> to vector<16x1xf32>
    %cst_97 = arith.constant 3.200000e+01 : f32
    %305 = vector.broadcast %cst_97 : f32 to vector<16x1xf32>
    %306 = arith.divf %304, %305 : vector<16x1xf32>
    %307 = vector.broadcast %299 : vector<16x1xf32> to vector<16x32xf32>
    %308 = arith.subf %293, %307 : vector<16x32xf32>
    %cst_98 = arith.constant 9.99999974E-6 : f32
    %309 = vector.broadcast %cst_98 : f32 to vector<16x1xf32>
    %310 = arith.addf %306, %309 : vector<16x1xf32>
    %311 = math.rsqrt %310 : vector<16x1xf32>
    %312 = vector.broadcast %311 : vector<16x1xf32> to vector<16x32xf32>
    %313 = arith.mulf %308, %312 : vector<16x32xf32>
    %314 = vector.broadcast %294 : vector<1x32xf32> to vector<16x32xf32>
    %315 = arith.mulf %313, %314 : vector<16x32xf32>
    %316 = vector.broadcast %295 : vector<1x32xf32> to vector<16x32xf32>
    %317 = arith.addf %315, %316 : vector<16x32xf32>
    %c200 = arith.constant 200 : index
    %c0_99 = arith.constant 0 : index
    %318 = vector.load %arg9[%c200, %c0_99] : memref<720x128xf32, #tpu.memory_space<vmem>>, vector<32x64xf32>
    %319 = arith.truncf %317 : vector<16x32xf32> to vector<16x32xbf16>
    %320 = arith.truncf %318 : vector<32x64xf32> to vector<32x64xbf16>
    %cst_100 = arith.constant dense<0.000000e+00> : vector<16x64xf32>
    %321 = tpu.matmul %319, %320, %cst_100 {dimension_numbers = #tpu.dot_dimension_numbers<[1], [0], [0], [1], [0, 0, 1, 1], [], []>} : vector<16x32xbf16>, vector<32x64xbf16>, vector<16x64xf32> -> vector<16x64xf32>
    %c232 = arith.constant 232 : index
    %c0_101 = arith.constant 0 : index
    %322 = vector.load %arg9[%c232, %c0_101] : memref<720x128xf32, #tpu.memory_space<vmem>>, vector<1x64xf32>
    %323 = vector.broadcast %322 : vector<1x64xf32> to vector<16x64xf32>
    %324 = arith.addf %321, %323 : vector<16x64xf32>
    %cst_102 = arith.constant 0.000000e+00 : f32
    %325 = vector.broadcast %cst_102 : f32 to vector<16x64xf32>
    %326 = arith.maximumf %324, %325 : vector<16x64xf32>
    %c240 = arith.constant 240 : index
    %c0_103 = arith.constant 0 : index
    %327 = vector.load %arg9[%c240, %c0_103] : memref<720x128xf32, #tpu.memory_space<vmem>>, vector<64x32xf32>
    %328 = arith.truncf %326 : vector<16x64xf32> to vector<16x64xbf16>
    %329 = arith.truncf %327 : vector<64x32xf32> to vector<64x32xbf16>
    %cst_104 = arith.constant dense<0.000000e+00> : vector<16x32xf32>
    %330 = tpu.matmul %328, %329, %cst_104 {dimension_numbers = #tpu.dot_dimension_numbers<[1], [0], [0], [1], [0, 0, 1, 1], [], []>} : vector<16x64xbf16>, vector<64x32xbf16>, vector<16x32xf32> -> vector<16x32xf32>
    %c304 = arith.constant 304 : index
    %c0_105 = arith.constant 0 : index
    %331 = vector.load %arg9[%c304, %c0_105] : memref<720x128xf32, #tpu.memory_space<vmem>>, vector<1x32xf32>
    %332 = vector.broadcast %331 : vector<1x32xf32> to vector<16x32xf32>
    %333 = arith.addf %330, %332 : vector<16x32xf32>
    %334 = arith.addf %317, %333 : vector<16x32xf32>
    %c344 = arith.constant 344 : index
    %c0_106 = arith.constant 0 : index
    %335 = vector.load %arg9[%c344, %c0_106] : memref<720x128xf32, #tpu.memory_space<vmem>>, vector<1x32xf32>
    %c352 = arith.constant 352 : index
    %c0_107 = arith.constant 0 : index
    %336 = vector.load %arg9[%c352, %c0_107] : memref<720x128xf32, #tpu.memory_space<vmem>>, vector<1x32xf32>
    %cst_108 = arith.constant dense<0.000000e+00> : vector<16xf32>
    %337 = vector.multi_reduction <add>, %334, %cst_108 [1] : vector<16x32xf32> to vector<16xf32>
    %338 = vector.shape_cast %337 : vector<16xf32> to vector<16x1xf32>
    %cst_109 = arith.constant 3.200000e+01 : f32
    %339 = vector.broadcast %cst_109 : f32 to vector<16x1xf32>
    %340 = arith.divf %338, %339 : vector<16x1xf32>
    %341 = vector.broadcast %340 : vector<16x1xf32> to vector<16x32xf32>
    %342 = arith.subf %334, %341 : vector<16x32xf32>
    %343 = arith.mulf %342, %342 : vector<16x32xf32>
    %cst_110 = arith.constant dense<0.000000e+00> : vector<16xf32>
    %344 = vector.multi_reduction <add>, %343, %cst_110 [1] : vector<16x32xf32> to vector<16xf32>
    %345 = vector.shape_cast %344 : vector<16xf32> to vector<16x1xf32>
    %cst_111 = arith.constant 3.200000e+01 : f32
    %346 = vector.broadcast %cst_111 : f32 to vector<16x1xf32>
    %347 = arith.divf %345, %346 : vector<16x1xf32>
    %348 = vector.broadcast %340 : vector<16x1xf32> to vector<16x32xf32>
    %349 = arith.subf %334, %348 : vector<16x32xf32>
    %cst_112 = arith.constant 9.99999974E-6 : f32
    %350 = vector.broadcast %cst_112 : f32 to vector<16x1xf32>
    %351 = arith.addf %347, %350 : vector<16x1xf32>
    %352 = math.rsqrt %351 : vector<16x1xf32>
    %353 = vector.broadcast %352 : vector<16x1xf32> to vector<16x32xf32>
    %354 = arith.mulf %349, %353 : vector<16x32xf32>
    %355 = vector.broadcast %335 : vector<1x32xf32> to vector<16x32xf32>
    %356 = arith.mulf %354, %355 : vector<16x32xf32>
    %357 = vector.broadcast %336 : vector<1x32xf32> to vector<16x32xf32>
    %358 = arith.addf %356, %357 : vector<16x32xf32>
    %c360 = arith.constant 360 : index
    %c0_113 = arith.constant 0 : index
    %359 = vector.load %arg9[%c360, %c0_113] : memref<720x128xf32, #tpu.memory_space<vmem>>, vector<32x96xf32>
    %360 = arith.truncf %358 : vector<16x32xf32> to vector<16x32xbf16>
    %361 = arith.truncf %359 : vector<32x96xf32> to vector<32x96xbf16>
    %cst_114 = arith.constant dense<0.000000e+00> : vector<16x96xf32>
    %362 = tpu.matmul %360, %361, %cst_114 {dimension_numbers = #tpu.dot_dimension_numbers<[1], [0], [0], [1], [0, 0, 1, 1], [], []>} : vector<16x32xbf16>, vector<32x96xbf16>, vector<16x96xf32> -> vector<16x96xf32>
    %c392 = arith.constant 392 : index
    %c0_115 = arith.constant 0 : index
    %363 = vector.load %arg9[%c392, %c0_115] : memref<720x128xf32, #tpu.memory_space<vmem>>, vector<1x96xf32>
    %364 = vector.broadcast %363 : vector<1x96xf32> to vector<16x96xf32>
    %365 = arith.addf %362, %364 : vector<16x96xf32>
    %366 = vector.extract_strided_slice %365 {offsets = [0, 0], sizes = [16, 32], strides = [1, 1]} : vector<16x96xf32> to vector<16x32xf32>
    %367 = vector.extract_strided_slice %365 {offsets = [0, 32], sizes = [16, 32], strides = [1, 1]} : vector<16x96xf32> to vector<16x32xf32>
    %368 = vector.extract_strided_slice %365 {offsets = [0, 64], sizes = [16, 32], strides = [1, 1]} : vector<16x96xf32> to vector<16x32xf32>
    %c400 = arith.constant 400 : index
    %c0_116 = arith.constant 0 : index
    %369 = vector.load %arg9[%c400, %c0_116] : memref<720x128xf32, #tpu.memory_space<vmem>>, vector<32x32xf32>
    %c432 = arith.constant 432 : index
    %c0_117 = arith.constant 0 : index
    %370 = vector.load %arg9[%c432, %c0_117] : memref<720x128xf32, #tpu.memory_space<vmem>>, vector<1x32xf32>
    %371 = vector.shape_cast %366 : vector<16x32xf32> to vector<2x8x32xf32>
    %372 = vector.shape_cast %367 : vector<16x32xf32> to vector<2x8x32xf32>
    %373 = vector.shape_cast %368 : vector<16x32xf32> to vector<2x8x32xf32>
    %cst_118 = arith.constant 0.000000e+00 : f32
    %374 = vector.broadcast %cst_118 : f32 to vector<16x32xf32>
    %375 = vector.extract_strided_slice %371 {offsets = [0, 0, 0], sizes = [2, 8, 8], strides = [1, 1, 1]} : vector<2x8x32xf32> to vector<2x8x8xf32>
    %376 = vector.extract_strided_slice %372 {offsets = [0, 0, 0], sizes = [2, 8, 8], strides = [1, 1, 1]} : vector<2x8x32xf32> to vector<2x8x8xf32>
    "tpu.trace_start"() <{level = 10 : i32, message = "bqd,bkd->bqk"}> : () -> ()
    %cst_119 = arith.constant dense<0.000000e+00> : vector<2x8x8xf32>
    %377 = tpu.matmul %375, %376, %cst_119 {dimension_numbers = #tpu.dot_dimension_numbers<[2], [2], [1], [1], [0, 0, 0, 1, 1, 1], [0], [0]>} : vector<2x8x8xf32>, vector<2x8x8xf32>, vector<2x8x8xf32> -> vector<2x8x8xf32>
    "tpu.trace_stop"() : () -> ()
    %cst_120 = arith.constant 0.353553385 : f32
    %378 = vector.broadcast %cst_120 : f32 to vector<2x8x8xf32>
    %379 = arith.mulf %377, %378 : vector<2x8x8xf32>
    %380 = vector.shape_cast %29 : vector<8x8xf32> to vector<1x8x8xf32>
    %381 = vector.broadcast %380 : vector<1x8x8xf32> to vector<2x8x8xf32>
    %382 = arith.addf %379, %381 : vector<2x8x8xf32>
    %cst_121 = arith.constant dense<0xFF800000> : vector<2x8xf32>
    %383 = vector.multi_reduction <maximumf>, %382, %cst_121 [2] : vector<2x8x8xf32> to vector<2x8xf32>
    %384 = vector.shape_cast %383 : vector<2x8xf32> to vector<2x8x1xf32>
    %385 = vector.broadcast %384 : vector<2x8x1xf32> to vector<2x8x8xf32>
    %386 = arith.subf %382, %385 : vector<2x8x8xf32>
    %387 = math.exp %386 : vector<2x8x8xf32>
    %cst_122 = arith.constant dense<0.000000e+00> : vector<2x8xf32>
    %388 = vector.multi_reduction <add>, %387, %cst_122 [2] : vector<2x8x8xf32> to vector<2x8xf32>
    %389 = vector.shape_cast %388 : vector<2x8xf32> to vector<2x8x1xf32>
    %390 = tpu.reciprocal %389 {approx = true} : vector<2x8x1xf32> -> vector<2x8x1xf32>
    %391 = vector.broadcast %390 : vector<2x8x1xf32> to vector<2x8x8xf32>
    %392 = arith.mulf %387, %391 : vector<2x8x8xf32>
    %393 = vector.extract_strided_slice %373 {offsets = [0, 0, 0], sizes = [2, 8, 8], strides = [1, 1, 1]} : vector<2x8x32xf32> to vector<2x8x8xf32>
    "tpu.trace_start"() <{level = 10 : i32, message = "bqk,bkd->bqd"}> : () -> ()
    %cst_123 = arith.constant dense<0.000000e+00> : vector<2x8x8xf32>
    %394 = tpu.matmul %392, %393, %cst_123 {dimension_numbers = #tpu.dot_dimension_numbers<[2], [1], [1], [2], [0, 0, 0, 1, 1, 2], [0], [0]>} : vector<2x8x8xf32>, vector<2x8x8xf32>, vector<2x8x8xf32> -> vector<2x8x8xf32>
    "tpu.trace_stop"() : () -> ()
    %395 = vector.shape_cast %394 : vector<2x8x8xf32> to vector<16x8xf32>
    %396 = vector.extract_strided_slice %369 {offsets = [0, 0], sizes = [8, 32], strides = [1, 1]} : vector<32x32xf32> to vector<8x32xf32>
    %397 = arith.truncf %395 : vector<16x8xf32> to vector<16x8xbf16>
    %398 = arith.truncf %396 : vector<8x32xf32> to vector<8x32xbf16>
    %cst_124 = arith.constant dense<0.000000e+00> : vector<16x32xf32>
    %399 = tpu.matmul %397, %398, %cst_124 {dimension_numbers = #tpu.dot_dimension_numbers<[1], [0], [0], [1], [0, 0, 1, 1], [], []>} : vector<16x8xbf16>, vector<8x32xbf16>, vector<16x32xf32> -> vector<16x32xf32>
    %400 = arith.addf %374, %399 : vector<16x32xf32>
    %401 = vector.extract_strided_slice %371 {offsets = [0, 0, 8], sizes = [2, 8, 8], strides = [1, 1, 1]} : vector<2x8x32xf32> to vector<2x8x8xf32>
    %402 = vector.extract_strided_slice %372 {offsets = [0, 0, 8], sizes = [2, 8, 8], strides = [1, 1, 1]} : vector<2x8x32xf32> to vector<2x8x8xf32>
    "tpu.trace_start"() <{level = 10 : i32, message = "bqd,bkd->bqk"}> : () -> ()
    %cst_125 = arith.constant dense<0.000000e+00> : vector<2x8x8xf32>
    %403 = tpu.matmul %401, %402, %cst_125 {dimension_numbers = #tpu.dot_dimension_numbers<[2], [2], [1], [1], [0, 0, 0, 1, 1, 1], [0], [0]>} : vector<2x8x8xf32>, vector<2x8x8xf32>, vector<2x8x8xf32> -> vector<2x8x8xf32>
    "tpu.trace_stop"() : () -> ()
    %cst_126 = arith.constant 0.353553385 : f32
    %404 = vector.broadcast %cst_126 : f32 to vector<2x8x8xf32>
    %405 = arith.mulf %403, %404 : vector<2x8x8xf32>
    %406 = vector.shape_cast %29 : vector<8x8xf32> to vector<1x8x8xf32>
    %407 = vector.broadcast %406 : vector<1x8x8xf32> to vector<2x8x8xf32>
    %408 = arith.addf %405, %407 : vector<2x8x8xf32>
    %cst_127 = arith.constant dense<0xFF800000> : vector<2x8xf32>
    %409 = vector.multi_reduction <maximumf>, %408, %cst_127 [2] : vector<2x8x8xf32> to vector<2x8xf32>
    %410 = vector.shape_cast %409 : vector<2x8xf32> to vector<2x8x1xf32>
    %411 = vector.broadcast %410 : vector<2x8x1xf32> to vector<2x8x8xf32>
    %412 = arith.subf %408, %411 : vector<2x8x8xf32>
    %413 = math.exp %412 : vector<2x8x8xf32>
    %cst_128 = arith.constant dense<0.000000e+00> : vector<2x8xf32>
    %414 = vector.multi_reduction <add>, %413, %cst_128 [2] : vector<2x8x8xf32> to vector<2x8xf32>
    %415 = vector.shape_cast %414 : vector<2x8xf32> to vector<2x8x1xf32>
    %416 = tpu.reciprocal %415 {approx = true} : vector<2x8x1xf32> -> vector<2x8x1xf32>
    %417 = vector.broadcast %416 : vector<2x8x1xf32> to vector<2x8x8xf32>
    %418 = arith.mulf %413, %417 : vector<2x8x8xf32>
    %419 = vector.extract_strided_slice %373 {offsets = [0, 0, 8], sizes = [2, 8, 8], strides = [1, 1, 1]} : vector<2x8x32xf32> to vector<2x8x8xf32>
    "tpu.trace_start"() <{level = 10 : i32, message = "bqk,bkd->bqd"}> : () -> ()
    %cst_129 = arith.constant dense<0.000000e+00> : vector<2x8x8xf32>
    %420 = tpu.matmul %418, %419, %cst_129 {dimension_numbers = #tpu.dot_dimension_numbers<[2], [1], [1], [2], [0, 0, 0, 1, 1, 2], [0], [0]>} : vector<2x8x8xf32>, vector<2x8x8xf32>, vector<2x8x8xf32> -> vector<2x8x8xf32>
    "tpu.trace_stop"() : () -> ()
    %421 = vector.shape_cast %420 : vector<2x8x8xf32> to vector<16x8xf32>
    %422 = vector.extract_strided_slice %369 {offsets = [8, 0], sizes = [8, 32], strides = [1, 1]} : vector<32x32xf32> to vector<8x32xf32>
    %423 = arith.truncf %421 : vector<16x8xf32> to vector<16x8xbf16>
    %424 = arith.truncf %422 : vector<8x32xf32> to vector<8x32xbf16>
    %cst_130 = arith.constant dense<0.000000e+00> : vector<16x32xf32>
    %425 = tpu.matmul %423, %424, %cst_130 {dimension_numbers = #tpu.dot_dimension_numbers<[1], [0], [0], [1], [0, 0, 1, 1], [], []>} : vector<16x8xbf16>, vector<8x32xbf16>, vector<16x32xf32> -> vector<16x32xf32>
    %426 = arith.addf %400, %425 : vector<16x32xf32>
    %427 = vector.extract_strided_slice %371 {offsets = [0, 0, 16], sizes = [2, 8, 8], strides = [1, 1, 1]} : vector<2x8x32xf32> to vector<2x8x8xf32>
    %428 = vector.extract_strided_slice %372 {offsets = [0, 0, 16], sizes = [2, 8, 8], strides = [1, 1, 1]} : vector<2x8x32xf32> to vector<2x8x8xf32>
    "tpu.trace_start"() <{level = 10 : i32, message = "bqd,bkd->bqk"}> : () -> ()
    %cst_131 = arith.constant dense<0.000000e+00> : vector<2x8x8xf32>
    %429 = tpu.matmul %427, %428, %cst_131 {dimension_numbers = #tpu.dot_dimension_numbers<[2], [2], [1], [1], [0, 0, 0, 1, 1, 1], [0], [0]>} : vector<2x8x8xf32>, vector<2x8x8xf32>, vector<2x8x8xf32> -> vector<2x8x8xf32>
    "tpu.trace_stop"() : () -> ()
    %cst_132 = arith.constant 0.353553385 : f32
    %430 = vector.broadcast %cst_132 : f32 to vector<2x8x8xf32>
    %431 = arith.mulf %429, %430 : vector<2x8x8xf32>
    %432 = vector.shape_cast %29 : vector<8x8xf32> to vector<1x8x8xf32>
    %433 = vector.broadcast %432 : vector<1x8x8xf32> to vector<2x8x8xf32>
    %434 = arith.addf %431, %433 : vector<2x8x8xf32>
    %cst_133 = arith.constant dense<0xFF800000> : vector<2x8xf32>
    %435 = vector.multi_reduction <maximumf>, %434, %cst_133 [2] : vector<2x8x8xf32> to vector<2x8xf32>
    %436 = vector.shape_cast %435 : vector<2x8xf32> to vector<2x8x1xf32>
    %437 = vector.broadcast %436 : vector<2x8x1xf32> to vector<2x8x8xf32>
    %438 = arith.subf %434, %437 : vector<2x8x8xf32>
    %439 = math.exp %438 : vector<2x8x8xf32>
    %cst_134 = arith.constant dense<0.000000e+00> : vector<2x8xf32>
    %440 = vector.multi_reduction <add>, %439, %cst_134 [2] : vector<2x8x8xf32> to vector<2x8xf32>
    %441 = vector.shape_cast %440 : vector<2x8xf32> to vector<2x8x1xf32>
    %442 = tpu.reciprocal %441 {approx = true} : vector<2x8x1xf32> -> vector<2x8x1xf32>
    %443 = vector.broadcast %442 : vector<2x8x1xf32> to vector<2x8x8xf32>
    %444 = arith.mulf %439, %443 : vector<2x8x8xf32>
    %445 = vector.extract_strided_slice %373 {offsets = [0, 0, 16], sizes = [2, 8, 8], strides = [1, 1, 1]} : vector<2x8x32xf32> to vector<2x8x8xf32>
    "tpu.trace_start"() <{level = 10 : i32, message = "bqk,bkd->bqd"}> : () -> ()
    %cst_135 = arith.constant dense<0.000000e+00> : vector<2x8x8xf32>
    %446 = tpu.matmul %444, %445, %cst_135 {dimension_numbers = #tpu.dot_dimension_numbers<[2], [1], [1], [2], [0, 0, 0, 1, 1, 2], [0], [0]>} : vector<2x8x8xf32>, vector<2x8x8xf32>, vector<2x8x8xf32> -> vector<2x8x8xf32>
    "tpu.trace_stop"() : () -> ()
    %447 = vector.shape_cast %446 : vector<2x8x8xf32> to vector<16x8xf32>
    %448 = vector.extract_strided_slice %369 {offsets = [16, 0], sizes = [8, 32], strides = [1, 1]} : vector<32x32xf32> to vector<8x32xf32>
    %449 = arith.truncf %447 : vector<16x8xf32> to vector<16x8xbf16>
    %450 = arith.truncf %448 : vector<8x32xf32> to vector<8x32xbf16>
    %cst_136 = arith.constant dense<0.000000e+00> : vector<16x32xf32>
    %451 = tpu.matmul %449, %450, %cst_136 {dimension_numbers = #tpu.dot_dimension_numbers<[1], [0], [0], [1], [0, 0, 1, 1], [], []>} : vector<16x8xbf16>, vector<8x32xbf16>, vector<16x32xf32> -> vector<16x32xf32>
    %452 = arith.addf %426, %451 : vector<16x32xf32>
    %453 = vector.extract_strided_slice %371 {offsets = [0, 0, 24], sizes = [2, 8, 8], strides = [1, 1, 1]} : vector<2x8x32xf32> to vector<2x8x8xf32>
    %454 = vector.extract_strided_slice %372 {offsets = [0, 0, 24], sizes = [2, 8, 8], strides = [1, 1, 1]} : vector<2x8x32xf32> to vector<2x8x8xf32>
    "tpu.trace_start"() <{level = 10 : i32, message = "bqd,bkd->bqk"}> : () -> ()
    %cst_137 = arith.constant dense<0.000000e+00> : vector<2x8x8xf32>
    %455 = tpu.matmul %453, %454, %cst_137 {dimension_numbers = #tpu.dot_dimension_numbers<[2], [2], [1], [1], [0, 0, 0, 1, 1, 1], [0], [0]>} : vector<2x8x8xf32>, vector<2x8x8xf32>, vector<2x8x8xf32> -> vector<2x8x8xf32>
    "tpu.trace_stop"() : () -> ()
    %cst_138 = arith.constant 0.353553385 : f32
    %456 = vector.broadcast %cst_138 : f32 to vector<2x8x8xf32>
    %457 = arith.mulf %455, %456 : vector<2x8x8xf32>
    %458 = vector.shape_cast %29 : vector<8x8xf32> to vector<1x8x8xf32>
    %459 = vector.broadcast %458 : vector<1x8x8xf32> to vector<2x8x8xf32>
    %460 = arith.addf %457, %459 : vector<2x8x8xf32>
    %cst_139 = arith.constant dense<0xFF800000> : vector<2x8xf32>
    %461 = vector.multi_reduction <maximumf>, %460, %cst_139 [2] : vector<2x8x8xf32> to vector<2x8xf32>
    %462 = vector.shape_cast %461 : vector<2x8xf32> to vector<2x8x1xf32>
    %463 = vector.broadcast %462 : vector<2x8x1xf32> to vector<2x8x8xf32>
    %464 = arith.subf %460, %463 : vector<2x8x8xf32>
    %465 = math.exp %464 : vector<2x8x8xf32>
    %cst_140 = arith.constant dense<0.000000e+00> : vector<2x8xf32>
    %466 = vector.multi_reduction <add>, %465, %cst_140 [2] : vector<2x8x8xf32> to vector<2x8xf32>
    %467 = vector.shape_cast %466 : vector<2x8xf32> to vector<2x8x1xf32>
    %468 = tpu.reciprocal %467 {approx = true} : vector<2x8x1xf32> -> vector<2x8x1xf32>
    %469 = vector.broadcast %468 : vector<2x8x1xf32> to vector<2x8x8xf32>
    %470 = arith.mulf %465, %469 : vector<2x8x8xf32>
    %471 = vector.extract_strided_slice %373 {offsets = [0, 0, 24], sizes = [2, 8, 8], strides = [1, 1, 1]} : vector<2x8x32xf32> to vector<2x8x8xf32>
    "tpu.trace_start"() <{level = 10 : i32, message = "bqk,bkd->bqd"}> : () -> ()
    %cst_141 = arith.constant dense<0.000000e+00> : vector<2x8x8xf32>
    %472 = tpu.matmul %470, %471, %cst_141 {dimension_numbers = #tpu.dot_dimension_numbers<[2], [1], [1], [2], [0, 0, 0, 1, 1, 2], [0], [0]>} : vector<2x8x8xf32>, vector<2x8x8xf32>, vector<2x8x8xf32> -> vector<2x8x8xf32>
    "tpu.trace_stop"() : () -> ()
    %473 = vector.shape_cast %472 : vector<2x8x8xf32> to vector<16x8xf32>
    %474 = vector.extract_strided_slice %369 {offsets = [24, 0], sizes = [8, 32], strides = [1, 1]} : vector<32x32xf32> to vector<8x32xf32>
    %475 = arith.truncf %473 : vector<16x8xf32> to vector<16x8xbf16>
    %476 = arith.truncf %474 : vector<8x32xf32> to vector<8x32xbf16>
    %cst_142 = arith.constant dense<0.000000e+00> : vector<16x32xf32>
    %477 = tpu.matmul %475, %476, %cst_142 {dimension_numbers = #tpu.dot_dimension_numbers<[1], [0], [0], [1], [0, 0, 1, 1], [], []>} : vector<16x8xbf16>, vector<8x32xbf16>, vector<16x32xf32> -> vector<16x32xf32>
    %478 = arith.addf %452, %477 : vector<16x32xf32>
    %479 = vector.broadcast %370 : vector<1x32xf32> to vector<16x32xf32>
    %480 = arith.addf %478, %479 : vector<16x32xf32>
    %481 = arith.addf %358, %480 : vector<16x32xf32>
    %c672 = arith.constant 672 : index
    %c0_143 = arith.constant 0 : index
    %482 = vector.load %arg9[%c672, %c0_143] : memref<720x128xf32, #tpu.memory_space<vmem>>, vector<1x32xf32>
    %c680 = arith.constant 680 : index
    %c0_144 = arith.constant 0 : index
    %483 = vector.load %arg9[%c680, %c0_144] : memref<720x128xf32, #tpu.memory_space<vmem>>, vector<1x32xf32>
    %cst_145 = arith.constant dense<0.000000e+00> : vector<16xf32>
    %484 = vector.multi_reduction <add>, %481, %cst_145 [1] : vector<16x32xf32> to vector<16xf32>
    %485 = vector.shape_cast %484 : vector<16xf32> to vector<16x1xf32>
    %cst_146 = arith.constant 3.200000e+01 : f32
    %486 = vector.broadcast %cst_146 : f32 to vector<16x1xf32>
    %487 = arith.divf %485, %486 : vector<16x1xf32>
    %488 = vector.broadcast %487 : vector<16x1xf32> to vector<16x32xf32>
    %489 = arith.subf %481, %488 : vector<16x32xf32>
    %490 = arith.mulf %489, %489 : vector<16x32xf32>
    %cst_147 = arith.constant dense<0.000000e+00> : vector<16xf32>
    %491 = vector.multi_reduction <add>, %490, %cst_147 [1] : vector<16x32xf32> to vector<16xf32>
    %492 = vector.shape_cast %491 : vector<16xf32> to vector<16x1xf32>
    %cst_148 = arith.constant 3.200000e+01 : f32
    %493 = vector.broadcast %cst_148 : f32 to vector<16x1xf32>
    %494 = arith.divf %492, %493 : vector<16x1xf32>
    %495 = vector.broadcast %487 : vector<16x1xf32> to vector<16x32xf32>
    %496 = arith.subf %481, %495 : vector<16x32xf32>
    %cst_149 = arith.constant 9.99999974E-6 : f32
    %497 = vector.broadcast %cst_149 : f32 to vector<16x1xf32>
    %498 = arith.addf %494, %497 : vector<16x1xf32>
    %499 = math.rsqrt %498 : vector<16x1xf32>
    %500 = vector.broadcast %499 : vector<16x1xf32> to vector<16x32xf32>
    %501 = arith.mulf %496, %500 : vector<16x32xf32>
    %502 = vector.broadcast %482 : vector<1x32xf32> to vector<16x32xf32>
    %503 = arith.mulf %501, %502 : vector<16x32xf32>
    %504 = vector.broadcast %483 : vector<1x32xf32> to vector<16x32xf32>
    %505 = arith.addf %503, %504 : vector<16x32xf32>
    %c440 = arith.constant 440 : index
    %c0_150 = arith.constant 0 : index
    %506 = vector.load %arg9[%c440, %c0_150] : memref<720x128xf32, #tpu.memory_space<vmem>>, vector<32x32xf32>
    %507 = arith.truncf %505 : vector<16x32xf32> to vector<16x32xbf16>
    %508 = arith.truncf %506 : vector<32x32xf32> to vector<32x32xbf16>
    %cst_151 = arith.constant dense<0.000000e+00> : vector<16x32xf32>
    %509 = tpu.matmul %507, %508, %cst_151 {dimension_numbers = #tpu.dot_dimension_numbers<[1], [0], [0], [1], [0, 0, 1, 1], [], []>} : vector<16x32xbf16>, vector<32x32xbf16>, vector<16x32xf32> -> vector<16x32xf32>
    %c472 = arith.constant 472 : index
    %c0_152 = arith.constant 0 : index
    %510 = vector.load %arg9[%c472, %c0_152] : memref<720x128xf32, #tpu.memory_space<vmem>>, vector<1x32xf32>
    %511 = vector.broadcast %510 : vector<1x32xf32> to vector<16x32xf32>
    %512 = arith.addf %509, %511 : vector<16x32xf32>
    %c480 = arith.constant 480 : index
    %c0_153 = arith.constant 0 : index
    %513 = vector.load %arg9[%c480, %c0_153] : memref<720x128xf32, #tpu.memory_space<vmem>>, vector<32x64xf32>
    %514 = arith.truncf %16 : vector<16x32xf32> to vector<16x32xbf16>
    %515 = arith.truncf %513 : vector<32x64xf32> to vector<32x64xbf16>
    %cst_154 = arith.constant dense<0.000000e+00> : vector<16x64xf32>
    %516 = tpu.matmul %514, %515, %cst_154 {dimension_numbers = #tpu.dot_dimension_numbers<[1], [0], [0], [1], [0, 0, 1, 1], [], []>} : vector<16x32xbf16>, vector<32x64xbf16>, vector<16x64xf32> -> vector<16x64xf32>
    %c512 = arith.constant 512 : index
    %c0_155 = arith.constant 0 : index
    %517 = vector.load %arg9[%c512, %c0_155] : memref<720x128xf32, #tpu.memory_space<vmem>>, vector<1x64xf32>
    %518 = vector.broadcast %517 : vector<1x64xf32> to vector<16x64xf32>
    %519 = arith.addf %516, %518 : vector<16x64xf32>
    %520 = vector.extract_strided_slice %519 {offsets = [0, 0], sizes = [16, 32], strides = [1, 1]} : vector<16x64xf32> to vector<16x32xf32>
    %521 = vector.extract_strided_slice %519 {offsets = [0, 32], sizes = [16, 32], strides = [1, 1]} : vector<16x64xf32> to vector<16x32xf32>
    %c520 = arith.constant 520 : index
    %c0_156 = arith.constant 0 : index
    %522 = vector.load %arg9[%c520, %c0_156] : memref<720x128xf32, #tpu.memory_space<vmem>>, vector<32x32xf32>
    %c552 = arith.constant 552 : index
    %c0_157 = arith.constant 0 : index
    %523 = vector.load %arg9[%c552, %c0_157] : memref<720x128xf32, #tpu.memory_space<vmem>>, vector<1x32xf32>
    %524 = vector.shape_cast %512 : vector<16x32xf32> to vector<2x8x32xf32>
    %525 = vector.shape_cast %520 : vector<16x32xf32> to vector<2x8x32xf32>
    %526 = vector.shape_cast %521 : vector<16x32xf32> to vector<2x8x32xf32>
    %cst_158 = arith.constant 0.000000e+00 : f32
    %527 = vector.broadcast %cst_158 : f32 to vector<16x32xf32>
    %528 = vector.extract_strided_slice %524 {offsets = [0, 0, 0], sizes = [2, 8, 8], strides = [1, 1, 1]} : vector<2x8x32xf32> to vector<2x8x8xf32>
    %529 = vector.extract_strided_slice %525 {offsets = [0, 0, 0], sizes = [2, 8, 8], strides = [1, 1, 1]} : vector<2x8x32xf32> to vector<2x8x8xf32>
    "tpu.trace_start"() <{level = 10 : i32, message = "bqd,bkd->bqk"}> : () -> ()
    %cst_159 = arith.constant dense<0.000000e+00> : vector<2x8x8xf32>
    %530 = tpu.matmul %528, %529, %cst_159 {dimension_numbers = #tpu.dot_dimension_numbers<[2], [2], [1], [1], [0, 0, 0, 1, 1, 1], [0], [0]>} : vector<2x8x8xf32>, vector<2x8x8xf32>, vector<2x8x8xf32> -> vector<2x8x8xf32>
    "tpu.trace_stop"() : () -> ()
    %cst_160 = arith.constant 0.353553385 : f32
    %531 = vector.broadcast %cst_160 : f32 to vector<2x8x8xf32>
    %532 = arith.mulf %530, %531 : vector<2x8x8xf32>
    %cst_161 = arith.constant dense<0xFF800000> : vector<2x8xf32>
    %533 = vector.multi_reduction <maximumf>, %532, %cst_161 [2] : vector<2x8x8xf32> to vector<2x8xf32>
    %534 = vector.shape_cast %533 : vector<2x8xf32> to vector<2x8x1xf32>
    %535 = vector.broadcast %534 : vector<2x8x1xf32> to vector<2x8x8xf32>
    %536 = arith.subf %532, %535 : vector<2x8x8xf32>
    %537 = math.exp %536 : vector<2x8x8xf32>
    %cst_162 = arith.constant dense<0.000000e+00> : vector<2x8xf32>
    %538 = vector.multi_reduction <add>, %537, %cst_162 [2] : vector<2x8x8xf32> to vector<2x8xf32>
    %539 = vector.shape_cast %538 : vector<2x8xf32> to vector<2x8x1xf32>
    %540 = tpu.reciprocal %539 {approx = true} : vector<2x8x1xf32> -> vector<2x8x1xf32>
    %541 = vector.broadcast %540 : vector<2x8x1xf32> to vector<2x8x8xf32>
    %542 = arith.mulf %537, %541 : vector<2x8x8xf32>
    %543 = vector.extract_strided_slice %526 {offsets = [0, 0, 0], sizes = [2, 8, 8], strides = [1, 1, 1]} : vector<2x8x32xf32> to vector<2x8x8xf32>
    "tpu.trace_start"() <{level = 10 : i32, message = "bqk,bkd->bqd"}> : () -> ()
    %cst_163 = arith.constant dense<0.000000e+00> : vector<2x8x8xf32>
    %544 = tpu.matmul %542, %543, %cst_163 {dimension_numbers = #tpu.dot_dimension_numbers<[2], [1], [1], [2], [0, 0, 0, 1, 1, 2], [0], [0]>} : vector<2x8x8xf32>, vector<2x8x8xf32>, vector<2x8x8xf32> -> vector<2x8x8xf32>
    "tpu.trace_stop"() : () -> ()
    %545 = vector.shape_cast %544 : vector<2x8x8xf32> to vector<16x8xf32>
    %546 = vector.extract_strided_slice %522 {offsets = [0, 0], sizes = [8, 32], strides = [1, 1]} : vector<32x32xf32> to vector<8x32xf32>
    %547 = arith.truncf %545 : vector<16x8xf32> to vector<16x8xbf16>
    %548 = arith.truncf %546 : vector<8x32xf32> to vector<8x32xbf16>
    %cst_164 = arith.constant dense<0.000000e+00> : vector<16x32xf32>
    %549 = tpu.matmul %547, %548, %cst_164 {dimension_numbers = #tpu.dot_dimension_numbers<[1], [0], [0], [1], [0, 0, 1, 1], [], []>} : vector<16x8xbf16>, vector<8x32xbf16>, vector<16x32xf32> -> vector<16x32xf32>
    %550 = arith.addf %527, %549 : vector<16x32xf32>
    %551 = vector.extract_strided_slice %524 {offsets = [0, 0, 8], sizes = [2, 8, 8], strides = [1, 1, 1]} : vector<2x8x32xf32> to vector<2x8x8xf32>
    %552 = vector.extract_strided_slice %525 {offsets = [0, 0, 8], sizes = [2, 8, 8], strides = [1, 1, 1]} : vector<2x8x32xf32> to vector<2x8x8xf32>
    "tpu.trace_start"() <{level = 10 : i32, message = "bqd,bkd->bqk"}> : () -> ()
    %cst_165 = arith.constant dense<0.000000e+00> : vector<2x8x8xf32>
    %553 = tpu.matmul %551, %552, %cst_165 {dimension_numbers = #tpu.dot_dimension_numbers<[2], [2], [1], [1], [0, 0, 0, 1, 1, 1], [0], [0]>} : vector<2x8x8xf32>, vector<2x8x8xf32>, vector<2x8x8xf32> -> vector<2x8x8xf32>
    "tpu.trace_stop"() : () -> ()
    %cst_166 = arith.constant 0.353553385 : f32
    %554 = vector.broadcast %cst_166 : f32 to vector<2x8x8xf32>
    %555 = arith.mulf %553, %554 : vector<2x8x8xf32>
    %cst_167 = arith.constant dense<0xFF800000> : vector<2x8xf32>
    %556 = vector.multi_reduction <maximumf>, %555, %cst_167 [2] : vector<2x8x8xf32> to vector<2x8xf32>
    %557 = vector.shape_cast %556 : vector<2x8xf32> to vector<2x8x1xf32>
    %558 = vector.broadcast %557 : vector<2x8x1xf32> to vector<2x8x8xf32>
    %559 = arith.subf %555, %558 : vector<2x8x8xf32>
    %560 = math.exp %559 : vector<2x8x8xf32>
    %cst_168 = arith.constant dense<0.000000e+00> : vector<2x8xf32>
    %561 = vector.multi_reduction <add>, %560, %cst_168 [2] : vector<2x8x8xf32> to vector<2x8xf32>
    %562 = vector.shape_cast %561 : vector<2x8xf32> to vector<2x8x1xf32>
    %563 = tpu.reciprocal %562 {approx = true} : vector<2x8x1xf32> -> vector<2x8x1xf32>
    %564 = vector.broadcast %563 : vector<2x8x1xf32> to vector<2x8x8xf32>
    %565 = arith.mulf %560, %564 : vector<2x8x8xf32>
    %566 = vector.extract_strided_slice %526 {offsets = [0, 0, 8], sizes = [2, 8, 8], strides = [1, 1, 1]} : vector<2x8x32xf32> to vector<2x8x8xf32>
    "tpu.trace_start"() <{level = 10 : i32, message = "bqk,bkd->bqd"}> : () -> ()
    %cst_169 = arith.constant dense<0.000000e+00> : vector<2x8x8xf32>
    %567 = tpu.matmul %565, %566, %cst_169 {dimension_numbers = #tpu.dot_dimension_numbers<[2], [1], [1], [2], [0, 0, 0, 1, 1, 2], [0], [0]>} : vector<2x8x8xf32>, vector<2x8x8xf32>, vector<2x8x8xf32> -> vector<2x8x8xf32>
    "tpu.trace_stop"() : () -> ()
    %568 = vector.shape_cast %567 : vector<2x8x8xf32> to vector<16x8xf32>
    %569 = vector.extract_strided_slice %522 {offsets = [8, 0], sizes = [8, 32], strides = [1, 1]} : vector<32x32xf32> to vector<8x32xf32>
    %570 = arith.truncf %568 : vector<16x8xf32> to vector<16x8xbf16>
    %571 = arith.truncf %569 : vector<8x32xf32> to vector<8x32xbf16>
    %cst_170 = arith.constant dense<0.000000e+00> : vector<16x32xf32>
    %572 = tpu.matmul %570, %571, %cst_170 {dimension_numbers = #tpu.dot_dimension_numbers<[1], [0], [0], [1], [0, 0, 1, 1], [], []>} : vector<16x8xbf16>, vector<8x32xbf16>, vector<16x32xf32> -> vector<16x32xf32>
    %573 = arith.addf %550, %572 : vector<16x32xf32>
    %574 = vector.extract_strided_slice %524 {offsets = [0, 0, 16], sizes = [2, 8, 8], strides = [1, 1, 1]} : vector<2x8x32xf32> to vector<2x8x8xf32>
    %575 = vector.extract_strided_slice %525 {offsets = [0, 0, 16], sizes = [2, 8, 8], strides = [1, 1, 1]} : vector<2x8x32xf32> to vector<2x8x8xf32>
    "tpu.trace_start"() <{level = 10 : i32, message = "bqd,bkd->bqk"}> : () -> ()
    %cst_171 = arith.constant dense<0.000000e+00> : vector<2x8x8xf32>
    %576 = tpu.matmul %574, %575, %cst_171 {dimension_numbers = #tpu.dot_dimension_numbers<[2], [2], [1], [1], [0, 0, 0, 1, 1, 1], [0], [0]>} : vector<2x8x8xf32>, vector<2x8x8xf32>, vector<2x8x8xf32> -> vector<2x8x8xf32>
    "tpu.trace_stop"() : () -> ()
    %cst_172 = arith.constant 0.353553385 : f32
    %577 = vector.broadcast %cst_172 : f32 to vector<2x8x8xf32>
    %578 = arith.mulf %576, %577 : vector<2x8x8xf32>
    %cst_173 = arith.constant dense<0xFF800000> : vector<2x8xf32>
    %579 = vector.multi_reduction <maximumf>, %578, %cst_173 [2] : vector<2x8x8xf32> to vector<2x8xf32>
    %580 = vector.shape_cast %579 : vector<2x8xf32> to vector<2x8x1xf32>
    %581 = vector.broadcast %580 : vector<2x8x1xf32> to vector<2x8x8xf32>
    %582 = arith.subf %578, %581 : vector<2x8x8xf32>
    %583 = math.exp %582 : vector<2x8x8xf32>
    %cst_174 = arith.constant dense<0.000000e+00> : vector<2x8xf32>
    %584 = vector.multi_reduction <add>, %583, %cst_174 [2] : vector<2x8x8xf32> to vector<2x8xf32>
    %585 = vector.shape_cast %584 : vector<2x8xf32> to vector<2x8x1xf32>
    %586 = tpu.reciprocal %585 {approx = true} : vector<2x8x1xf32> -> vector<2x8x1xf32>
    %587 = vector.broadcast %586 : vector<2x8x1xf32> to vector<2x8x8xf32>
    %588 = arith.mulf %583, %587 : vector<2x8x8xf32>
    %589 = vector.extract_strided_slice %526 {offsets = [0, 0, 16], sizes = [2, 8, 8], strides = [1, 1, 1]} : vector<2x8x32xf32> to vector<2x8x8xf32>
    "tpu.trace_start"() <{level = 10 : i32, message = "bqk,bkd->bqd"}> : () -> ()
    %cst_175 = arith.constant dense<0.000000e+00> : vector<2x8x8xf32>
    %590 = tpu.matmul %588, %589, %cst_175 {dimension_numbers = #tpu.dot_dimension_numbers<[2], [1], [1], [2], [0, 0, 0, 1, 1, 2], [0], [0]>} : vector<2x8x8xf32>, vector<2x8x8xf32>, vector<2x8x8xf32> -> vector<2x8x8xf32>
    "tpu.trace_stop"() : () -> ()
    %591 = vector.shape_cast %590 : vector<2x8x8xf32> to vector<16x8xf32>
    %592 = vector.extract_strided_slice %522 {offsets = [16, 0], sizes = [8, 32], strides = [1, 1]} : vector<32x32xf32> to vector<8x32xf32>
    %593 = arith.truncf %591 : vector<16x8xf32> to vector<16x8xbf16>
    %594 = arith.truncf %592 : vector<8x32xf32> to vector<8x32xbf16>
    %cst_176 = arith.constant dense<0.000000e+00> : vector<16x32xf32>
    %595 = tpu.matmul %593, %594, %cst_176 {dimension_numbers = #tpu.dot_dimension_numbers<[1], [0], [0], [1], [0, 0, 1, 1], [], []>} : vector<16x8xbf16>, vector<8x32xbf16>, vector<16x32xf32> -> vector<16x32xf32>
    %596 = arith.addf %573, %595 : vector<16x32xf32>
    %597 = vector.extract_strided_slice %524 {offsets = [0, 0, 24], sizes = [2, 8, 8], strides = [1, 1, 1]} : vector<2x8x32xf32> to vector<2x8x8xf32>
    %598 = vector.extract_strided_slice %525 {offsets = [0, 0, 24], sizes = [2, 8, 8], strides = [1, 1, 1]} : vector<2x8x32xf32> to vector<2x8x8xf32>
    "tpu.trace_start"() <{level = 10 : i32, message = "bqd,bkd->bqk"}> : () -> ()
    %cst_177 = arith.constant dense<0.000000e+00> : vector<2x8x8xf32>
    %599 = tpu.matmul %597, %598, %cst_177 {dimension_numbers = #tpu.dot_dimension_numbers<[2], [2], [1], [1], [0, 0, 0, 1, 1, 1], [0], [0]>} : vector<2x8x8xf32>, vector<2x8x8xf32>, vector<2x8x8xf32> -> vector<2x8x8xf32>
    "tpu.trace_stop"() : () -> ()
    %cst_178 = arith.constant 0.353553385 : f32
    %600 = vector.broadcast %cst_178 : f32 to vector<2x8x8xf32>
    %601 = arith.mulf %599, %600 : vector<2x8x8xf32>
    %cst_179 = arith.constant dense<0xFF800000> : vector<2x8xf32>
    %602 = vector.multi_reduction <maximumf>, %601, %cst_179 [2] : vector<2x8x8xf32> to vector<2x8xf32>
    %603 = vector.shape_cast %602 : vector<2x8xf32> to vector<2x8x1xf32>
    %604 = vector.broadcast %603 : vector<2x8x1xf32> to vector<2x8x8xf32>
    %605 = arith.subf %601, %604 : vector<2x8x8xf32>
    %606 = math.exp %605 : vector<2x8x8xf32>
    %cst_180 = arith.constant dense<0.000000e+00> : vector<2x8xf32>
    %607 = vector.multi_reduction <add>, %606, %cst_180 [2] : vector<2x8x8xf32> to vector<2x8xf32>
    %608 = vector.shape_cast %607 : vector<2x8xf32> to vector<2x8x1xf32>
    %609 = tpu.reciprocal %608 {approx = true} : vector<2x8x1xf32> -> vector<2x8x1xf32>
    %610 = vector.broadcast %609 : vector<2x8x1xf32> to vector<2x8x8xf32>
    %611 = arith.mulf %606, %610 : vector<2x8x8xf32>
    %612 = vector.extract_strided_slice %526 {offsets = [0, 0, 24], sizes = [2, 8, 8], strides = [1, 1, 1]} : vector<2x8x32xf32> to vector<2x8x8xf32>
    "tpu.trace_start"() <{level = 10 : i32, message = "bqk,bkd->bqd"}> : () -> ()
    %cst_181 = arith.constant dense<0.000000e+00> : vector<2x8x8xf32>
    %613 = tpu.matmul %611, %612, %cst_181 {dimension_numbers = #tpu.dot_dimension_numbers<[2], [1], [1], [2], [0, 0, 0, 1, 1, 2], [0], [0]>} : vector<2x8x8xf32>, vector<2x8x8xf32>, vector<2x8x8xf32> -> vector<2x8x8xf32>
    "tpu.trace_stop"() : () -> ()
    %614 = vector.shape_cast %613 : vector<2x8x8xf32> to vector<16x8xf32>
    %615 = vector.extract_strided_slice %522 {offsets = [24, 0], sizes = [8, 32], strides = [1, 1]} : vector<32x32xf32> to vector<8x32xf32>
    %616 = arith.truncf %614 : vector<16x8xf32> to vector<16x8xbf16>
    %617 = arith.truncf %615 : vector<8x32xf32> to vector<8x32xbf16>
    %cst_182 = arith.constant dense<0.000000e+00> : vector<16x32xf32>
    %618 = tpu.matmul %616, %617, %cst_182 {dimension_numbers = #tpu.dot_dimension_numbers<[1], [0], [0], [1], [0, 0, 1, 1], [], []>} : vector<16x8xbf16>, vector<8x32xbf16>, vector<16x32xf32> -> vector<16x32xf32>
    %619 = arith.addf %596, %618 : vector<16x32xf32>
    %620 = vector.broadcast %523 : vector<1x32xf32> to vector<16x32xf32>
    %621 = arith.addf %619, %620 : vector<16x32xf32>
    %622 = arith.addf %505, %621 : vector<16x32xf32>
    %c688 = arith.constant 688 : index
    %c0_183 = arith.constant 0 : index
    %623 = vector.load %arg9[%c688, %c0_183] : memref<720x128xf32, #tpu.memory_space<vmem>>, vector<1x32xf32>
    %c696 = arith.constant 696 : index
    %c0_184 = arith.constant 0 : index
    %624 = vector.load %arg9[%c696, %c0_184] : memref<720x128xf32, #tpu.memory_space<vmem>>, vector<1x32xf32>
    %cst_185 = arith.constant dense<0.000000e+00> : vector<16xf32>
    %625 = vector.multi_reduction <add>, %622, %cst_185 [1] : vector<16x32xf32> to vector<16xf32>
    %626 = vector.shape_cast %625 : vector<16xf32> to vector<16x1xf32>
    %cst_186 = arith.constant 3.200000e+01 : f32
    %627 = vector.broadcast %cst_186 : f32 to vector<16x1xf32>
    %628 = arith.divf %626, %627 : vector<16x1xf32>
    %629 = vector.broadcast %628 : vector<16x1xf32> to vector<16x32xf32>
    %630 = arith.subf %622, %629 : vector<16x32xf32>
    %631 = arith.mulf %630, %630 : vector<16x32xf32>
    %cst_187 = arith.constant dense<0.000000e+00> : vector<16xf32>
    %632 = vector.multi_reduction <add>, %631, %cst_187 [1] : vector<16x32xf32> to vector<16xf32>
    %633 = vector.shape_cast %632 : vector<16xf32> to vector<16x1xf32>
    %cst_188 = arith.constant 3.200000e+01 : f32
    %634 = vector.broadcast %cst_188 : f32 to vector<16x1xf32>
    %635 = arith.divf %633, %634 : vector<16x1xf32>
    %636 = vector.broadcast %628 : vector<16x1xf32> to vector<16x32xf32>
    %637 = arith.subf %622, %636 : vector<16x32xf32>
    %cst_189 = arith.constant 9.99999974E-6 : f32
    %638 = vector.broadcast %cst_189 : f32 to vector<16x1xf32>
    %639 = arith.addf %635, %638 : vector<16x1xf32>
    %640 = math.rsqrt %639 : vector<16x1xf32>
    %641 = vector.broadcast %640 : vector<16x1xf32> to vector<16x32xf32>
    %642 = arith.mulf %637, %641 : vector<16x32xf32>
    %643 = vector.broadcast %623 : vector<1x32xf32> to vector<16x32xf32>
    %644 = arith.mulf %642, %643 : vector<16x32xf32>
    %645 = vector.broadcast %624 : vector<1x32xf32> to vector<16x32xf32>
    %646 = arith.addf %644, %645 : vector<16x32xf32>
    %c560 = arith.constant 560 : index
    %c0_190 = arith.constant 0 : index
    %647 = vector.load %arg9[%c560, %c0_190] : memref<720x128xf32, #tpu.memory_space<vmem>>, vector<32x64xf32>
    %648 = arith.truncf %646 : vector<16x32xf32> to vector<16x32xbf16>
    %649 = arith.truncf %647 : vector<32x64xf32> to vector<32x64xbf16>
    %cst_191 = arith.constant dense<0.000000e+00> : vector<16x64xf32>
    %650 = tpu.matmul %648, %649, %cst_191 {dimension_numbers = #tpu.dot_dimension_numbers<[1], [0], [0], [1], [0, 0, 1, 1], [], []>} : vector<16x32xbf16>, vector<32x64xbf16>, vector<16x64xf32> -> vector<16x64xf32>
    %c592 = arith.constant 592 : index
    %c0_192 = arith.constant 0 : index
    %651 = vector.load %arg9[%c592, %c0_192] : memref<720x128xf32, #tpu.memory_space<vmem>>, vector<1x64xf32>
    %652 = vector.broadcast %651 : vector<1x64xf32> to vector<16x64xf32>
    %653 = arith.addf %650, %652 : vector<16x64xf32>
    %cst_193 = arith.constant 0.000000e+00 : f32
    %654 = vector.broadcast %cst_193 : f32 to vector<16x64xf32>
    %655 = arith.maximumf %653, %654 : vector<16x64xf32>
    %c600 = arith.constant 600 : index
    %c0_194 = arith.constant 0 : index
    %656 = vector.load %arg9[%c600, %c0_194] : memref<720x128xf32, #tpu.memory_space<vmem>>, vector<64x32xf32>
    %657 = arith.truncf %655 : vector<16x64xf32> to vector<16x64xbf16>
    %658 = arith.truncf %656 : vector<64x32xf32> to vector<64x32xbf16>
    %cst_195 = arith.constant dense<0.000000e+00> : vector<16x32xf32>
    %659 = tpu.matmul %657, %658, %cst_195 {dimension_numbers = #tpu.dot_dimension_numbers<[1], [0], [0], [1], [0, 0, 1, 1], [], []>} : vector<16x64xbf16>, vector<64x32xbf16>, vector<16x32xf32> -> vector<16x32xf32>
    %c664 = arith.constant 664 : index
    %c0_196 = arith.constant 0 : index
    %660 = vector.load %arg9[%c664, %c0_196] : memref<720x128xf32, #tpu.memory_space<vmem>>, vector<1x32xf32>
    %661 = vector.broadcast %660 : vector<1x32xf32> to vector<16x32xf32>
    %662 = arith.addf %659, %661 : vector<16x32xf32>
    %663 = arith.addf %646, %662 : vector<16x32xf32>
    %c704 = arith.constant 704 : index
    %c0_197 = arith.constant 0 : index
    %664 = vector.load %arg9[%c704, %c0_197] : memref<720x128xf32, #tpu.memory_space<vmem>>, vector<1x32xf32>
    %c712 = arith.constant 712 : index
    %c0_198 = arith.constant 0 : index
    %665 = vector.load %arg9[%c712, %c0_198] : memref<720x128xf32, #tpu.memory_space<vmem>>, vector<1x32xf32>
    %cst_199 = arith.constant dense<0.000000e+00> : vector<16xf32>
    %666 = vector.multi_reduction <add>, %663, %cst_199 [1] : vector<16x32xf32> to vector<16xf32>
    %667 = vector.shape_cast %666 : vector<16xf32> to vector<16x1xf32>
    %cst_200 = arith.constant 3.200000e+01 : f32
    %668 = vector.broadcast %cst_200 : f32 to vector<16x1xf32>
    %669 = arith.divf %667, %668 : vector<16x1xf32>
    %670 = vector.broadcast %669 : vector<16x1xf32> to vector<16x32xf32>
    %671 = arith.subf %663, %670 : vector<16x32xf32>
    %672 = arith.mulf %671, %671 : vector<16x32xf32>
    %cst_201 = arith.constant dense<0.000000e+00> : vector<16xf32>
    %673 = vector.multi_reduction <add>, %672, %cst_201 [1] : vector<16x32xf32> to vector<16xf32>
    %674 = vector.shape_cast %673 : vector<16xf32> to vector<16x1xf32>
    %cst_202 = arith.constant 3.200000e+01 : f32
    %675 = vector.broadcast %cst_202 : f32 to vector<16x1xf32>
    %676 = arith.divf %674, %675 : vector<16x1xf32>
    %677 = vector.broadcast %669 : vector<16x1xf32> to vector<16x32xf32>
    %678 = arith.subf %663, %677 : vector<16x32xf32>
    %cst_203 = arith.constant 9.99999974E-6 : f32
    %679 = vector.broadcast %cst_203 : f32 to vector<16x1xf32>
    %680 = arith.addf %676, %679 : vector<16x1xf32>
    %681 = math.rsqrt %680 : vector<16x1xf32>
    %682 = vector.broadcast %681 : vector<16x1xf32> to vector<16x32xf32>
    %683 = arith.mulf %678, %682 : vector<16x32xf32>
    %684 = vector.broadcast %664 : vector<1x32xf32> to vector<16x32xf32>
    %685 = arith.mulf %683, %684 : vector<16x32xf32>
    %686 = vector.broadcast %665 : vector<1x32xf32> to vector<16x32xf32>
    %687 = arith.addf %685, %686 : vector<16x32xf32>
    %c0_204 = arith.constant 0 : index
    %c0_205 = arith.constant 0 : index
    %688 = vector.load %arg10[%c0_204, %c0_205] : memref<32x128xf32, #tpu.memory_space<vmem>>, vector<32x128xf32>
    %689 = arith.truncf %687 : vector<16x32xf32> to vector<16x32xbf16>
    %690 = arith.truncf %688 : vector<32x128xf32> to vector<32x128xbf16>
    %cst_206 = arith.constant dense<0.000000e+00> : vector<16x128xf32>
    %691 = tpu.matmul %689, %690, %cst_206 {dimension_numbers = #tpu.dot_dimension_numbers<[1], [0], [0], [1], [0, 0, 1, 1], [], []>} : vector<16x32xbf16>, vector<32x128xbf16>, vector<16x128xf32> -> vector<16x128xf32>
    %c0_207 = arith.constant 0 : index
    %c0_208 = arith.constant 0 : index
    %692 = vector.load %arg11[%c0_207, %c0_208] : memref<1x128xf32, #tpu.memory_space<vmem>>, vector<1x128xf32>
    %693 = vector.broadcast %692 : vector<1x128xf32> to vector<16x128xf32>
    %694 = arith.addf %691, %693 : vector<16x128xf32>
    %c0_209 = arith.constant 0 : index
    %c0_210 = arith.constant 0 : index
    %695 = vector.load %arg12[%c0_209, %c0_210] : memref<16x128xf32, #tpu.memory_space<vmem>>, vector<16x128xf32>
    tpu.vector_store %arg12[%c0_209, %c0_210], %694 {strides = array<i32>} : memref<16x128xf32, #tpu.memory_space<vmem>>, vector<16x128xf32>,
    return
  }
}

</mosaic_0001>

<bundles_post_ra>
// kernel: mae_act_forward.1
= control target key start
LH: loop header
LB: loop body
LE: loop exit
PB: predicated region body
PF: predicated region fallthrough
CT: control target
= control target key end

     0   :  { %17 = vsyncpa [#allocation3], 0  ;;  %s3937_s24 = smov [#allocation2]   ;;  %s3938_s26 = smov 128   ;;  %s4915_s0 = inlined_call_operand.vmem [shape: f32[16,16], index: 0, kind: input, shape index: {}]   ;;  %s4916_s1 = inlined_call_operand.vmem [shape: s32[16,1], index: 1, kind: input, shape index: {}]   ;;  %s4917_s2 = inlined_call_operand.vmem [shape: f32[16,32], index: 2, kind: input, shape index: {}]   ;;  %s4918_s3 = inlined_call_operand.vmem [shape: f32[8,8], index: 3, kind: input, shape index: {}]   ;;  %s4919_s4 = inlined_call_operand.vmem [shape: f32[16,527], index: 4, kind: input, shape index: {}]   ;;  %s4920_s5 = inlined_call_operand.vmem [shape: f32[1,527], index: 5, kind: input, shape index: {}]   ;;  %s4921_s6 = inlined_call_operand.vmem [shape: f32[527,32], index: 6, kind: input, shape index: {}]   ;;  %s4922_s7 = inlined_call_operand.vmem [shape: f32[1,32], index: 7, kind: input, shape index: {}]   ;;  %s4923_s8 = inlined_call_operand.vmem [shape: f32[50,32], index: 8, kind: input, shape index: {}]   ;;  %s4924_s9 = inlined_call_operand.hbm [shape: f32[720,128], index: 9, kind: input, shape index: {}]   ;;  %s4925_s10 = inlined_call_operand.vmem [shape: f32[32,128], index: 10, kind: input, shape index: {}]   ;;  %s4926_s11 = inlined_call_operand.vmem [shape: f32[1,128], index: 11, kind: input, shape index: {}]   ;;  %s4927_s12 = inlined_call_operand.vmem [shape: f32[16,128], index: 12, kind: output, shape index: {}]  }
   0x1   :  { %s40_s23 = sshll.u32 %s4924_s9, 4  ;;  %s42_s25 = sshll.u32 %s3937_s24, 4  ;;  %s41_s23 = int_to_ptr.hbm [resolvable:$true] %s40_s23  ;;  %s43_s25 = int_to_ptr.vmem [resolvable:$true] %s42_s25 }
   0x2   :  { %s3939_s27 = smov 8  }
   0x3   :  { %48 = dma.hbm_to_vmem [thread:$0]  %s41_s23, 11520, %s43_s25, [#allocation3], %s3938_s26, %s3938_s26, %s3939_s27  }
   0x4   :  { %3935 = dma.done.wait [#allocation3], 11520  }
   0x5   :  { %3936 = vsyncadd [#allocation3], 4294955776  ;;  %v3940_v0 = vmov 0   ;;  %v60_v1 = vld [vmem:[%s4919_s4] sm:$0xff]  ;;  %v65_v2 = vld [vmem:[%s4919_s4 + $0x28] sm:$0xff]  ;;  %vm88_vm0 = vcmask 130048  }
   0x6   :  { %3727 = vset.pattern.permute.xlu0 %v3940_v0  ;;  %v61_v3 = vld [vmem:[%s4919_s4 + $0x8] sm:$0xff]  ;;  %v71_v4 = vpack.c.bf16 %v65_v2, %v60_v1  ;;  %v66_v5 = vld [vmem:[%s4919_s4 + $0x30] sm:$0xff]  ;;  %v67_v7 = vld [vmem:[%s4919_s4 + $0x38] sm:$0xff]  ;;  %vm383_vm1 = vcmask 1041408   ;;  %vm274_vm2 = vcmask 1046528   ;;  %vm275_vm3 = vcmask 1047552  }
   0x7   :  { %v62_v6 = vld [vmem:[%s4919_s4 + $0x10] sm:$0xff]  ;;  %v72_v8 = vpack.c.bf16 %v66_v5, %v61_v3  ;;  %v58_v10 = vld [vmem:[%s4915_s0] sm:$0xff]  ;;  %v59_v11 = vld [vmem:[%s4915_s0 + $0x8] sm:$0xff]  ;;  %vm270_vm5 = vcmask 121856   ;;  %vm376_vm6 = vcmask 408576   ;;  %vm426_vm8 = vcmask 261120  }
   0x8   :  { %v73_v9 = vpack.c.bf16 %v67_v7, %v62_v6  ;;  %v63_v12 = vld [vmem:[%s4919_s4 + $0x18] sm:$0xff]  ;;  %99 = vmatpush.bf16.msra.mxu0 %v71_v4  ;;  %v4050_v13 = vpack.c.bf16 %v59_v11, %v58_v10  ;;  %v68_v14 = vld [vmem:[%s4919_s4 + $0x40] sm:$0xff]  ;;  %v69_v16 = vld [vmem:[%s4919_s4 + $0x48] sm:$0xff]  ;;  %s3944_s14 = smov 96   ;;  %s3945_s15 = smov 88   ;;  %vm452_vm9 = vcmask 64512  }
   0x9   :  { %v64_v15 = vld [vmem:[%s4919_s4 + $0x20] sm:$0xff]  ;;  %113 = vmatpush.bf16.msra.mxu1 %v72_v8  ;;  %v74_v17 = vpack.c.bf16 %v68_v14, %v63_v12  ;;  %v176_v20 = vld [vmem:[%s4921_s6 + $0x70] sm:$0xff]  ;;  %v177_v21 = vld [vmem:[%s4921_s6 + $0x78] sm:$0xff]  ;;  %s3946_s18 = smov 64   ;;  %s3947_s19 = smov 112   ;;  %vm723_vm10 = vcmask 1043456  }
   0xa   :  { %127 = vmatpush.bf16.msra.mxu2 %v73_v9  ;;  %v75_v18 = vpack.c.bf16 %v69_v16, %v64_v15  ;;  %v353_v19 = vld [vmem:[%s4916_s1] sm:$0xff]  ;;  %v192_v22 = vld [vmem:[%s4921_s6 + $0xf0] sm:$0xff]  ;;  %v193_v23 = vld [vmem:[%s4921_s6 + $0xf8] sm:$0xff]  ;;  %v240_v24 = vpack.c.bf16 %v177_v21, %v176_v20  ;;  %s3948_s20 = smov 80   ;;  %s3949_s4 = smov 56  }
   0xb   :  { %358 = vperm.xlu0 %3727, %v353_v19   ;;  %3575 = vmatmul.msk.bf16.vlgmr.msra.gmra.mxu0 %vm88_vm0, %v4050_v13  ;;  %v248_v25 = vpack.c.bf16 %v193_v23, %v192_v22  ;;  %v174_v26 = vld [vmem:[%s4921_s6 + $0x60] sm:$0xff]  ;;  %v175_v27 = vld [vmem:[%s4921_s6 + $0x68] sm:$0xff]  ;;  %v208_v30 = vld [vmem:[%s4921_s6 + $0x170] sm:$0xff]  ;;  %s3950_s21 = smov 72   ;;  %s3951_s22 = smov 104  }
   0xc   :  { %141 = vmatpush.bf16.msra.mxu3 %v74_v17  ;;  %v190_v28 = vld [vmem:[%s4921_s6 + $0xe0] sm:$0xff]  ;;  %3576 = vmatmul.msk.bf16.vlgmr.msra.gmra.mxu1 %vm88_vm0, %v4050_v13  ;;  %v191_v29 = vld [vmem:[%s4921_s6 + $0xe8] sm:$0xff]  ;;  %v209_v31 = vld [vmem:[%s4921_s6 + $0x178] sm:$0xff]  ;;  %v239_v32 = vpack.c.bf16 %v175_v27, %v174_v26  ;;  %s3952_s23 = smov 48   ;;  %s3953_s24 = smov 40  }
   0xd   :  { %3577 = vmatmul.msk.bf16.vlgmr.msra.gmra.mxu2 %vm88_vm0, %v4050_v13  ;;  %155 = vmatpush.bf16.msrb.mxu0 %v75_v18  ;;  %v256_v33 = vpack.c.bf16 %v209_v31, %v208_v30  ;;  %v172_v34 = vld [vmem:[%s4921_s6 + $0x50] sm:$0xff]  ;;  %v247_v35 = vpack.c.bf16 %v191_v29, %v190_v28  ;;  %v173_v36 = vld [vmem:[%s4921_s6 + $0x58] sm:$0xff]  ;;  %v206_v37 = vld [vmem:[%s4921_s6 + $0x160] sm:$0xff] }
   0xe   :  { %281 = vmatpush.bf16.msrb.mxu1 %v240_v24  ;;  %295 = vmatpush.bf16.msrb.mxu2 %v248_v25  ;;  %v207_v38 = vld [vmem:[%s4921_s6 + $0x168] sm:$0xff]  ;;  %v188_v40 = vld [vmem:[%s4921_s6 + $0xd0] sm:$0xff]  ;;  %v189_v41 = vld [vmem:[%s4921_s6 + $0xd8] sm:$0xff]  ;;  %v238_v45 = vpack.c.bf16 %v173_v36, %v172_v34 }
   0xf   :  { %3578 = vmatmul.msk.bf16.vlgmr.msra.gmra.mxu3 %vm88_vm0, %v4050_v13  ;;  %v354_v39 = vld [vmem:[%s4916_s1 + $0x8] sm:$0xff]  ;;  %v255_v42 = vpack.c.bf16 %v207_v38, %v206_v37  ;;  %v204_v43 = vld [vmem:[%s4921_s6 + $0x150] sm:$0xff]  ;;  %v205_v44 = vld [vmem:[%s4921_s6 + $0x158] sm:$0xff]  ;;  %v246_v48 = vpack.c.bf16 %v189_v41, %v188_v40 }
  0x10   :  { %309 = vmatpush.bf16.msrb.mxu3 %v256_v33  ;;  %v224_v46 = vld [vmem:[%s4921_s6 + $0x1f0] sm:$0xff]  ;;  %v225_v47 = vld [vmem:[%s4921_s6 + $0x1f8] sm:$0xff]  ;;  %v170_v49 = vld [vmem:[%s4921_s6 + $0x40] sm:$0xff]  ;;  %v254_v54 = vpack.c.bf16 %v205_v44, %v204_v43 }
  0x11   :  { %v171_v50 = vld [vmem:[%s4921_s6 + $0x48] sm:$0xff]  ;;  %v186_v51 = vld [vmem:[%s4921_s6 + $0xc0] sm:$0xff]  ;;  %v264_v52 = vpack.c.bf16 %v225_v47, %v224_v46  ;;  %v168_v55 = vld [vmem:[%s4921_s6 + $0x30] sm:$0xff] }
  0x12   :  { %282 = vmatpush.bf16.msrb.mxu1 %v239_v32  ;;  %296 = vmatpush.bf16.msrb.mxu2 %v247_v35  ;;  %v187_v53 = vld [vmem:[%s4921_s6 + $0xc8] sm:$0xff]  ;;  %v169_v56 = vld [vmem:[%s4921_s6 + $0x38] sm:$0xff]  ;;  %v237_v57 = vpack.c.bf16 %v171_v50, %v170_v49  ;;  %v184_v58 = vld [vmem:[%s4921_s6 + $0xb0] sm:$0xff] }
  0x13   :  { %361 = vperm.xlu0 %3727, %v354_v39   ;;  %323 = vmatpush.bf16.msra.mxu0 %v264_v52  ;;  %v185_v59 = vld [vmem:[%s4921_s6 + $0xb8] sm:$0xff]  ;;  %v245_v60 = vpack.c.bf16 %v187_v53, %v186_v51  ;;  %v236_v61 = vpack.c.bf16 %v169_v56, %v168_v55  ;;  %v202_v63 = vld [vmem:[%s4921_s6 + $0x140] sm:$0xff]  ;;  %v203_v0 = vld [vmem:[%s4921_s6 + $0x148] sm:$0xff] }
  0x14   :  { %310 = vmatpush.bf16.msrb.mxu3 %v255_v42  ;;  %v244_v62 = vpack.c.bf16 %v185_v59, %v184_v58  ;;  %v222_v1 = vld [vmem:[%s4921_s6 + $0x1e0] sm:$0xff]  ;;  %v253_v2 = vpack.c.bf16 %v203_v0, %v202_v63  ;;  %v223_v3 = vld [vmem:[%s4921_s6 + $0x1e8] sm:$0xff]  ;;  %v200_v11 = vld [vmem:[%s4921_s6 + $0x130] sm:$0xff]  ;;  %v3941_v59 = vmov 65535  }
  0x15   :  { %v263_v4 = vpack.c.bf16 %v223_v3, %v222_v1  ;;  %v166_v5 = vld [vmem:[%s4921_s6 + $0x20] sm:$0xff]  ;;  %v167_v6 = vld [vmem:[%s4921_s6 + $0x28] sm:$0xff]  ;;  %v201_v12 = vld [vmem:[%s4921_s6 + $0x138] sm:$0xff] }
  0x16   :  { %283 = vmatpush.bf16.msrb.mxu1 %v238_v45  ;;  %297 = vmatpush.bf16.msrb.mxu2 %v246_v48  ;;  %v182_v7 = vld [vmem:[%s4921_s6 + $0xa0] sm:$0xff]  ;;  %v235_v8 = vpack.c.bf16 %v167_v6, %v166_v5  ;;  %v183_v9 = vld [vmem:[%s4921_s6 + $0xa8] sm:$0xff]  ;;  %v252_v14 = vpack.c.bf16 %v201_v12, %v200_v11  ;;  %v221_v15 = vld [vmem:[%s4921_s6 + $0x1d8] sm:$0xff] }
  0x17   :  { %324 = vmatpush.bf16.msra.mxu0 %v263_v4  ;;  %v243_v10 = vpack.c.bf16 %v183_v9, %v182_v7  ;;  %v164_v17 = vld [vmem:[%s4921_s6 + $0x10] sm:$0xff]  ;;  %v165_v18 = vld [vmem:[%s4921_s6 + $0x18] sm:$0xff]  ;;  %v198_v23 = vld [vmem:[%s4921_s6 + $0x120] sm:$0xff] }
  0x18   :  { %311 = vmatpush.bf16.msrb.mxu3 %v254_v54  ;;  %v180_v19 = vld [vmem:[%s4921_s6 + $0x90] sm:$0xff]  ;;  %v234_v20 = vpack.c.bf16 %v165_v18, %v164_v17  ;;  %v181_v21 = vld [vmem:[%s4921_s6 + $0x98] sm:$0xff]  ;;  %v199_v24 = vld [vmem:[%s4921_s6 + $0x128] sm:$0xff] }
  0x19   :  { %v242_v22 = vpack.c.bf16 %v181_v21, %v180_v19  ;;  %v218_v25 = vld [vmem:[%s4921_s6 + $0x1c0] sm:$0xff]  ;;  %v251_v26 = vpack.c.bf16 %v199_v24, %v198_v23  ;;  %v219_v27 = vld [vmem:[%s4921_s6 + $0x1c8] sm:$0xff]  ;;  %v196_v35 = vld [vmem:[%s4921_s6 + $0x110] sm:$0xff] }
  0x1a   :  { %284 = vmatpush.bf16.msrb.mxu1 %v237_v57  ;;  %298 = vmatpush.bf16.msrb.mxu2 %v245_v60  ;;  %v261_v28 = vpack.c.bf16 %v219_v27, %v218_v25  ;;  %v162_v29 = vld [vmem:[%s4921_s6] sm:$0xff]  ;;  %v163_v30 = vld [vmem:[%s4921_s6 + $0x8] sm:$0xff]  ;;  %v197_v36 = vld [vmem:[%s4921_s6 + $0x118] sm:$0xff]  ;;  %v276_v60 = vsel %vm274_vm2, 4294967295, %v3941_v59  ;;  %v355_v25 = vlaneseq }
  0x1b   :  { %3579 = vmatmul.msk.bf16.vlgmr.msrb.gmra.mxu0 %vm88_vm0, %v4050_v13  ;;  %v220_v13 = vld [vmem:[%s4921_s6 + $0x1d0] sm:$0xff]  ;;  %v178_v31 = vld [vmem:[%s4921_s6 + $0x80] sm:$0xff]  ;;  %v233_v32 = vpack.c.bf16 %v163_v30, %v162_v29  ;;  %v179_v33 = vld [vmem:[%s4921_s6 + $0x88] sm:$0xff]  ;;  %v250_v38 = vpack.c.bf16 %v197_v36, %v196_v35  ;;  %v277_v63 = vsel %vm275_vm3, %v276_v60, 0  ;;  %v3942_v36 = vmov 0.0  }
  0x1c   :  { %312 = vmatpush.bf16.msrb.mxu3 %v253_v2  ;;  %v262_v16 = vpack.c.bf16 %v221_v15, %v220_v13  ;;  %v241_v34 = vpack.c.bf16 %v179_v33, %v178_v31  ;;  %v216_v37 = vld [vmem:[%s4921_s6 + $0x1b0] sm:$0xff]  ;;  %v217_v39 = vld [vmem:[%s4921_s6 + $0x1b8] sm:$0xff]  ;;  %v194_v41 = vld [vmem:[%s4921_s6 + $0x100] sm:$0xff]  ;;  %v356_v30 = vand.u32 127, %v355_v25 }
  0x1d   :  { %v260_v40 = vpack.c.bf16 %v217_v39, %v216_v37  ;;  %v195_v42 = vld [vmem:[%s4921_s6 + $0x108] sm:$0xff]  ;;  %v214_v43 = vld [vmem:[%s4921_s6 + $0x1a0] sm:$0xff]  ;;  %v375_v47 = vld [vmem:[%s4923_s8 + $0x30] sm:$0x3] }
  0x1e   :  { %285 = vmatpush.bf16.msrb.mxu1 %v236_v61  ;;  %299 = vmatpush.bf16.msrb.mxu2 %v244_v62  ;;  %v249_v44 = vpack.c.bf16 %v195_v42, %v194_v41  ;;  %v215_v45 = vld [vmem:[%s4921_s6 + $0x1a8] sm:$0xff]  ;;  %v212_v49 = vld [vmem:[%s4921_s6 + $0x190] sm:$0xff]  ;;  %v213_v50 = vld [vmem:[%s4921_s6 + $0x198] sm:$0xff] }
  0x1f   :  { %325 = vmatpush.bf16.msra.mxu0 %v262_v16  ;;  %v259_v46 = vpack.c.bf16 %v215_v45, %v214_v43  ;;  %v374_v48 = vld [vmem:[%s4923_s8 + $0x28] sm:$0xff]  ;;  %v258_v51 = vpack.c.bf16 %v213_v50, %v212_v49  ;;  %v373_v52 = vld [vmem:[%s4923_s8 + $0x20] sm:$0xff]  ;;  %v372_v53 = vld [vmem:[%s4923_s8 + $0x18] sm:$0xff] }
  0x20   :  { %313 = vmatpush.bf16.msrb.mxu3 %v252_v14  ;;  %v210_v54 = vld [vmem:[%s4921_s6 + $0x180] sm:$0xff]  ;;  %v211_v55 = vld [vmem:[%s4921_s6 + $0x188] sm:$0xff]  ;;  %v371_v61 = vld [vmem:[%s4923_s8 + $0x10] sm:$0xff] }
  0x21   :  { %v226_v56 = vld [vmem:[%s4921_s6 + $0x200] sm:$0xff]  ;;  %v257_v57 = vpack.c.bf16 %v211_v55, %v210_v54  ;;  %v227_v58 = vld [vmem:[%s4921_s6 + $0x208] sm:$0x7f]  ;;  %v419_v41 = vld [vmem:[#allocation2 + $0x10] sm:$0xff] }
  0x22   :  { %286 = vmatpush.bf16.msrb.mxu1 %v235_v8  ;;  %300 = vmatpush.bf16.msrb.mxu2 %v243_v10  ;;  %v265_v62 = vpack.c.bf16 %v227_v58, %v226_v56  ;;  %v370_v1 = vld [vmem:[%s4923_s8 + $0x8] sm:$0xff]  ;;  %v369_v2 = vld [vmem:[%s4923_s8] sm:$0xff]  ;;  %v420_v42 = vld [vmem:[#allocation2 + $0x18] sm:$0xff] }
  0x23   :  { %326 = vmatpush.bf16.msra.mxu0 %v261_v28  ;;  %v76_v5 = vld [vmem:[%s4920_s5] sm:$0x1f]  ;;  %v423_v43 = vpack.c.bf16 %v420_v42, %v419_v41 }
  0x24   :  { %314 = vmatpush.bf16.msrb.mxu3 %v251_v26  ;;  %v279_v0 = vand.u32 %v277_v63, %v265_v62  ;;  %v78_v6 = vperm.slane %v76_v5, 0  ;;  %v79_v7 = vperm.slane %v76_v5, 1  ;;  %v80_v15 = vperm.slane %v76_v5, 2  ;;  %v417_v45 = vld [vmem:[#allocation2] sm:$0xff] }
  0x25   :  { %v81_v19 = vperm.slane %v76_v5, 3  ;;  %v82_v29 = vperm.slane %v76_v5, 4  ;;  %v412_v55 = vld [vmem:[%s4917_s2] sm:$0xff] }
  0x26   :  { %287 = vmatpush.bf16.msrb.mxu1 %v234_v20  ;;  %301 = vmatpush.bf16.msrb.mxu2 %v242_v22 }
  0x27   :  { %327 = vmatpush.bf16.msra.mxu0 %v260_v40 }
  0x28   :  { %315 = vmatpush.bf16.msrb.mxu3 %v250_v38 }
  0x2a   :  { %288 = vmatpush.bf16.msrb.mxu1 %v233_v32  ;;  %302 = vmatpush.bf16.msrb.mxu2 %v241_v34 }
  0x2b   :  { %328 = vmatpush.bf16.msra.mxu0 %v259_v46  ;;  %v418_v46 = vld [vmem:[#allocation2 + $0x8] sm:$0xff] }
  0x2c   :  { %316 = vmatpush.bf16.msrb.mxu3 %v249_v44  ;;  %v4302_v44 = vld [vmem:[%s4922_s7] ss:$0 sm:$0xff] }
  0x2e   :  { %3583 = vmatpush.msk.msra.mxu2 %vm383_vm1, %v375_v47  ;;  %344 = vmatpush.bf16.msra.mxu1 %v279_v0  ;;  %v422_v47 = vpack.c.bf16 %v418_v46, %v417_v45  ;;  %v3729_v0 = vld [vmem:[#allocation2 + $0x20] ss:$0 sm:$0xff] }
  0x2f   :  { %329 = vmatpush.bf16.msra.mxu0 %v258_v51 }
  0x30   :  { %397 = vmatpush.msra.mxu2 %v374_v48  ;;  %436 = vmatpush.bf16.msra.mxu3 %v423_v43 }
  0x32   :  { %398 = vmatpush.msra.mxu2 %v373_v52 }
  0x33   :  { %330 = vmatpush.bf16.msra.mxu0 %v257_v57  ;;  %v413_v57 = vld [vmem:[%s4917_s2 + $0x8] sm:$0xff]  ;;  %s3943_s2 = smov 120  }
  0x34   :  { %399 = vmatpush.msra.mxu2 %v372_v53  ;;  %437 = vmatpush.bf16.msra.mxu3 %v422_v47 }
  0x36   :  { %400 = vmatpush.msra.mxu2 %v371_v61 }
  0x38   :  { %401 = vmatpush.msra.mxu2 %v370_v1 }
  0x3a   :  { %402 = vmatpush.msra.mxu2 %v369_v2 }
  0x7d   :  { %v359_v32 = vpop.permute.xlu0 %358 }
  0x7e   :  { %vm363_vm4 = vcmp.eq.s32.totalorder %v356_v30, %v359_v32 }
  0x7f   :  { %v3581_v37 = vsel %vm363_vm4, 1.0, %v3942_v36 }
  0x85   :  { %v362_v39 = vpop.permute.xlu0 %361 }
  0x86   :  { %vm364_vm7 = vcmp.eq.s32.totalorder %v356_v30, %v362_v39 }
  0x87   :  { %v3582_v40 = vsel %vm364_vm7, 1.0, %v3942_v36 }
  0x88   :  { %v101_v3 = vpop.f32.mrf.mxu0 }
  0x89   :  { %v115_v4 = vpop.f32.mrf.mxu1  ;;  %v102_v8 = vadd.f32 %v101_v3, %v78_v6 }
  0x8a   :  { %v116_v14 = vadd.f32 %v115_v4, %v79_v7 }
  0x90   :  { %v129_v9 = vpop.f32.mrf.mxu2  ;;  %v103_v10 = vpop.f32.mrf.mxu0 }
  0x91   :  { %v104_v11 = vadd.f32 %v103_v10, %v78_v6  ;;  %v117_v12 = vpop.f32.mrf.mxu1  ;;  %v130_v20 = vadd.f32 %v129_v9, %v80_v15 }
  0x92   :  { %v143_v13 = vpop.f32.mrf.mxu3  ;;  %v118_v16 = vadd.f32 %v117_v12, %v79_v7 }
  0x93   :  { %v228_v17 = vpack.c.bf16 %v104_v11, %v102_v8  ;;  %v144_v23 = vadd.f32 %v143_v13, %v81_v19  ;;  %v4353_v13 = vld [vmem:[%s4918_s3] sm:$0xff] }
  0x94   :  { %v229_v18 = vpack.c.bf16 %v118_v16, %v116_v14 }
  0x95   :  { %289 = vmatmul.bf16.vlgmr.msrb.gmra.mxu1 %v228_v17 }
  0x96   :  { %303 = vmatmul.bf16.vlgmr.msrb.gmra.mxu2 %v229_v18 }
  0x98   :  { %v131_v21 = vpop.f32.mrf.mxu2  ;;  %v157_v24 = vpop.f32.mrf.mxu0 }
  0x99   :  { %v132_v22 = vadd.f32 %v131_v21, %v80_v15  ;;  %v158_v33 = vadd.f32 %v157_v24, %v82_v29 }
  0x9a   :  { %v145_v26 = vpop.f32.mrf.mxu3 }
  0x9b   :  { %v230_v27 = vpack.c.bf16 %v132_v22, %v130_v20  ;;  %v146_v28 = vadd.f32 %v145_v26, %v81_v19 }
  0x9d   :  { %317 = vmatmul.bf16.vlgmr.msrb.gmra.mxu3 %v230_v27  ;;  %v231_v31 = vpack.c.bf16 %v146_v28, %v144_v23 }
  0x9f   :  { %331 = vmatmul.bf16.vlgmr.msra.gmra.mxu0 %v231_v31 }
  0xa0   :  { %v159_v34 = vpop.f32.mrf.mxu0 }
  0xa1   :  { %v160_v35 = vadd.f32 %v159_v34, %v82_v29 }
  0xa3   :  { %v232_v38 = vpack.c.bf16 %v160_v35, %v158_v33 }
  0xa5   :  { %3580 = vmatmul.msk.bf16.vlgmr.msra.gmra.mxu1 %vm270_vm5, %v232_v38 }
  0xa6   :  { %3584 = vmatmul.msk.f32.vlgmr.msra.gmra.mxu2 %vm376_vm6, %v3581_v37 }
  0xae   :  { %3585 = vmatmul.msk.f32.gmra.mxu2 %vm376_vm6, %v3582_v40 }
 0x112   :  { %v290_v48 = vpop.f32.mrf.mxu1 }
 0x113   :  { %v291_v49 = vadd.f32 %v4302_v44, %v290_v48 }
 0x119   :  { %v304_v50 = vpop.f32.mrf.mxu2 }
 0x11a   :  { %v4305_v51 = vadd.f32 %v304_v50, %v291_v49  ;;  %v4377_v35 = vpop.f32.mrf.mxu1 }
 0x11c   :  { %v4346_v9 = vpop.f32.mrf.mxu0 }
 0x120   :  { %v4322_v62 = vpop.f32.mrf.mxu3 }
 0x121   :  { %v4307_v52 = vpop.f32.mrf.mxu2 }
 0x122   :  { %v4379_v36 = vpop.f32.mrf.mxu1 }
 0x124   :  { %v4348_v10 = vpop.f32.mrf.mxu0 }
 0x128   :  { %v4324_v63 = vpop.f32.mrf.mxu3 }
 0x129   :  { %v404_v53 = vpop.f32.mrf.mxu2 }
 0x12a   :  { %v410_v54 = vmul.f32 5.656854, %v404_v53  ;;  %v4381_v37 = vpop.f32.mrf.mxu1 }
 0x12c   :  { %v4315_v59 = vadd.f32 %v412_v55, %v410_v54 }
 0x131   :  { %v407_v56 = vpop.f32.mrf.mxu2 }
 0x132   :  { %v411_v58 = vmul.f32 5.656854, %v407_v56 }
 0x134   :  { %v4317_v60 = vadd.f32 %v413_v57, %v411_v58 }
 0x136   :  { %v421_v61 = vpack.c.bf16 %v4317_v60, %v4315_v59 }
 0x138   :  { %3586 = vmatmul.msk.bf16.vlgmr.msra.gmra.mxu3 %vm426_vm8, %v421_v61 }
 0x1bb   :  { %v439_v1 = vpop.f32.mrf.mxu3 }
 0x1bc   :  { %v4326_v2 = vadd.f32 %v3729_v0, %v439_v1 }
 0x1be   :  { %584 = vrot.lane.b32.xlu2 %v4326_v2, %s3943_s2  ;;  %450 = vrot.lane.b32.xlu1 %v4326_v2, %s3944_s14 }
 0x1c3   :  { %v441_v3 = vpop.f32.mrf.mxu3 }
 0x1c4   :  { %v4332_v4 = vadd.f32 %v3729_v0, %v441_v3 }
 0x1c6   :  { %478 = vrot.lane.b32.xlu2 %v4332_v4, %s3944_s14  ;;  %586 = vrot.lane.b32.xlu1 %v4326_v2, %s3945_s15 }
 0x218   :  { %v585_v5 = vpop.permute.xlu2 %584 }
 0x220   :  { %v479_v6 = vpop.permute.xlu2 %478 }
 0x221   :  { %3589 = vmatpush.xpose.msk.msrb.mxu1 %vm452_vm9, %v479_v6 }
 0x224   :  { %3590 = vmatmul.msk.f32.vlgmr.msrb.gmra.mxu1 %vm452_vm9, %v4332_v4 }
 0x230   :  { %v451_v7 = vpop.permute.xlu1 %450 }
 0x231   :  { %3587 = vmatpush.xpose.msk.msrb.mxu0 %vm452_vm9, %v451_v7 }
 0x234   :  { %3588 = vmatmul.msk.f32.vlgmr.msrb.gmra.mxu0 %vm452_vm9, %v4326_v2 }
 0x238   :  { %v587_v8 = vpop.permute.xlu1 %586 }
 0x239   :  { %3593 = vmatpush.xpose.msk.msra.mxu0 %vm452_vm9, %v587_v8 }
 0x23c   :  { %3594 = vmatmul.msk.f32.vlgmr.msra.gmra.mxu0 %vm452_vm9, %v585_v5  ;;  %v444_v5 = vld [vmem:[#allocation2 + $0x28] sm:$0xff] }
 0x23d   :  { %v583_v6 = vpack.c.bf16 %v444_v5, %v444_v5 }
 0x23f   :  { %v745_v7 = vsel %vm723_vm10, %v583_v6, 0 }
 0x2a1   :  { %v501_v38 = vpop.f32.mrf.mxu1 }
 0x2a2   :  { %v505_v39 = vmul.f32 0.35355338, %v501_v38 }
 0x2a4   :  { %v507_v40 = vadd.f32 %v505_v39, %v4353_v13 }
 0x2a6   :  { %v511_v41 = vsel %vm452_vm9, %v507_v40, -inf }
 0x2b1   :  { %v474_v11 = vpop.f32.mrf.mxu0 }
 0x2b2   :  { %v504_v12 = vmul.f32 0.35355338, %v474_v11 }
 0x2b4   :  { %v506_v14 = vadd.f32 %v504_v12, %v4353_v13 }
 0x2b6   :  { %v508_v15 = vsel %vm452_vm9, %v506_v14, -inf }
 0x2b7   :  { %509 = vmax.xlane.f32.xlu0 %v508_v15 }
 0x2b9   :  { %v609_v16 = vpop.f32.mrf.mxu0 }
 0x2ba   :  { %v640_v17 = vmul.f32 0.35355338, %v609_v16 }
 0x2bc   :  { %v642_v18 = vadd.f32 %v640_v17, %v4353_v13 }
 0x2be   :  { %v644_v19 = vsel %vm452_vm9, %v642_v18, -inf }
 0x2bf   :  { %645 = vmax.xlane.f32.xlu1 %v644_v19 }
 0x2cb   :  { %530 = vrot.lane.b32.xlu0 %v4326_v2, %s3946_s18 }
 0x2d3   :  { %612 = vrot.lane.b32.xlu0 %v4332_v4, %s3943_s2 }
 0x2d8   :  { %614 = vrot.lane.b32.xlu1 %v4332_v4, %s3945_s15 }
 0x2db   :  { %761 = vrot.lane.b32.xlu0 %v4326_v2, %s3947_s19 }
 0x2e0   :  { %763 = vrot.lane.b32.xlu1 %v4326_v2, %s3948_s20 }
 0x2e3   :  { %556 = vrot.lane.b32.xlu0 %v4332_v4, %s3946_s18 }
 0x32a   :  { %v510_v20 = vpop.xlane.xlu0 %509 }
 0x32b   :  { %v514_v21 = vsub.f32 %v506_v14, %v510_v20 }
 0x32d   :  { %v516_v22 = vmul.f32 1.442695, %v514_v21 }
 0x32f   :  { %3756 = vpow2.f32 %v516_v22 }
 0x332   :  { %v646_v23 = vpop.xlane.xlu1 %645 }
 0x333   :  { %v650_v24 = vsub.f32 %v642_v18, %v646_v23 }
 0x335   :  { %v3757_v25 = vpop.eup %3756  ;;  %v652_v26 = vmul.f32 1.442695, %v650_v24 }
 0x336   :  { %v520_v27 = vsel %vm452_vm9, %v3757_v25, 0.0 }
 0x337   :  { %3758 = vpow2.f32 %v652_v26  ;;  %521 = vadd.xlane.f32.xlu2 %v520_v27 }
 0x33d   :  { %v3759_v28 = vpop.eup %3758  ;;  %v531_v29 = vpop.permute.xlu0 %530 }
 0x33e   :  { %551 = vmatpush.msrb.mxu2 %v531_v29  ;;  %v656_v30 = vsel %vm452_vm9, %v3759_v28, 0.0 }
 0x33f   :  { %657 = vadd.xlane.f32.xlu2 %v656_v30 }
 0x345   :  { %v613_v31 = vpop.permute.xlu0 %612 }
 0x34a   :  { %v615_v32 = vpop.permute.xlu1 %614 }
 0x34b   :  { %3595 = vmatpush.xpose.msk.msra.mxu1 %vm452_vm9, %v615_v32 }
 0x34d   :  { %v762_v33 = vpop.permute.xlu0 %761 }
 0x34e   :  { %3596 = vmatmul.msk.f32.vlgmr.msra.gmra.mxu1 %vm452_vm9, %v613_v31 }
 0x34f   :  { %754 = vmatpush.bf16.msrb.mxu1 %v745_v7 }
 0x352   :  { %v764_v50 = vpop.permute.xlu1 %763 }
 0x355   :  { %v557_v34 = vpop.permute.xlu0 %556 }
 0x356   :  { %577 = vmatpush.msrb.mxu3 %v557_v34 }
 0x357   :  { %666 = vrot.lane.b32.xlu2 %v4326_v2, %s3949_s4 }
 0x380   :  { %512 = vmax.xlane.f32.xlu2 %v511_v41 }
 0x3aa   :  { %v522_v42 = vpop.xlane.xlu2 %521 }
 0x3ab   :  { %3760 = vrcp.f32 %v522_v42 }
 0x3b1   :  { %v3761_v43 = vpop.eup %3760 }
 0x3b2   :  { %v528_v45 = vmul.f32 %v3761_v43, %v3757_v25  ;;  %v658_v46 = vpop.xlane.xlu2 %657 }
 0x3b3   :  { %3762 = vrcp.f32 %v658_v46 }
 0x3b4   :  { %3591 = vmatmul.msk.f32.vlgmr.msrb.gmra.mxu2 %vm452_vm9, %v528_v45  ;;  %v445_v45 = vld [vmem:[#allocation2 + $0x30] sm:$0xff] }
 0x3b5   :  { %v719_v46 = vpack.c.bf16 %v445_v45, %v445_v45  ;;  %v1169_v45 = vld [vmem:[#allocation2 + $0x88] sm:$0xff] }
 0x3b9   :  { %v3763_v47 = vpop.eup %3762 }
 0x3ba   :  { %v664_v48 = vmul.f32 %v3763_v47, %v3759_v28  ;;  %v667_v49 = vpop.permute.xlu2 %666  ;;  %v725_v47 = vsel %vm723_vm10, %v719_v46, 0  ;;  %v1170_v46 = vld [vmem:[#allocation2 + $0x90] sm:$0xff] }
 0x3bb   :  { %687 = vmatpush.msra.mxu2 %v667_v49  ;;  %734 = vmatpush.bf16.msrb.mxu0 %v725_v47  ;;  %v1167_v47 = vld [vmem:[#allocation2 + $0x78] sm:$0xff] }
 0x3bc   :  { %3597 = vmatmul.msk.f32.vlgmr.msra.gmra.mxu2 %vm452_vm9, %v664_v48 }
 0x3bd   :  { %3601 = vmatpush.xpose.msk.msrb.mxu2 %vm452_vm9, %v764_v50 }
 0x3c4   :  { %3602 = vmatmul.msk.f32.vlgmr.msrb.gmra.mxu2 %vm452_vm9, %v762_v33 }
 0x3cb   :  { %v637_v53 = vpop.f32.mrf.mxu1 }
 0x3cc   :  { %v641_v54 = vmul.f32 0.35355338, %v637_v53 }
 0x3ce   :  { %v643_v55 = vadd.f32 %v641_v54, %v4353_v13 }
 0x3d0   :  { %v647_v56 = vsel %vm452_vm9, %v643_v55, -inf }
 0x3d1   :  { %648 = vmax.xlane.f32.xlu0 %v647_v56 }
 0x3e5   :  { %791 = vrot.lane.b32.xlu0 %v4332_v4, %s3948_s20 }
 0x3ed   :  { %921 = vrot.lane.b32.xlu0 %v4326_v2, %s3950_s21 }
 0x3f3   :  { %v513_v57 = vpop.xlane.xlu2 %512 }
 0x3f4   :  { %v515_v58 = vsub.f32 %v507_v40, %v513_v57 }
 0x3f5   :  { %919 = vrot.lane.b32.xlu0 %v4326_v2, %s3951_s22 }
 0x3f6   :  { %v518_v61 = vmul.f32 1.442695, %v515_v58 }
 0x3f8   :  { %3764 = vpow2.f32 %v518_v61 }
 0x3fe   :  { %v3765_v0 = vpop.eup %3764 }
 0x3ff   :  { %v523_v1 = vsel %vm452_vm9, %v3765_v0, 0.0 }
 0x400   :  { %524 = vadd.xlane.f32.xlu1 %v523_v1 }
 0x437   :  { %v553_v3 = vpop.f32.mrf.mxu2 }
 0x43f   :  { %v4399_v8 = vpop.f32.mrf.mxu2 }
 0x444   :  { %v649_v11 = vpop.xlane.xlu0 %648 }
 0x445   :  { %v651_v12 = vsub.f32 %v643_v55, %v649_v11 }
 0x447   :  { %v654_v14 = vmul.f32 1.442695, %v651_v12  ;;  %v786_v15 = vpop.f32.mrf.mxu2 }
 0x448   :  { %v817_v16 = vmul.f32 0.35355338, %v786_v15 }
 0x449   :  { %3766 = vpow2.f32 %v654_v14 }
 0x44a   :  { %v819_v17 = vadd.f32 %v817_v16, %v4353_v13 }
 0x44c   :  { %v821_v18 = vsel %vm452_vm9, %v819_v17, -inf }
 0x44d   :  { %822 = vmax.xlane.f32.xlu2 %v821_v18 }
 0x44f   :  { %v3767_v19 = vpop.eup %3766 }
 0x450   :  { %v659_v20 = vsel %vm452_vm9, %v3767_v19, 0.0 }
 0x451   :  { %660 = vadd.xlane.f32.xlu1 %v659_v20 }
 0x457   :  { %v792_v21 = vpop.permute.xlu0 %791 }
 0x45f   :  { %v922_v22 = vpop.permute.xlu0 %921 }
 0x460   :  { %3608 = vmatpush.xpose.msk.msra.mxu1 %vm452_vm9, %v922_v22 }
 0x465   :  { %692 = vrot.lane.b32.xlu2 %v4332_v4, %s3949_s4 }
 0x467   :  { %v920_v43 = vpop.permute.xlu0 %919 }
 0x46a   :  { %789 = vrot.lane.b32.xlu1 %v4332_v4, %s3947_s19 }
 0x46d   :  { %843 = vrot.lane.b32.xlu2 %v4326_v2, %s3952_s23 }
 0x473   :  { %v525_v23 = vpop.xlane.xlu1 %524 }
 0x474   :  { %3768 = vrcp.f32 %v525_v23 }
 0x475   :  { %949 = vrot.lane.b32.xlu2 %v4332_v4, %s3950_s21 }
 0x47a   :  { %v3769_v24 = vpop.eup %3768 }
 0x47b   :  { %v529_v25 = vmul.f32 %v3769_v24, %v3765_v0 }
 0x47d   :  { %3592 = vmatmul.msk.f32.vlgmr.msrb.gmra.mxu3 %vm452_vm9, %v529_v25 }
 0x4c0   :  { %v823_v26 = vpop.xlane.xlu2 %822 }
 0x4c1   :  { %v827_v27 = vsub.f32 %v819_v17, %v823_v26 }
 0x4c3   :  { %v829_v28 = vmul.f32 1.442695, %v827_v27 }
 0x4c4   :  { %v661_v29 = vpop.xlane.xlu1 %660 }
 0x4c5   :  { %3770 = vpow2.f32 %v829_v28 }
 0x4c6   :  { %3772 = vrcp.f32 %v661_v29 }
 0x4c8   :  { %v693_v30 = vpop.permute.xlu2 %692 }
 0x4c9   :  { %713 = vmatpush.msra.mxu3 %v693_v30 }
 0x4cb   :  { %3603 = vmatpush.xpose.msk.msrb.mxu3 %vm452_vm9, %v792_v21  ;;  %v3771_v31 = vpop.eup %3770 }
 0x4cc   :  { %v3773_v32 = vpop.eup %3772  ;;  %v833_v33 = vsel %vm452_vm9, %v3771_v31, 0.0 }
 0x4cd   :  { %v665_v34 = vmul.f32 %v3773_v32, %v3767_v19  ;;  %834 = vadd.xlane.f32.xlu1 %v833_v33 }
 0x4cf   :  { %3598 = vmatmul.msk.f32.vlgmr.msra.gmra.mxu3 %vm452_vm9, %v665_v34 }
 0x4d0   :  { %v844_v38 = vpop.permute.xlu2 %843 }
 0x4d1   :  { %864 = vmatpush.msra.mxu2 %v844_v38 }
 0x4d8   :  { %v950_v39 = vpop.permute.xlu2 %949 }
 0x4d9   :  { %3610 = vmatpush.xpose.msk.msrb.mxu2 %vm452_vm9, %v950_v39 }
 0x4dc   :  { %v790_v40 = vpop.permute.xlu1 %789 }
 0x4dd   :  { %3604 = vmatmul.msk.f32.vlgmr.msrb.gmra.mxu3 %vm452_vm9, %v790_v40  ;;  %v446_v40 = vld [vmem:[#allocation2 + $0x38] sm:$0xff] }
 0x4e6   :  { %947 = vrot.lane.b32.xlu1 %v4332_v4, %s3951_s22 }
 0x500   :  { %v579_v41 = vpop.f32.mrf.mxu3 }
 0x501   :  { %v582_v42 = vpack.c.bf16 %v579_v41, %v553_v3  ;;  %v896_v41 = vpack.c.bf16 %v446_v40, %v446_v40 }
 0x503   :  { %3600 = vmatmul.msk.bf16.vlgmr.msrb.gmra.mxu1 %vm452_vm9, %v582_v42  ;;  %v901_v42 = vsel %vm723_vm10, %v896_v41, 0 }
 0x504   :  { %910 = vmatpush.bf16.msra.mxu0 %v901_v42 }
 0x513   :  { %3609 = vmatmul.msk.f32.vlgmr.msra.gmra.mxu1 %vm452_vm9, %v920_v43 }
 0x540   :  { %v835_v48 = vpop.xlane.xlu1 %834 }
 0x541   :  { %3774 = vrcp.f32 %v835_v48  ;;  %v1173_v48 = vpack.c.bf16 %v1170_v46, %v1169_v45 }
 0x547   :  { %v3775_v49 = vpop.eup %3774 }
 0x548   :  { %v841_v50 = vmul.f32 %v3775_v49, %v3771_v31 }
 0x54a   :  { %3605 = vmatmul.msk.f32.vlgmr.msra.gmra.mxu2 %vm452_vm9, %v841_v50 }
 0x552   :  { %v715_v53 = vpop.f32.mrf.mxu3 }
 0x553   :  { %v718_v54 = vpack.c.bf16 %v715_v53, %v4399_v8 }
 0x555   :  { %3599 = vmatmul.msk.bf16.vlgmr.msrb.gmra.mxu0 %vm452_vm9, %v718_v54 }
 0x556   :  { %1185 = vmatpush.bf16.msrb.mxu0 %v1173_v48 }
 0x558   :  { %v948_v55 = vpop.permute.xlu1 %947 }
 0x559   :  { %3611 = vmatmul.msk.f32.vlgmr.msrb.gmra.mxu2 %vm452_vm9, %v948_v55  ;;  %v293_v55 = vadd.f32 %v4302_v44, %v4377_v35 }
 0x560   :  { %v814_v56 = vpop.f32.mrf.mxu3 }
 0x561   :  { %v818_v57 = vmul.f32 0.35355338, %v814_v56  ;;  %v307_v56 = vadd.f32 %v4307_v52, %v293_v55 }
 0x563   :  { %v820_v58 = vadd.f32 %v818_v57, %v4353_v13 }
 0x565   :  { %v824_v61 = vsel %vm452_vm9, %v820_v58, -inf }
 0x566   :  { %825 = vmax.xlane.f32.xlu2 %v824_v61 }
 0x580   :  { %v4430_v0 = vpop.f32.mrf.mxu1 }
 0x588   :  { %v4432_v1 = vpop.f32.mrf.mxu1 }
 0x590   :  { %v944_v3 = vpop.f32.mrf.mxu1 }
 0x591   :  { %v975_v5 = vmul.f32 0.35355338, %v944_v3  ;;  %v319_v3 = vadd.f32 %v4322_v62, %v4305_v51 }
 0x593   :  { %v977_v6 = vadd.f32 %v975_v5, %v4353_v13 }
 0x595   :  { %v979_v7 = vsel %vm452_vm9, %v977_v6, -inf }
 0x596   :  { %980 = vmax.xlane.f32.xlu0 %v979_v7 }
 0x5cd   :  { %v4436_v8 = vpop.f32.mrf.mxu2 }
 0x5d9   :  { %v826_v11 = vpop.xlane.xlu2 %825 }
 0x5da   :  { %v828_v12 = vsub.f32 %v820_v58, %v826_v11  ;;  %v321_v58 = vadd.f32 %v4324_v63, %v307_v56  ;;  %v447_v63 = vld [vmem:[#allocation2 + $0x40] sm:$0xff] }
 0x5dc   :  { %v831_v14 = vmul.f32 1.442695, %v828_v12  ;;  %v972_v15 = vpop.f32.mrf.mxu2  ;;  %v335_v5 = vadd.f32 %v4348_v10, %v321_v58  ;;  %v1142_v58 = vld [vmem:[#allocation2 + $0x58] sm:$0xff] }
 0x5dd   :  { %v976_v16 = vmul.f32 0.35355338, %v972_v15  ;;  %v3730_v15 = vld [vmem:[#allocation2 + $0x98] ss:$0 sm:$0xff] }
 0x5de   :  { %3776 = vpow2.f32 %v831_v14  ;;  %v349_v7 = vadd.f32 %v4381_v37, %v335_v5 }
 0x5df   :  { %v978_v17 = vadd.f32 %v976_v16, %v4353_v13 }
 0x5e0   :  { %v352_v35 = vmax.f32 %v349_v7, 0.0 }
 0x5e1   :  { %v982_v18 = vsel %vm452_vm9, %v978_v17, -inf }
 0x5e2   :  { %983 = vmax.xlane.f32.xlu1 %v982_v18 }
 0x5e4   :  { %v3777_v19 = vpop.eup %3776 }
 0x5e5   :  { %v836_v20 = vsel %vm452_vm9, %v3777_v19, 0.0 }
 0x5e6   :  { %837 = vadd.xlane.f32.xlu2 %v836_v20 }
 0x5fb   :  { %869 = vrot.lane.b32.xlu1 %v4332_v4, %s3952_s23 }
 0x609   :  { %v981_v21 = vpop.xlane.xlu0 %980 }
 0x60a   :  { %v985_v22 = vsub.f32 %v977_v6, %v981_v21  ;;  %v333_v6 = vadd.f32 %v4346_v9, %v319_v3  ;;  %v736_v9 = vpop.f32.mrf.mxu0 }
 0x60b   :  { %v757_v20 = vadd.f32 %v4430_v0, %v736_v9 }
 0x60c   :  { %v987_v23 = vmul.f32 1.442695, %v985_v22  ;;  %v347_v44 = vadd.f32 %v4379_v36, %v333_v6  ;;  %v3731_v22 = vld [vmem:[#allocation2 + $0x48] ss:$0 sm:$0xff] }
 0x60e   :  { %3778 = vpow2.f32 %v987_v23  ;;  %v351_v52 = vmax.f32 %v347_v44, 0.0 }
 0x610   :  { %v4465_v11 = vpack.c.bf16 %v352_v35, %v351_v52 }
 0x612   :  { %v738_v37 = vpop.f32.mrf.mxu0 }
 0x614   :  { %v3779_v24 = vpop.eup %3778 }
 0x615   :  { %v991_v25 = vsel %vm452_vm9, %v3779_v24, 0.0 }
 0x616   :  { %992 = vadd.xlane.f32.xlu0 %v991_v25 }
 0x62a   :  { %1001 = vrot.lane.b32.xlu0 %v4326_v2, %s3953_s24 }
 0x655   :  { %v984_v13 = vpop.xlane.xlu1 %983 }
 0x656   :  { %v986_v26 = vsub.f32 %v978_v17, %v984_v13  ;;  %v759_v13 = vadd.f32 %v4432_v1, %v738_v37 }
 0x658   :  { %v989_v27 = vmul.f32 1.442695, %v986_v26 }
 0x659   :  { %v838_v29 = vpop.xlane.xlu2 %837 }
 0x65a   :  { %3780 = vpow2.f32 %v989_v27 }
 0x65b   :  { %3782 = vrcp.f32 %v838_v29 }
 0x660   :  { %v3781_v28 = vpop.eup %3780 }
 0x661   :  { %v994_v30 = vsel %vm452_vm9, %v3781_v28, 0.0  ;;  %v3783_v31 = vpop.eup %3782 }
 0x662   :  { %995 = vadd.xlane.f32.xlu2 %v994_v30  ;;  %v842_v32 = vmul.f32 %v3783_v31, %v3777_v19 }
 0x66d   :  { %v870_v33 = vpop.permute.xlu1 %869 }
 0x66e   :  { %890 = vmatpush.msra.mxu3 %v870_v33  ;;  %v3954_v33 = vmov 32.0  }
 0x66f   :  { %3606 = vmatmul.msk.f32.vlgmr.msra.gmra.mxu3 %vm452_vm9, %v842_v32 }
 0x67a   :  { %1027 = vrot.lane.b32.xlu2 %v4332_v4, %s3953_s24  ;;  %v1168_v4 = vld [vmem:[#allocation2 + $0x80] sm:$0xff] }
 0x67b   :  { %v1172_v49 = vpack.c.bf16 %v1168_v4, %v1167_v47 }
 0x67d   :  { %1186 = vmatpush.bf16.msrb.mxu0 %v1172_v49 }
 0x689   :  { %v993_v2 = vpop.xlane.xlu0 %992 }
 0x68a   :  { %3784 = vrcp.f32 %v993_v2 }
 0x690   :  { %v3785_v34 = vpop.eup %3784 }
 0x691   :  { %v999_v38 = vmul.f32 %v3785_v34, %v3779_v24 }
 0x69c   :  { %v1002_v39 = vpop.permute.xlu0 %1001 }
 0x69d   :  { %1022 = vmatpush.msrb.mxu3 %v1002_v39 }
 0x69e   :  { %3612 = vmatmul.msk.f32.vlgmr.msrb.gmra.mxu3 %vm452_vm9, %v999_v38 }
 0x6d5   :  { %v996_v43 = vpop.xlane.xlu2 %995 }
 0x6d6   :  { %3786 = vrcp.f32 %v996_v43 }
 0x6d7   :  { %3788 = vrcp.f32 %v3954_v33 }
 0x6dc   :  { %v3787_v50 = vpop.eup %3786 }
 0x6dd   :  { %v1000_v53 = vmul.f32 %v3787_v50, %v3781_v28  ;;  %v1028_v54 = vpop.permute.xlu2 %1027  ;;  %v3789_v1 = vpop.eup %3788  ;;  %v1143_v50 = vld [vmem:[#allocation2 + $0x60] sm:$0xff] }
 0x6de   :  { %1048 = vmatpush.msrb.mxu1 %v1028_v54  ;;  %v1091_v2 = vmul.f32 32.0, %v3789_v1  ;;  %vm1095_vm11 = vweird.f32 %v3789_v1 }
 0x6df   :  { %3613 = vmatmul.msk.f32.vlgmr.msrb.gmra.mxu1 %vm452_vm9, %v1000_v53  ;;  %v1144_v53 = vld [vmem:[#allocation2 + $0x68] sm:$0xff] }
 0x6e0   :  { %v1147_v54 = vpack.c.bf16 %v1144_v53, %v1143_v50 }
 0x6e2   :  { %1159 = vmatpush.bf16.msra.mxu3 %v1147_v54 }
 0x6f2   :  { %v892_v57 = vpop.f32.mrf.mxu3 }
 0x6f3   :  { %v895_v61 = vpack.c.bf16 %v892_v57, %v4436_v8  ;;  %v1054_v8 = vpack.c.bf16 %v447_v63, %v447_v63  ;;  %v1141_v57 = vld [vmem:[#allocation2 + $0x50] sm:$0xff] }
 0x6f4   :  { %v1146_v3 = vpack.c.bf16 %v1142_v58, %v1141_v57 }
 0x6f5   :  { %3607 = vmatmul.msk.bf16.vlgmr.msra.gmra.mxu0 %vm452_vm9, %v895_v61  ;;  %v1059_v51 = vsel %vm723_vm10, %v1054_v8, 0 }
 0x6f6   :  { %1068 = vmatpush.bf16.msra.mxu2 %v1059_v51  ;;  %1160 = vmatpush.bf16.msra.mxu3 %v1146_v3 }
 0x705   :  { %3616 = vmatmul.msk.bf16.vlgmr.msrb.gmra.mxu0 %vm426_vm8, %v4465_v11 }
 0x721   :  { %v1024_v62 = vpop.f32.mrf.mxu3 }
 0x75c   :  { %v1050_v10 = vpop.f32.mrf.mxu1 }
 0x75d   :  { %v1053_v12 = vpack.c.bf16 %v1050_v10, %v1024_v62 }
 0x75f   :  { %3614 = vmatmul.msk.bf16.vlgmr.msra.gmra.mxu2 %vm452_vm9, %v1053_v12 }
 0x772   :  { %v912_v36 = vpop.f32.mrf.mxu0 }
 0x773   :  { %v917_v21 = vadd.f32 %v912_v36, %v757_v20  ;;  %v3733_v20 = vld [vmem:[#allocation2 + $0x140] ss:$0 sm:$0xff] }
 0x77a   :  { %v914_v14 = vpop.f32.mrf.mxu0 }
 0x77b   :  { %v918_v27 = vadd.f32 %v914_v14, %v759_v13  ;;  %v3732_v14 = vld [vmem:[#allocation2 + $0x138] ss:$0 sm:$0xff] }
 0x782   :  { %v1188_v16 = vpop.f32.mrf.mxu0 }
 0x783   :  { %v4471_v17 = vadd.f32 %v3730_v15, %v1188_v16 }
 0x785   :  { %3617 = vmatpush.xpose.msk.msra.mxu1 %vm452_vm9, %v4471_v17 }
 0x78a   :  { %v1190_v18 = vpop.f32.mrf.mxu0 }
 0x78b   :  { %v4475_v19 = vadd.f32 %v3730_v15, %v1190_v18 }
 0x78d   :  { %3619 = vmatpush.xpose.msk.msrb.mxu1 %vm452_vm9, %v4475_v19 }
 0x7e2   :  { %v1070_v23 = vpop.f32.mrf.mxu2 }
 0x7e3   :  { %v1075_v24 = vadd.f32 %v1070_v23, %v917_v21 }
 0x7e5   :  { %v1078_v25 = vadd.f32 %v3731_v22, %v1075_v24 }
 0x7e7   :  { %v1080_v26 = vadd.f32 %v1078_v25, %v4315_v59  ;;  %v1092_v59 = vsub.f32 1.0, %v1091_v2 }
 0x7e9   :  { %v1084_v28 = vsel %vm426_vm8, %v1080_v26, 0.0  ;;  %v1093_v34 = vmul.f32 %v3789_v1, %v1092_v59 }
 0x7ea   :  { %1085 = vadd.xlane.f32.xlu1 %v1084_v28  ;;  %v1072_v29 = vpop.f32.mrf.mxu2 }
 0x7eb   :  { %v1076_v30 = vadd.f32 %v1072_v29, %v918_v27  ;;  %v1094_v38 = vadd.f32 %v3789_v1, %v1093_v34 }
 0x7ed   :  { %v1079_v31 = vadd.f32 %v3731_v22, %v1076_v30  ;;  %v4487_v39 = vsel %vm1095_vm11, %v3789_v1, %v1094_v38  ;;  %vm1914_vm11 = vcmask 523264  }
 0x7ef   :  { %v1081_v32 = vadd.f32 %v1079_v31, %v4317_v60 }
 0x7f1   :  { %v1087_v0 = vsel %vm426_vm8, %v1081_v32, 0.0 }
 0x7f2   :  { %1088 = vadd.xlane.f32.xlu0 %v1087_v0 }
 0x806   :  { %1330 = vrot.lane.b32.xlu0 %v4471_v17, %s3943_s2 }
 0x85d   :  { %v1086_v40 = vpop.xlane.xlu1 %1085 }
 0x85e   :  { %v1097_v41 = vmul.f32 %v4487_v39, %v1086_v40 }
 0x860   :  { %v1099_v60 = vsub.f32 %v1080_v26, %v1097_v41  ;;  %v3734_v26 = vld [vmem:[#allocation2 + $0x70] ss:$0 sm:$0xff] }
 0x862   :  { %v1101_v42 = vmul.f32 %v1099_v60, %v1099_v60 }
 0x864   :  { %v1103_v43 = vsel %vm426_vm8, %v1101_v42, 0.0 }
 0x865   :  { %1104 = vadd.xlane.f32.xlu2 %v1103_v43  ;;  %v1089_v45 = vpop.xlane.xlu0 %1088 }
 0x866   :  { %v1098_v46 = vmul.f32 %v4487_v39, %v1089_v45 }
 0x868   :  { %v1100_v47 = vsub.f32 %v1081_v32, %v1098_v46 }
 0x86a   :  { %v1102_v48 = vmul.f32 %v1100_v47, %v1100_v47 }
 0x86c   :  { %v1106_v4 = vsel %vm426_vm8, %v1102_v48, 0.0 }
 0x86d   :  { %1107 = vadd.xlane.f32.xlu1 %v1106_v4 }
 0x878   :  { %v1331_v49 = vpop.permute.xlu0 %1330 }
 0x879   :  { %3623 = vmatpush.xpose.msk.msra.mxu0 %vm452_vm9, %v1331_v49 }
 0x8d8   :  { %v1105_v55 = vpop.xlane.xlu2 %1104 }
 0x8d9   :  { %v1109_v56 = vmul.f32 %v1105_v55, %v4487_v39 }
 0x8db   :  { %v1111_v61 = vadd.f32 1e-05, %v1109_v56 }
 0x8dd   :  { %3790 = vrsqrt.f32 %v1111_v61  ;;  %vm1119_vm13 = vweird.f32 %v1111_v61 }
 0x8e0   :  { %v1108_v5 = vpop.xlane.xlu1 %1107 }
 0x8e1   :  { %v1110_v6 = vmul.f32 %v1108_v5, %v4487_v39 }
 0x8e3   :  { %v3791_v7 = vpop.eup %3790  ;;  %v1112_v44 = vadd.f32 1e-05, %v1110_v6 }
 0x8e4   :  { %v1114_v35 = vmul.f32 %v3791_v7, %v1111_v61  ;;  %vm1120_vm12 = vweird.f32 %v3791_v7 }
 0x8e5   :  { %3792 = vrsqrt.f32 %v1112_v44  ;;  %vm1121_vm14 = vmor %vm1119_vm13, %vm1120_vm12  ;;  %vm1129_vm0 = vweird.f32 %v1112_v44 }
 0x8e6   :  { %v1115_v52 = vmul.f32 %v3791_v7, %v1114_v35 }
 0x8e8   :  { %v1116_v63 = vmul.f32 0.5, %v1115_v52 }
 0x8ea   :  { %v1117_v8 = vsub.f32 1.5, %v1116_v63 }
 0x8eb   :  { %v3793_v51 = vpop.eup %3792 }
 0x8ec   :  { %v1118_v62 = vmul.f32 %v3791_v7, %v1117_v8  ;;  %v1124_v10 = vmul.f32 %v3793_v51, %v1112_v44  ;;  %vm1130_vm15 = vweird.f32 %v3793_v51 }
 0x8ed   :  { %vm1131_vm1 = vmor %vm1129_vm0, %vm1130_vm15 }
 0x8ee   :  { %v1125_v12 = vmul.f32 %v3793_v51, %v1124_v10  ;;  %v1122_v9 = vsel %vm1121_vm14, %v3791_v7, %v1118_v62 }
 0x8ef   :  { %v1133_v15 = vmul.f32 %v1122_v9, %v1099_v60 }
 0x8f0   :  { %v1126_v37 = vmul.f32 0.5, %v1125_v12 }
 0x8f1   :  { %v1136_v21 = vmul.f32 %v3732_v14, %v1133_v15 }
 0x8f2   :  { %v1127_v36 = vsub.f32 1.5, %v1126_v37 }
 0x8f3   :  { %v4496_v24 = vadd.f32 %v3733_v20, %v1136_v21 }
 0x8f4   :  { %v1128_v16 = vmul.f32 %v3793_v51, %v1127_v36 }
 0x8f6   :  { %v1132_v18 = vsel %vm1131_vm1, %v3793_v51, %v1128_v16 }
 0x8f7   :  { %v1134_v22 = vmul.f32 %v1132_v18, %v1100_v47  ;;  %v1193_v18 = vld [vmem:[#allocation2 + $0xa0] sm:$0xff] }
 0x8f8   :  { %v1327_v21 = vpack.c.bf16 %v1193_v18, %v1193_v18 }
 0x8f9   :  { %v1137_v23 = vmul.f32 %v3732_v14, %v1134_v22 }
 0x8fb   :  { %v4498_v25 = vadd.f32 %v3733_v20, %v1137_v23  ;;  %v1486_v23 = vsel %vm723_vm10, %v1327_v21, 0 }
 0x8fd   :  { %v1145_v13 = vpack.c.bf16 %v4498_v25, %v4496_v24 }
 0x8ff   :  { %3615 = vmatmul.msk.bf16.vlgmr.msra.gmra.mxu3 %vm426_vm8, %v1145_v13 }
 0x982   :  { %v1162_v27 = vpop.f32.mrf.mxu3 }
 0x983   :  { %v4503_v28 = vadd.f32 %v3734_v26, %v1162_v27 }
 0x985   :  { %1328 = vrot.lane.b32.xlu1 %v4503_v28, %s3943_s2  ;;  %3618 = vmatmul.msk.f32.vlgmr.msra.gmra.mxu1 %vm452_vm9, %v4503_v28 }
 0x98a   :  { %v1164_v29 = vpop.f32.mrf.mxu3 }
 0x98b   :  { %v4509_v30 = vadd.f32 %v3734_v26, %v1164_v29 }
 0x98d   :  { %1274 = vrot.lane.b32.xlu1 %v4471_v17, %s3944_s14  ;;  %3620 = vmatmul.msk.f32.vlgmr.msrb.gmra.mxu1 %vm452_vm9, %v4509_v30 }
 0x995   :  { %1408 = vrot.lane.b32.xlu1 %v4471_v17, %s3945_s15 }
 0x99d   :  { %1356 = vrot.lane.b32.xlu1 %v4509_v30, %s3943_s2 }
 0x9a5   :  { %1504 = vrot.lane.b32.xlu1 %v4471_v17, %s3947_s19 }
 0x9f7   :  { %v1329_v31 = vpop.permute.xlu1 %1328 }
 0x9f8   :  { %3624 = vmatmul.msk.f32.vlgmr.msra.gmra.mxu0 %vm452_vm9, %v1329_v31 }
 0x9ff   :  { %v1275_v32 = vpop.permute.xlu1 %1274 }
 0xa00   :  { %1295 = vmatpush.msrb.mxu2 %v1275_v32 }
 0xa02   :  { %v1221_v0 = vpop.f32.mrf.mxu1 }
 0xa03   :  { %v1250_v33 = vmul.f32 0.35355338, %v1221_v0 }
 0xa05   :  { %v1252_v1 = vsel %vm452_vm9, %v1250_v33, -inf }
 0xa06   :  { %1253 = vmax.xlane.f32.xlu2 %v1252_v1 }
 0xa07   :  { %v1409_v2 = vpop.permute.xlu1 %1408 }
 0xa08   :  { %1429 = vmatpush.msra.mxu2 %v1409_v2 }
 0xa0a   :  { %v1247_v45 = vpop.f32.mrf.mxu1 }
 0xa0b   :  { %v1251_v46 = vmul.f32 0.35355338, %v1247_v45 }
 0xa0d   :  { %v1255_v47 = vsel %vm452_vm9, %v1251_v46, -inf }
 0xa0f   :  { %v1357_v54 = vpop.permute.xlu1 %1356 }
 0xa17   :  { %v1505_v5 = vpop.permute.xlu1 %1504 }
 0xa75   :  { %v1353_v59 = vpop.f32.mrf.mxu0 }
 0xa76   :  { %v1384_v34 = vmul.f32 0.35355338, %v1353_v59 }
 0xa78   :  { %v1386_v38 = vsel %vm452_vm9, %v1384_v34, -inf }
 0xa79   :  { %1387 = vmax.xlane.f32.xlu2 %v1386_v38  ;;  %v1254_v40 = vpop.xlane.xlu2 %1253 }
 0xa7a   :  { %v1258_v41 = vsub.f32 %v1250_v33, %v1254_v40 }
 0xa7c   :  { %v1260_v60 = vmul.f32 1.442695, %v1258_v41 }
 0xa7e   :  { %3794 = vpow2.f32 %v1260_v60 }
 0xa84   :  { %v3795_v42 = vpop.eup %3794 }
 0xa85   :  { %v1264_v43 = vsel %vm452_vm9, %v3795_v42, 0.0 }
 0xa86   :  { %1265 = vadd.xlane.f32.xlu0 %v1264_v43 }
 0xa8e   :  { %1256 = vmax.xlane.f32.xlu0 %v1255_v47  ;;  %v1194_v47 = vld [vmem:[#allocation2 + $0xa8] sm:$0xff] }
 0xa91   :  { %1358 = vrot.lane.b32.xlu2 %v4475_v19, %s3943_s2 }
 0xaec   :  { %v1388_v48 = vpop.xlane.xlu2 %1387 }
 0xaed   :  { %v1392_v4 = vsub.f32 %v1384_v34, %v1388_v48  ;;  %v1461_v48 = vpack.c.bf16 %v1194_v47, %v1194_v47 }
 0xaef   :  { %v1394_v49 = vmul.f32 1.442695, %v1392_v4  ;;  %v1466_v4 = vsel %vm723_vm10, %v1461_v48, 0 }
 0xaf0   :  { %1475 = vmatpush.bf16.msrb.mxu0 %v1466_v4 }
 0xaf1   :  { %3796 = vpow2.f32 %v1394_v49 }
 0xaf4   :  { %v1359_v50 = vpop.permute.xlu2 %1358 }
 0xaf5   :  { %3625 = vmatpush.xpose.msk.msra.mxu1 %vm452_vm9, %v1359_v50 }
 0xaf7   :  { %v3797_v53 = vpop.eup %3796 }
 0xaf8   :  { %3626 = vmatmul.msk.f32.vlgmr.msra.gmra.mxu1 %vm452_vm9, %v1357_v54  ;;  %v1398_v55 = vsel %vm452_vm9, %v3797_v53, 0.0 }
 0xaf9   :  { %v1266_v56 = vpop.xlane.xlu0 %1265  ;;  %1399 = vadd.xlane.f32.xlu2 %v1398_v55  ;;  %1495 = vmatpush.bf16.msrb.mxu1 %v1486_v23 }
 0xafa   :  { %3798 = vrcp.f32 %v1266_v56 }
 0xb00   :  { %v3799_v57 = vpop.eup %3798 }
 0xb01   :  { %v1272_v58 = vmul.f32 %v3799_v57, %v3795_v42  ;;  %v1257_v61 = vpop.xlane.xlu0 %1256 }
 0xb02   :  { %v1259_v3 = vsub.f32 %v1251_v46, %v1257_v61 }
 0xb03   :  { %3621 = vmatmul.msk.f32.vlgmr.msrb.gmra.mxu2 %vm452_vm9, %v1272_v58 }
 0xb04   :  { %v1262_v6 = vmul.f32 1.442695, %v1259_v3  ;;  %3631 = vmatpush.xpose.msk.msrb.mxu2 %vm452_vm9, %v1505_v5 }
 0xb06   :  { %3800 = vpow2.f32 %v1262_v6 }
 0xb0c   :  { %v3801_v7 = vpop.eup %3800 }
 0xb0d   :  { %v1267_v44 = vsel %vm452_vm9, %v3801_v7, 0.0 }
 0xb0e   :  { %1268 = vadd.xlane.f32.xlu1 %v1267_v44 }
 0xb11   :  { %1502 = vrot.lane.b32.xlu2 %v4503_v28, %s3947_s19 }
 0xb19   :  { %1300 = vrot.lane.b32.xlu2 %v4475_v19, %s3944_s14 }
 0xb27   :  { %1532 = vrot.lane.b32.xlu1 %v4475_v19, %s3947_s19 }
 0xb2f   :  { %1582 = vrot.lane.b32.xlu1 %v4471_v17, %s3948_s20 }
 0xb37   :  { %1688 = vrot.lane.b32.xlu1 %v4475_v19, %s3951_s22 }
 0xb3f   :  { %1686 = vrot.lane.b32.xlu1 %v4509_v30, %s3951_s22 }
 0xb6c   :  { %v1400_v35 = vpop.xlane.xlu2 %1399 }
 0xb6d   :  { %3802 = vrcp.f32 %v1400_v35 }
 0xb73   :  { %v3803_v52 = vpop.eup %3802 }
 0xb74   :  { %v1406_v63 = vmul.f32 %v3803_v52, %v3797_v53  ;;  %v1503_v8 = vpop.permute.xlu2 %1502 }
 0xb75   :  { %v1381_v51 = vpop.f32.mrf.mxu1 }
 0xb76   :  { %v1385_v62 = vmul.f32 0.35355338, %v1381_v51  ;;  %3627 = vmatmul.msk.f32.vlgmr.msra.gmra.mxu2 %vm452_vm9, %v1406_v63 }
 0xb78   :  { %v1389_v10 = vsel %vm452_vm9, %v1385_v62, -inf }
 0xb79   :  { %1390 = vmax.xlane.f32.xlu0 %v1389_v10 }
 0xb7c   :  { %v1301_v12 = vpop.permute.xlu2 %1300 }
 0xb7d   :  { %1321 = vmatpush.msrb.mxu3 %v1301_v12 }
 0xb7e   :  { %3632 = vmatmul.msk.f32.vlgmr.msrb.gmra.mxu2 %vm452_vm9, %v1503_v8 }
 0xb81   :  { %v1269_v9 = vpop.xlane.xlu1 %1268 }
 0xb82   :  { %3804 = vrcp.f32 %v1269_v9 }
 0xb86   :  { %v1297_v26 = vpop.f32.mrf.mxu2 }
 0xb88   :  { %v3805_v37 = vpop.eup %3804 }
 0xb89   :  { %v1273_v36 = vmul.f32 %v3805_v37, %v3801_v7 }
 0xb8b   :  { %3622 = vmatmul.msk.f32.vlgmr.msrb.gmra.mxu3 %vm452_vm9, %v1273_v36 }
 0xb99   :  { %v1533_v14 = vpop.permute.xlu1 %1532 }
 0xba1   :  { %v1583_v15 = vpop.permute.xlu1 %1582 }
 0xba2   :  { %1603 = vmatpush.msra.mxu2 %v1583_v15 }
 0xba9   :  { %v1689_v16 = vpop.permute.xlu1 %1688 }
 0xbaa   :  { %3640 = vmatpush.xpose.msk.msrb.mxu2 %vm452_vm9, %v1689_v16 }
 0xbb1   :  { %v1687_v58 = vpop.permute.xlu1 %1686 }
 0xbec   :  { %v1391_v20 = vpop.xlane.xlu0 %1390 }
 0xbed   :  { %v1393_v22 = vsub.f32 %v1385_v62, %v1391_v20 }
 0xbef   :  { %v1396_v13 = vmul.f32 1.442695, %v1393_v22 }
 0xbf1   :  { %3806 = vpow2.f32 %v1396_v13 }
 0xbf7   :  { %v3807_v27 = vpop.eup %3806 }
 0xbf8   :  { %v1401_v29 = vsel %vm452_vm9, %v3807_v27, 0.0 }
 0xbf9   :  { %v1431_v31 = vpop.f32.mrf.mxu2  ;;  %1402 = vadd.xlane.f32.xlu0 %v1401_v29 }
 0xc01   :  { %v1527_v32 = vpop.f32.mrf.mxu2 }
 0xc02   :  { %v1558_v0 = vmul.f32 0.35355338, %v1527_v32 }
 0xc04   :  { %v1560_v33 = vsel %vm452_vm9, %v1558_v0, -inf }
 0xc05   :  { %1561 = vmax.xlane.f32.xlu2 %v1560_v33  ;;  %v1195_v33 = vld [vmem:[#allocation2 + $0xb0] sm:$0xff] }
 0xc0d   :  { %1434 = vrot.lane.b32.xlu0 %v4475_v19, %s3945_s15 }
 0xc0e   :  { %v1323_v1 = vpop.f32.mrf.mxu3 }
 0xc0f   :  { %v1326_v2 = vpack.c.bf16 %v1323_v1, %v1297_v26  ;;  %v1635_v1 = vpack.c.bf16 %v1195_v33, %v1195_v33 }
 0xc11   :  { %3630 = vmatmul.msk.bf16.vlgmr.msrb.gmra.mxu1 %vm452_vm9, %v1326_v2  ;;  %v1640_v2 = vsel %vm723_vm10, %v1635_v1, 0 }
 0xc12   :  { %1649 = vmatpush.bf16.msra.mxu0 %v1640_v2 }
 0xc1d   :  { %1530 = vrot.lane.b32.xlu2 %v4509_v30, %s3947_s19 }
 0xc25   :  { %1660 = vrot.lane.b32.xlu2 %v4471_v17, %s3951_s22 }
 0xc2d   :  { %1658 = vrot.lane.b32.xlu2 %v4503_v28, %s3951_s22 }
 0xc6c   :  { %v1403_v59 = vpop.xlane.xlu0 %1402 }
 0xc6d   :  { %3808 = vrcp.f32 %v1403_v59 }
 0xc73   :  { %v3809_v41 = vpop.eup %3808 }
 0xc74   :  { %v1407_v60 = vmul.f32 %v3809_v41, %v3807_v27 }
 0xc78   :  { %v1562_v34 = vpop.xlane.xlu2 %1561 }
 0xc79   :  { %v1566_v38 = vsub.f32 %v1558_v0, %v1562_v34 }
 0xc7b   :  { %v1568_v40 = vmul.f32 1.442695, %v1566_v38 }
 0xc7d   :  { %3810 = vpow2.f32 %v1568_v40 }
 0xc7f   :  { %v1435_v42 = vpop.permute.xlu0 %1434 }
 0xc80   :  { %v1531_v43 = vpop.permute.xlu2 %1530  ;;  %1455 = vmatpush.msra.mxu3 %v1435_v42 }
 0xc81   :  { %3628 = vmatmul.msk.f32.vlgmr.msra.gmra.mxu3 %vm452_vm9, %v1407_v60  ;;  %v1196_v60 = vld [vmem:[#allocation2 + $0xb8] sm:$0xff] }
 0xc82   :  { %3633 = vmatpush.xpose.msk.msrb.mxu3 %vm452_vm9, %v1533_v14  ;;  %v1791_v42 = vpack.c.bf16 %v1196_v60, %v1196_v60 }
 0xc83   :  { %v3811_v30 = vpop.eup %3810 }
 0xc84   :  { %v1572_v45 = vsel %vm452_vm9, %v3811_v30, 0.0 }
 0xc85   :  { %1573 = vadd.xlane.f32.xlu0 %v1572_v45 }
 0xc88   :  { %v1661_v28 = vpop.permute.xlu2 %1660 }
 0xc89   :  { %3634 = vmatmul.msk.f32.vlgmr.msrb.gmra.mxu3 %vm452_vm9, %v1531_v43  ;;  %3638 = vmatpush.xpose.msk.msra.mxu1 %vm452_vm9, %v1661_v28  ;;  %v1796_v43 = vsel %vm723_vm10, %v1791_v42, 0  ;;  %v3737_v42 = vld [vmem:[#allocation2 + $0x150] ss:$0 sm:$0xff] }
 0xc8e   :  { %v4570_v50 = vpop.f32.mrf.mxu1 }
 0xc90   :  { %v1659_v46 = vpop.permute.xlu2 %1658 }
 0xc91   :  { %3639 = vmatmul.msk.f32.vlgmr.msra.gmra.mxu1 %vm452_vm9, %v1659_v46 }
 0xc96   :  { %v4573_v57 = vpop.f32.mrf.mxu1 }
 0xcf8   :  { %v1574_v49 = vpop.xlane.xlu0 %1573 }
 0xcf9   :  { %3812 = vrcp.f32 %v1574_v49 }
 0xcff   :  { %v3813_v53 = vpop.eup %3812 }
 0xd00   :  { %v1580_v54 = vmul.f32 %v3813_v53, %v3811_v30  ;;  %v3735_v53 = vld [vmem:[#allocation2 + $0xc0] ss:$0 sm:$0xff] }
 0xd02   :  { %3635 = vmatmul.msk.f32.vlgmr.msra.gmra.mxu2 %vm452_vm9, %v1580_v54 }
 0xd03   :  { %1805 = vmatpush.bf16.msra.mxu2 %v1796_v43 }
 0xd04   :  { %v1457_v55 = vpop.f32.mrf.mxu3 }
 0xd05   :  { %v1460_v56 = vpack.c.bf16 %v1457_v55, %v1431_v31 }
 0xd07   :  { %3629 = vmatmul.msk.bf16.vlgmr.msrb.gmra.mxu0 %vm452_vm9, %v1460_v56 }
 0xd0a   :  { %3641 = vmatmul.msk.f32.vlgmr.msrb.gmra.mxu2 %vm452_vm9, %v1687_v58 }
 0xd0c   :  { %v1555_v61 = vpop.f32.mrf.mxu3 }
 0xd0d   :  { %v1559_v3 = vmul.f32 0.35355338, %v1555_v61 }
 0xd0e   :  { %v1683_v5 = vpop.f32.mrf.mxu1 }
 0xd0f   :  { %v1714_v6 = vmul.f32 0.35355338, %v1683_v5  ;;  %v1563_v7 = vsel %vm452_vm9, %v1559_v3, -inf }
 0xd10   :  { %1564 = vmax.xlane.f32.xlu0 %v1563_v7 }
 0xd11   :  { %v1716_v44 = vsel %vm452_vm9, %v1714_v6, -inf }
 0xd12   :  { %1717 = vmax.xlane.f32.xlu2 %v1716_v44 }
 0xd2a   :  { %1738 = vrot.lane.b32.xlu2 %v4471_v17, %s3950_s21 }
 0xd83   :  { %v1565_v35 = vpop.xlane.xlu0 %1564 }
 0xd84   :  { %v1567_v52 = vsub.f32 %v1559_v3, %v1565_v35  ;;  %v1477_v46 = vpop.f32.mrf.mxu0 }
 0xd85   :  { %v1718_v63 = vpop.xlane.xlu2 %1717  ;;  %v1605_v8 = vpop.f32.mrf.mxu2  ;;  %v1498_v4 = vadd.f32 %v4570_v50, %v1477_v46 }
 0xd86   :  { %v1570_v51 = vmul.f32 1.442695, %v1567_v52  ;;  %v1722_v62 = vsub.f32 %v1714_v6, %v1718_v63 }
 0xd88   :  { %3814 = vpow2.f32 %v1570_v51  ;;  %v1724_v10 = vmul.f32 1.442695, %v1722_v62 }
 0xd8a   :  { %3816 = vpow2.f32 %v1724_v10 }
 0xd8c   :  { %v1479_v47 = vpop.f32.mrf.mxu0 }
 0xd8d   :  { %v1711_v12 = vpop.f32.mrf.mxu2  ;;  %v1739_v32 = vpop.permute.xlu2 %1738  ;;  %v1500_v61 = vadd.f32 %v4573_v57, %v1479_v47 }
 0xd8e   :  { %v3815_v9 = vpop.eup %3814  ;;  %v1715_v37 = vmul.f32 0.35355338, %v1711_v12 }
 0xd8f   :  { %v1575_v36 = vsel %vm452_vm9, %v3815_v9, 0.0 }
 0xd90   :  { %1576 = vadd.xlane.f32.xlu0 %v1575_v36  ;;  %v1719_v14 = vsel %vm452_vm9, %v1715_v37, -inf  ;;  %v3817_v15 = vpop.eup %3816  ;;  %v1874_v36 = vld [vmem:[#allocation2 + $0xe0] sm:$0xff] }
 0xd91   :  { %1720 = vmax.xlane.f32.xlu1 %v1719_v14  ;;  %v1728_v17 = vsel %vm452_vm9, %v3817_v15, 0.0 }
 0xd98   :  { %1729 = vadd.xlane.f32.xlu0 %v1728_v17 }
 0xdaa   :  { %1764 = vrot.lane.b32.xlu1 %v4475_v19, %s3950_s21 }
 0xdac   :  { %1608 = vrot.lane.b32.xlu0 %v4475_v19, %s3948_s20 }
 0xe03   :  { %v1577_v21 = vpop.xlane.xlu0 %1576 }
 0xe04   :  { %v1721_v16 = vpop.xlane.xlu1 %1720 }
 0xe05   :  { %v1723_v18 = vsub.f32 %v1715_v37, %v1721_v16  ;;  %v1871_v16 = vld [vmem:[#allocation2 + $0xc8] sm:$0xff] }
 0xe07   :  { %v1726_v20 = vmul.f32 1.442695, %v1723_v18  ;;  %v1872_v18 = vld [vmem:[#allocation2 + $0xd0] sm:$0xff] }
 0xe09   :  { %3818 = vpow2.f32 %v1726_v20 }
 0xe0a   :  { %3820 = vrcp.f32 %v1577_v21  ;;  %v1876_v21 = vpack.c.bf16 %v1872_v18, %v1871_v16 }
 0xe0b   :  { %v1730_v13 = vpop.xlane.xlu0 %1729 }
 0xe0c   :  { %3822 = vrcp.f32 %v1730_v13 }
 0xe0f   :  { %v3819_v22 = vpop.eup %3818 }
 0xe10   :  { %v1731_v23 = vsel %vm452_vm9, %v3819_v22, 0.0  ;;  %v3821_v26 = vpop.eup %3820 }
 0xe11   :  { %1732 = vadd.xlane.f32.xlu0 %v1731_v23  ;;  %v1581_v29 = vmul.f32 %v3821_v26, %v3815_v9 }
 0xe12   :  { %v3823_v19 = vpop.eup %3822 }
 0xe13   :  { %v1736_v0 = vmul.f32 %v3823_v19, %v3817_v15 }
 0xe1c   :  { %v1765_v27 = vpop.permute.xlu1 %1764 }
 0xe1d   :  { %1785 = vmatpush.msrb.mxu1 %v1765_v27 }
 0xe1e   :  { %v1609_v31 = vpop.permute.xlu0 %1608 }
 0xe1f   :  { %1629 = vmatpush.msra.mxu3 %v1609_v31 }
 0xe20   :  { %3636 = vmatmul.msk.f32.vlgmr.msra.gmra.mxu3 %vm452_vm9, %v1581_v29 }
 0xe21   :  { %1759 = vmatpush.msrb.mxu3 %v1739_v32 }
 0xe28   :  { %3642 = vmatmul.msk.f32.vlgmr.msrb.gmra.mxu3 %vm452_vm9, %v1736_v0 }
 0xe84   :  { %v1733_v59 = vpop.xlane.xlu0 %1732 }
 0xe85   :  { %3824 = vrcp.f32 %v1733_v59 }
 0xe8b   :  { %v3825_v34 = vpop.eup %3824 }
 0xe8c   :  { %v1737_v38 = vmul.f32 %v3825_v34, %v3819_v22 }
 0xe8e   :  { %3643 = vmatmul.msk.f32.vlgmr.msrb.gmra.mxu1 %vm452_vm9, %v1737_v38  ;;  %v3736_v38 = vld [vmem:[#allocation2 + $0x148] ss:$0 sm:$0xff] }
 0xea3   :  { %v1631_v40 = vpop.f32.mrf.mxu3 }
 0xea4   :  { %v1634_v41 = vpack.c.bf16 %v1631_v40, %v1605_v8 }
 0xea6   :  { %3637 = vmatmul.msk.bf16.vlgmr.msra.gmra.mxu0 %vm452_vm9, %v1634_v41 }
 0xeab   :  { %v1761_v30 = vpop.f32.mrf.mxu3 }
 0xf0b   :  { %v1787_v45 = vpop.f32.mrf.mxu1 }
 0xf0c   :  { %v1790_v28 = vpack.c.bf16 %v1787_v45, %v1761_v30 }
 0xf0e   :  { %3644 = vmatmul.msk.bf16.vlgmr.msra.gmra.mxu2 %vm452_vm9, %v1790_v28 }
 0xf23   :  { %v1651_v48 = vpop.f32.mrf.mxu0 }
 0xf24   :  { %v1656_v49 = vadd.f32 %v1651_v48, %v1498_v4  ;;  %v1905_v48 = vld [vmem:[#allocation2 + $0x120] sm:$0xff]  ;;  %v1906_v4 = vld [vmem:[#allocation2 + $0x128] sm:$0xff] }
 0xf2b   :  { %v1653_v58 = vpop.f32.mrf.mxu0 }
 0xf2c   :  { %v1657_v5 = vadd.f32 %v1653_v58, %v1500_v61  ;;  %v1902_v58 = vld [vmem:[#allocation2 + $0x108] sm:$0xff] }
 0xf91   :  { %v1807_v54 = vpop.f32.mrf.mxu2 }
 0xf92   :  { %v1812_v55 = vadd.f32 %v1807_v54, %v1656_v49  ;;  %v1911_v49 = vpack.c.bf16 %v1906_v4, %v1905_v48  ;;  %v1904_v54 = vld [vmem:[#allocation2 + $0x118] sm:$0xff] }
 0xf93   :  { %v3740_v4 = vld [vmem:[#allocation2 + $0x158] ss:$0 sm:$0xff] }
 0xf94   :  { %v1815_v56 = vadd.f32 %v3735_v53, %v1812_v55  ;;  %1922 = vmatpush.bf16.msrb.mxu0 %v1911_v49 }
 0xf96   :  { %v1817_v3 = vadd.f32 %v1815_v56, %v4496_v24  ;;  %v1901_v56 = vld [vmem:[#allocation2 + $0x100] sm:$0xff] }
 0xf97   :  { %v1909_v61 = vpack.c.bf16 %v1902_v58, %v1901_v56 }
 0xf98   :  { %v1821_v6 = vsel %vm426_vm8, %v1817_v3, 0.0 }
 0xf99   :  { %1822 = vadd.xlane.f32.xlu2 %v1821_v6  ;;  %v1809_v7 = vpop.f32.mrf.mxu2 }
 0xf9a   :  { %v1813_v44 = vadd.f32 %v1809_v7, %v1657_v5  ;;  %v1900_v5 = vld [vmem:[#allocation2 + $0xf8] sm:$0xff] }
 0xf9c   :  { %v1816_v35 = vadd.f32 %v3735_v53, %v1813_v44  ;;  %v1903_v53 = vld [vmem:[#allocation2 + $0x110] sm:$0xff]  ;;  %v3738_v44 = vld [vmem:[#allocation2 + $0xe8] ss:$0 sm:$0xff] }
 0xf9d   :  { %v1910_v55 = vpack.c.bf16 %v1904_v54, %v1903_v53 }
 0xf9e   :  { %v1818_v52 = vadd.f32 %v1816_v35, %v4498_v25  ;;  %v1873_v25 = vld [vmem:[#allocation2 + $0xd8] sm:$0xff] }
 0xf9f   :  { %v1877_v14 = vpack.c.bf16 %v1874_v36, %v1873_v25  ;;  %1923 = vmatpush.bf16.msrb.mxu0 %v1910_v55  ;;  %v3741_v55 = vld [vmem:[#allocation2 + $0x160] ss:$0 sm:$0xff] }
 0xfa0   :  { %v1824_v50 = vsel %vm426_vm8, %v1818_v52, 0.0 }
 0xfa1   :  { %1825 = vadd.xlane.f32.xlu1 %v1824_v50  ;;  %1889 = vmatpush.bf16.msra.mxu3 %v1877_v14 }
 0xfa3   :  { %1924 = vmatpush.bf16.msrb.mxu0 %v1909_v61 }
 0xfa5   :  { %1890 = vmatpush.bf16.msra.mxu3 %v1876_v21 }
0x100c   :  { %v1823_v63 = vpop.xlane.xlu2 %1822 }
0x100d   :  { %v1827_v8 = vmul.f32 %v1823_v63, %v4487_v39 }
0x100f   :  { %v1829_v51 = vsub.f32 %v1817_v3, %v1827_v8  ;;  %v1899_v3 = vld [vmem:[#allocation2 + $0xf0] sm:$0xff] }
0x1010   :  { %v1908_v6 = vpack.c.bf16 %v1900_v5, %v1899_v3 }
0x1011   :  { %v1831_v62 = vmul.f32 %v1829_v51, %v1829_v51 }
0x1012   :  { %1925 = vmatpush.bf16.msrb.mxu0 %v1908_v6 }
0x1013   :  { %v1833_v57 = vsel %vm426_vm8, %v1831_v62, 0.0  ;;  %v3739_v62 = vld [vmem:[#allocation2 + $0x130] ss:$0 sm:$0xff] }
0x1014   :  { %1834 = vadd.xlane.f32.xlu0 %v1833_v57  ;;  %v1826_v24 = vpop.xlane.xlu1 %1825 }
0x1015   :  { %v1828_v10 = vmul.f32 %v1826_v24, %v4487_v39 }
0x1017   :  { %v1830_v12 = vsub.f32 %v1818_v52, %v1828_v10 }
0x1019   :  { %v1832_v9 = vmul.f32 %v1830_v12, %v1830_v12 }
0x101b   :  { %v1836_v37 = vsel %vm426_vm8, %v1832_v9, 0.0 }
0x101c   :  { %1837 = vadd.xlane.f32.xlu0 %v1836_v37 }
0x1087   :  { %v1835_v15 = vpop.xlane.xlu0 %1834 }
0x1088   :  { %v1839_v17 = vmul.f32 %v1835_v15, %v4487_v39 }
0x108a   :  { %v1841_v20 = vadd.f32 1e-05, %v1839_v17 }
0x108c   :  { %3826 = vrsqrt.f32 %v1841_v20  ;;  %vm1849_vm3 = vweird.f32 %v1841_v20 }
0x108f   :  { %v1838_v22 = vpop.xlane.xlu0 %1837 }
0x1090   :  { %v1840_v23 = vmul.f32 %v1838_v22, %v4487_v39 }
0x1092   :  { %v3827_v13 = vpop.eup %3826  ;;  %v1842_v26 = vadd.f32 1e-05, %v1840_v23 }
0x1093   :  { %v1844_v27 = vmul.f32 %v3827_v13, %v1841_v20  ;;  %vm1850_vm2 = vweird.f32 %v3827_v13 }
0x1094   :  { %3828 = vrsqrt.f32 %v1842_v26  ;;  %vm1851_vm4 = vmor %vm1849_vm3, %vm1850_vm2  ;;  %vm1859_vm6 = vweird.f32 %v1842_v26 }
0x1095   :  { %v1845_v29 = vmul.f32 %v3827_v13, %v1844_v27  ;;  %v1989_v27 = vld [vmem:[#allocation2 + $0x180] sm:$0xff] }
0x1097   :  { %v1846_v31 = vmul.f32 0.5, %v1845_v29 }
0x1099   :  { %v1847_v32 = vsub.f32 1.5, %v1846_v31 }
0x109a   :  { %v3829_v19 = vpop.eup %3828 }
0x109b   :  { %v1848_v0 = vmul.f32 %v3827_v13, %v1847_v32  ;;  %v1854_v33 = vmul.f32 %v3829_v19, %v1842_v26  ;;  %vm1860_vm5 = vweird.f32 %v3829_v19  ;;  %v1988_v26 = vld [vmem:[#allocation2 + $0x178] sm:$0xff] }
0x109c   :  { %vm1861_vm7 = vmor %vm1859_vm6, %vm1860_vm5  ;;  %v1992_v29 = vpack.c.bf16 %v1989_v27, %v1988_v26 }
0x109d   :  { %v1855_v1 = vmul.f32 %v3829_v19, %v1854_v33  ;;  %v1852_v2 = vsel %vm1851_vm4, %v3827_v13, %v1848_v0  ;;  %v1987_v0 = vld [vmem:[#allocation2 + $0x170] sm:$0xff] }
0x109e   :  { %v1863_v40 = vmul.f32 %v1852_v2, %v1829_v51  ;;  %2004 = vmatpush.bf16.msra.mxu1 %v1992_v29 }
0x109f   :  { %v1856_v59 = vmul.f32 0.5, %v1855_v1 }
0x10a0   :  { %v1866_v43 = vmul.f32 %v3736_v38, %v1863_v40 }
0x10a1   :  { %v1857_v34 = vsub.f32 1.5, %v1856_v59 }
0x10a2   :  { %v1869_v28 = vadd.f32 %v3737_v42, %v1866_v43 }
0x10a3   :  { %v1858_v41 = vmul.f32 %v3829_v19, %v1857_v34 }
0x10a5   :  { %v1862_v60 = vsel %vm1861_vm7, %v3829_v19, %v1858_v41  ;;  %v1986_v19 = vld [vmem:[#allocation2 + $0x168] sm:$0xff] }
0x10a6   :  { %v1864_v30 = vmul.f32 %v1862_v60, %v1830_v12  ;;  %v1991_v1 = vpack.c.bf16 %v1987_v0, %v1986_v19 }
0x10a8   :  { %v1867_v45 = vmul.f32 %v3736_v38, %v1864_v30  ;;  %2005 = vmatpush.bf16.msra.mxu1 %v1991_v1 }
0x10aa   :  { %v1870_v46 = vadd.f32 %v3737_v42, %v1867_v45 }
0x10ac   :  { %v1875_v47 = vpack.c.bf16 %v1870_v46, %v1869_v28 }
0x10ae   :  { %3645 = vmatmul.msk.bf16.vlgmr.msra.gmra.mxu3 %vm426_vm8, %v1875_v47 }
0x1131   :  { %v1892_v7 = vpop.f32.mrf.mxu3 }
0x1132   :  { %v1893_v35 = vadd.f32 %v3738_v44, %v1892_v7  ;;  %v3742_v7 = vld [vmem:[#allocation2 + $0x188] ss:$0 sm:$0xff] }
0x1134   :  { %v1897_v63 = vmax.f32 %v1893_v35, 0.0 }
0x1139   :  { %v1894_v52 = vpop.f32.mrf.mxu3 }
0x113a   :  { %v1895_v50 = vadd.f32 %v3738_v44, %v1894_v52 }
0x113c   :  { %v1898_v8 = vmax.f32 %v1895_v50, 0.0 }
0x113e   :  { %v1907_v51 = vpack.c.bf16 %v1898_v8, %v1897_v63 }
0x1140   :  { %3646 = vmatmul.msk.bf16.vlgmr.msrb.gmra.mxu0 %vm1914_vm11, %v1907_v51 }
0x11bd   :  { %v1927_v57 = vpop.f32.mrf.mxu0 }
0x11be   :  { %v1928_v24 = vadd.f32 %v3739_v62, %v1927_v57 }
0x11c0   :  { %v1932_v10 = vadd.f32 %v1928_v24, %v1869_v28 }
0x11c2   :  { %v1936_v12 = vsel %vm426_vm8, %v1932_v10, 0.0 }
0x11c3   :  { %1937 = vadd.xlane.f32.xlu0 %v1936_v12  ;;  %v4651_v12 = vld [vmem:[%s4918_s3] sm:$0xff] }
0x11c5   :  { %v1929_v9 = vpop.f32.mrf.mxu0 }
0x11c6   :  { %v1930_v37 = vadd.f32 %v3739_v62, %v1929_v9 }
0x11c8   :  { %v1933_v25 = vadd.f32 %v1930_v37, %v1870_v46 }
0x11ca   :  { %v1939_v36 = vsel %vm426_vm8, %v1933_v25, 0.0 }
0x11cb   :  { %1940 = vadd.xlane.f32.xlu0 %v1939_v36 }
0x1236   :  { %v1938_v14 = vpop.xlane.xlu0 %1937 }
0x1237   :  { %v1942_v15 = vmul.f32 %v1938_v14, %v4487_v39 }
0x1239   :  { %v1944_v17 = vsub.f32 %v1932_v10, %v1942_v15 }
0x123b   :  { %v1946_v16 = vmul.f32 %v1944_v17, %v1944_v17 }
0x123d   :  { %v1948_v18 = vsel %vm426_vm8, %v1946_v16, 0.0 }
0x123e   :  { %1949 = vadd.xlane.f32.xlu2 %v1948_v18  ;;  %v1941_v20 = vpop.xlane.xlu0 %1940 }
0x123f   :  { %v1943_v21 = vmul.f32 %v1941_v20, %v4487_v39 }
0x1241   :  { %v1945_v22 = vsub.f32 %v1933_v25, %v1943_v21 }
0x1243   :  { %v1947_v23 = vmul.f32 %v1945_v22, %v1945_v22 }
0x1245   :  { %v1951_v13 = vsel %vm426_vm8, %v1947_v23, 0.0 }
0x1246   :  { %1952 = vadd.xlane.f32.xlu1 %v1951_v13 }
0x12b1   :  { %v1950_v31 = vpop.xlane.xlu2 %1949 }
0x12b2   :  { %v1954_v32 = vmul.f32 %v1950_v31, %v4487_v39 }
0x12b4   :  { %v1956_v33 = vadd.f32 1e-05, %v1954_v32 }
0x12b6   :  { %3830 = vrsqrt.f32 %v1956_v33  ;;  %vm1964_vm13 = vweird.f32 %v1956_v33 }
0x12b9   :  { %v1953_v2 = vpop.xlane.xlu1 %1952 }
0x12ba   :  { %v1955_v59 = vmul.f32 %v1953_v2, %v4487_v39 }
0x12bc   :  { %v3831_v34 = vpop.eup %3830  ;;  %v1957_v38 = vadd.f32 1e-05, %v1955_v59 }
0x12bd   :  { %v1959_v40 = vmul.f32 %v3831_v34, %v1956_v33  ;;  %vm1965_vm12 = vweird.f32 %v3831_v34 }
0x12be   :  { %3832 = vrsqrt.f32 %v1957_v38  ;;  %vm1966_vm14 = vmor %vm1964_vm13, %vm1965_vm12  ;;  %vm1974_vm0 = vweird.f32 %v1957_v38 }
0x12bf   :  { %v1960_v41 = vmul.f32 %v3831_v34, %v1959_v40 }
0x12c1   :  { %v1961_v60 = vmul.f32 0.5, %v1960_v41 }
0x12c3   :  { %v1962_v42 = vsub.f32 1.5, %v1961_v60 }
0x12c4   :  { %v3833_v43 = vpop.eup %3832 }
0x12c5   :  { %v1963_v30 = vmul.f32 %v3831_v34, %v1962_v42  ;;  %v1969_v45 = vmul.f32 %v3833_v43, %v1957_v38  ;;  %vm1975_vm15 = vweird.f32 %v3833_v43 }
0x12c6   :  { %vm1976_vm1 = vmor %vm1974_vm0, %vm1975_vm15 }
0x12c7   :  { %v1970_v28 = vmul.f32 %v3833_v43, %v1969_v45  ;;  %v1967_v46 = vsel %vm1966_vm14, %v3831_v34, %v1963_v30 }
0x12c8   :  { %v1978_v49 = vmul.f32 %v1967_v46, %v1944_v17 }
0x12c9   :  { %v1971_v47 = vmul.f32 0.5, %v1970_v28 }
0x12ca   :  { %v1981_v56 = vmul.f32 %v3740_v4, %v1978_v49 }
0x12cb   :  { %v1972_v48 = vsub.f32 1.5, %v1971_v47 }
0x12cc   :  { %v4618_v3 = vadd.f32 %v3741_v55, %v1981_v56 }
0x12cd   :  { %v1973_v53 = vmul.f32 %v3833_v43, %v1972_v48 }
0x12cf   :  { %v1977_v54 = vsel %vm1976_vm1, %v3833_v43, %v1973_v53 }
0x12d0   :  { %v1979_v58 = vmul.f32 %v1977_v54, %v1945_v22 }
0x12d2   :  { %v1982_v61 = vmul.f32 %v3740_v4, %v1979_v58 }
0x12d4   :  { %v4620_v5 = vadd.f32 %v3741_v55, %v1982_v61 }
0x12d6   :  { %v1990_v6 = vpack.c.bf16 %v4620_v5, %v4618_v3 }
0x12d8   :  { %3647 = vmatmul.msk.bf16.vlgmr.msra.gmra.mxu1 %vm426_vm8, %v1990_v6 }
0x1355   :  { %v2007_v44 = vpop.f32.mrf.mxu1 }
0x1356   :  { %v4625_v35 = vadd.f32 %v3742_v7, %v2007_v44 }
0x1358   :  { %2151 = vrot.lane.b32.xlu1 %v4625_v35, %s3943_s2  ;;  %2153 = vrot.lane.b32.xlu2 %v4625_v35, %s3945_s15 }
0x1359   :  { %2018 = vrot.lane.b32.xlu0 %v4625_v35, %s3944_s14 }
0x135d   :  { %v2009_v52 = vpop.f32.mrf.mxu1 }
0x135e   :  { %v4633_v50 = vadd.f32 %v3742_v7, %v2009_v52 }
0x1360   :  { %2181 = vrot.lane.b32.xlu1 %v4633_v50, %s3945_s15 }
0x1361   :  { %2045 = vrot.lane.b32.xlu0 %v4633_v50, %s3944_s14 }
0x13b2   :  { %v2154_v51 = vpop.permute.xlu2 %2153 }
0x13ca   :  { %v2152_v63 = vpop.permute.xlu1 %2151 }
0x13cb   :  { %v2019_v8 = vpop.permute.xlu0 %2018 }
0x13cc   :  { %3648 = vmatpush.xpose.msk.msrb.mxu2 %vm452_vm9, %v2019_v8 }
0x13cf   :  { %3649 = vmatmul.msk.f32.vlgmr.msrb.gmra.mxu2 %vm452_vm9, %v4625_v35 }
0x13d0   :  { %3654 = vmatpush.xpose.msk.msra.mxu2 %vm452_vm9, %v2154_v51  ;;  %v2012_v51 = vld [vmem:[#allocation2 + $0x190] sm:$0xff] }
0x13d2   :  { %v2182_v62 = vpop.permute.xlu1 %2181 }
0x13d3   :  { %v2046_v57 = vpop.permute.xlu0 %2045 }
0x13d4   :  { %3650 = vmatpush.xpose.msk.msrb.mxu3 %vm452_vm9, %v2046_v57 }
0x13d7   :  { %3651 = vmatmul.msk.f32.vlgmr.msrb.gmra.mxu3 %vm452_vm9, %v4633_v50  ;;  %3655 = vmatmul.msk.f32.vlgmr.msra.gmra.mxu2 %vm452_vm9, %v2152_v63 }
0x13d8   :  { %3656 = vmatpush.xpose.msk.msra.mxu3 %vm452_vm9, %v2182_v62  ;;  %v2150_v62 = vpack.c.bf16 %v2012_v51, %v2012_v51 }
0x13da   :  { %v2311_v57 = vsel %vm723_vm10, %v2150_v62, 0 }
0x13dc   :  { %2320 = vmatpush.bf16.msrb.mxu3 %v2311_v57 }
0x1452   :  { %v2041_v24 = vpop.f32.mrf.mxu2 }
0x1453   :  { %v2071_v10 = vmul.f32 0.35355338, %v2041_v24 }
0x1455   :  { %v2073_v9 = vadd.f32 %v4651_v12, %v2071_v10 }
0x1457   :  { %v2075_v37 = vsel %vm452_vm9, %v2073_v9, -inf }
0x1458   :  { %2076 = vmax.xlane.f32.xlu2 %v2075_v37 }
0x145a   :  { %v2176_v25 = vpop.f32.mrf.mxu2  ;;  %v2068_v32 = vpop.f32.mrf.mxu3 }
0x145b   :  { %v2207_v36 = vmul.f32 0.35355338, %v2176_v25  ;;  %v2072_v19 = vmul.f32 0.35355338, %v2068_v32 }
0x145d   :  { %v2209_v14 = vadd.f32 %v4651_v12, %v2207_v36  ;;  %v2074_v0 = vadd.f32 %v4651_v12, %v2072_v19 }
0x145f   :  { %v2211_v15 = vsel %vm452_vm9, %v2209_v14, -inf  ;;  %v2078_v33 = vsel %vm452_vm9, %v2074_v0, -inf }
0x1460   :  { %2212 = vmax.xlane.f32.xlu0 %v2211_v15 }
0x1474   :  { %2097 = vrot.lane.b32.xlu0 %v4625_v35, %s3946_s18 }
0x147c   :  { %2179 = vrot.lane.b32.xlu0 %v4633_v50, %s3943_s2 }
0x1484   :  { %2329 = vrot.lane.b32.xlu0 %v4625_v35, %s3948_s20 }
0x14cb   :  { %v2077_v17 = vpop.xlane.xlu2 %2076 }
0x14cc   :  { %v2081_v16 = vsub.f32 %v2073_v9, %v2077_v17 }
0x14ce   :  { %v2083_v18 = vmul.f32 1.442695, %v2081_v16 }
0x14d0   :  { %3834 = vpow2.f32 %v2083_v18 }
0x14d3   :  { %v2213_v20 = vpop.xlane.xlu0 %2212 }
0x14d4   :  { %v2217_v21 = vsub.f32 %v2209_v14, %v2213_v20 }
0x14d6   :  { %v3835_v22 = vpop.eup %3834  ;;  %v2219_v23 = vmul.f32 1.442695, %v2217_v21 }
0x14d7   :  { %v2087_v13 = vsel %vm452_vm9, %v3835_v22, 0.0 }
0x14d8   :  { %3836 = vpow2.f32 %v2219_v23  ;;  %2088 = vadd.xlane.f32.xlu1 %v2087_v13 }
0x14de   :  { %v3837_v26 = vpop.eup %3836 }
0x14df   :  { %v2223_v27 = vsel %vm452_vm9, %v3837_v26, 0.0 }
0x14e0   :  { %2224 = vadd.xlane.f32.xlu2 %v2223_v27 }
0x14e6   :  { %v2098_v29 = vpop.permute.xlu0 %2097 }
0x14e7   :  { %2118 = vmatpush.msra.mxu0 %v2098_v29 }
0x14ee   :  { %v2180_v31 = vpop.permute.xlu0 %2179 }
0x14ef   :  { %3657 = vmatmul.msk.f32.vlgmr.msra.gmra.mxu3 %vm452_vm9, %v2180_v31  ;;  %v2013_v31 = vld [vmem:[#allocation2 + $0x198] sm:$0xff] }
0x14f0   :  { %v2286_v32 = vpack.c.bf16 %v2013_v31, %v2013_v31 }
0x14f1   :  { %2327 = vrot.lane.b32.xlu1 %v4625_v35, %s3947_s19 }
0x14f2   :  { %v2291_v19 = vsel %vm723_vm10, %v2286_v32, 0 }
0x14f3   :  { %2300 = vmatpush.bf16.msrb.mxu2 %v2291_v19 }
0x14f6   :  { %v2330_v60 = vpop.permute.xlu0 %2329 }
0x14f8   :  { %2233 = vrot.lane.b32.xlu2 %v4625_v35, %s3949_s4 }
0x14f9   :  { %2123 = vrot.lane.b32.xlu1 %v4633_v50, %s3946_s18 }
0x1521   :  { %2079 = vmax.xlane.f32.xlu2 %v2078_v33 }
0x154b   :  { %v2089_v1 = vpop.xlane.xlu1 %2088 }
0x154c   :  { %3838 = vrcp.f32 %v2089_v1 }
0x1552   :  { %v3839_v2 = vpop.eup %3838 }
0x1553   :  { %v2095_v59 = vmul.f32 %v3839_v2, %v3835_v22  ;;  %v2225_v34 = vpop.xlane.xlu2 %2224 }
0x1554   :  { %3840 = vrcp.f32 %v2225_v34 }
0x1555   :  { %3652 = vmatmul.msk.f32.vlgmr.msra.gmra.mxu0 %vm452_vm9, %v2095_v59 }
0x155a   :  { %v3841_v38 = vpop.eup %3840 }
0x155b   :  { %v2231_v40 = vmul.f32 %v3841_v38, %v3837_v26  ;;  %v2234_v41 = vpop.permute.xlu2 %2233 }
0x155c   :  { %2254 = vmatpush.msrb.mxu0 %v2234_v41 }
0x155d   :  { %3658 = vmatmul.msk.f32.vlgmr.msrb.gmra.mxu0 %vm452_vm9, %v2231_v40 }
0x155e   :  { %3662 = vmatpush.xpose.msk.msra.mxu0 %vm452_vm9, %v2330_v60 }
0x1563   :  { %v2328_v42 = vpop.permute.xlu1 %2327 }
0x1565   :  { %3663 = vmatmul.msk.f32.vlgmr.msra.gmra.mxu0 %vm452_vm9, %v2328_v42 }
0x156b   :  { %v2124_v43 = vpop.permute.xlu1 %2123 }
0x156c   :  { %2144 = vmatpush.msrb.mxu1 %v2124_v43 }
0x1572   :  { %v2204_v30 = vpop.f32.mrf.mxu3 }
0x1573   :  { %v2208_v45 = vmul.f32 0.35355338, %v2204_v30 }
0x1575   :  { %v2210_v28 = vadd.f32 %v4651_v12, %v2208_v45 }
0x1577   :  { %v2214_v46 = vsel %vm452_vm9, %v2210_v28, -inf }
0x1578   :  { %2215 = vmax.xlane.f32.xlu1 %v2214_v46 }
0x1591   :  { %2357 = vrot.lane.b32.xlu1 %v4633_v50, %s3948_s20 }
0x1594   :  { %v2080_v47 = vpop.xlane.xlu2 %2079 }
0x1595   :  { %v2082_v48 = vsub.f32 %v2074_v0, %v2080_v47 }
0x1597   :  { %v2085_v4 = vmul.f32 1.442695, %v2082_v48 }
0x1599   :  { %3842 = vpow2.f32 %v2085_v4  ;;  %2355 = vrot.lane.b32.xlu1 %v4633_v50, %s3947_s19 }
0x159f   :  { %v3843_v49 = vpop.eup %3842 }
0x15a0   :  { %v2090_v53 = vsel %vm452_vm9, %v3843_v49, 0.0 }
0x15a1   :  { %2091 = vadd.xlane.f32.xlu0 %v2090_v53 }
0x15b5   :  { %2409 = vrot.lane.b32.xlu0 %v4625_v35, %s3952_s23 }
0x15bd   :  { %2487 = vrot.lane.b32.xlu0 %v4625_v35, %s3950_s21 }
0x15d2   :  { %v2120_v54 = vpop.f32.mrf.mxu0 }
0x15da   :  { %v4689_v55 = vpop.f32.mrf.mxu0 }
0x15e2   :  { %v2352_v56 = vpop.f32.mrf.mxu0 }
0x15e3   :  { %v2383_v58 = vmul.f32 0.35355338, %v2352_v56 }
0x15e5   :  { %v2385_v61 = vadd.f32 %v4651_v12, %v2383_v58 }
0x15e7   :  { %v2387_v6 = vsel %vm452_vm9, %v2385_v61, -inf }
0x15e8   :  { %2388 = vmax.xlane.f32.xlu2 %v2387_v6 }
0x15eb   :  { %v2216_v7 = vpop.xlane.xlu1 %2215 }
0x15ec   :  { %v2218_v44 = vsub.f32 %v2210_v28, %v2216_v7 }
0x15ee   :  { %v2221_v52 = vmul.f32 1.442695, %v2218_v44 }
0x15f0   :  { %3844 = vpow2.f32 %v2221_v52 }
0x15f6   :  { %v3845_v63 = vpop.eup %3844 }
0x15f7   :  { %v2226_v8 = vsel %vm452_vm9, %v3845_v63, 0.0 }
0x15f8   :  { %2227 = vadd.xlane.f32.xlu2 %v2226_v8 }
0x1603   :  { %v2358_v21 = vpop.permute.xlu1 %2357 }
0x160b   :  { %v2356_v26 = vpop.permute.xlu1 %2355 }
0x1610   :  { %2259 = vrot.lane.b32.xlu2 %v4633_v50, %s3949_s4 }
0x1614   :  { %v2092_v24 = vpop.xlane.xlu0 %2091 }
0x1615   :  { %3846 = vrcp.f32 %v2092_v24 }
0x1618   :  { %2515 = vrot.lane.b32.xlu2 %v4633_v50, %s3950_s21 }
0x161b   :  { %v3847_v10 = vpop.eup %3846 }
0x161c   :  { %v2096_v9 = vmul.f32 %v3847_v10, %v3843_v49 }
0x161e   :  { %3653 = vmatmul.msk.f32.vlgmr.msrb.gmra.mxu1 %vm452_vm9, %v2096_v9 }
0x1620   :  { %2513 = vrot.lane.b32.xlu2 %v4633_v50, %s3951_s22 }
0x1627   :  { %v2410_v37 = vpop.permute.xlu0 %2409 }
0x1628   :  { %2430 = vmatpush.msrb.mxu0 %v2410_v37 }
0x162f   :  { %v2488_v25 = vpop.permute.xlu0 %2487 }
0x1630   :  { %3669 = vmatpush.xpose.msk.msra.mxu3 %vm452_vm9, %v2488_v25 }
0x165b   :  { %v2389_v36 = vpop.xlane.xlu2 %2388 }
0x165c   :  { %v2393_v14 = vsub.f32 %v2385_v61, %v2389_v36  ;;  %v2014_v36 = vld [vmem:[#allocation2 + $0x1a0] sm:$0xff] }
0x165e   :  { %v2395_v15 = vmul.f32 1.442695, %v2393_v14  ;;  %v2462_v14 = vpack.c.bf16 %v2014_v36, %v2014_v36 }
0x1660   :  { %3848 = vpow2.f32 %v2395_v15 }
0x1666   :  { %v3849_v17 = vpop.eup %3848 }
0x1667   :  { %v2399_v16 = vsel %vm452_vm9, %v3849_v17, 0.0 }
0x1668   :  { %2400 = vadd.xlane.f32.xlu0 %v2399_v16 }
0x166b   :  { %v2228_v18 = vpop.xlane.xlu2 %2227 }
0x166c   :  { %3850 = vrcp.f32 %v2228_v18  ;;  %v2728_v18 = vld [vmem:[#allocation2 + $0x1f0] sm:$0xff] }
0x1672   :  { %v3851_v20 = vpop.eup %3850 }
0x1673   :  { %v2232_v22 = vmul.f32 %v3851_v20, %v3845_v63  ;;  %v2260_v23 = vpop.permute.xlu2 %2259  ;;  %v2726_v20 = vld [vmem:[#allocation2 + $0x1e0] sm:$0xff] }
0x1674   :  { %2280 = vmatpush.msra.mxu1 %v2260_v23 }
0x1675   :  { %3659 = vmatmul.msk.f32.vlgmr.msra.gmra.mxu1 %vm452_vm9, %v2232_v22  ;;  %v2727_v22 = vld [vmem:[#allocation2 + $0x1e8] sm:$0xff] }
0x1676   :  { %3664 = vmatpush.xpose.msk.msrb.mxu1 %vm452_vm9, %v2358_v21  ;;  %v2730_v23 = vpack.c.bf16 %v2727_v22, %v2726_v20 }
0x167b   :  { %v2516_v13 = vpop.permute.xlu2 %2515 }
0x167c   :  { %2485 = vrot.lane.b32.xlu0 %v4625_v35, %s3951_s22  ;;  %3671 = vmatpush.xpose.msk.msra.mxu0 %vm452_vm9, %v2516_v13 }
0x167d   :  { %3665 = vmatmul.msk.f32.vlgmr.msrb.gmra.mxu1 %vm452_vm9, %v2356_v26 }
0x1683   :  { %v2514_v2 = vpop.permute.xlu2 %2513 }
0x169b   :  { %v2146_v27 = vpop.f32.mrf.mxu1 }
0x169c   :  { %v2149_v29 = vpack.c.bf16 %v2146_v27, %v2120_v54 }
0x169e   :  { %3661 = vmatmul.msk.bf16.vlgmr.msrb.gmra.mxu3 %vm452_vm9, %v2149_v29 }
0x16db   :  { %v2401_v0 = vpop.xlane.xlu0 %2400 }
0x16dc   :  { %3852 = vrcp.f32 %v2401_v0  ;;  %v2015_v0 = vld [vmem:[#allocation2 + $0x1a8] sm:$0xff] }
0x16e2   :  { %v3853_v33 = vpop.eup %3852 }
0x16e3   :  { %v2407_v1 = vmul.f32 %v3853_v33, %v3849_v17  ;;  %v2467_v17 = vsel %vm723_vm10, %v2462_v14, 0  ;;  %v2620_v33 = vpack.c.bf16 %v2015_v0, %v2015_v0 }
0x16e4   :  { %2476 = vmatpush.bf16.msra.mxu2 %v2467_v17  ;;  %v2701_v17 = vld [vmem:[#allocation2 + $0x1c0] sm:$0xff] }
0x16e5   :  { %3666 = vmatmul.msk.f32.vlgmr.msrb.gmra.mxu0 %vm452_vm9, %v2407_v1  ;;  %v2625_v1 = vsel %vm723_vm10, %v2620_v33, 0 }
0x16e6   :  { %2634 = vmatpush.bf16.msrb.mxu0 %v2625_v1  ;;  %v3745_v1 = vld [vmem:[#allocation2 + $0x2a0] ss:$0 sm:$0xff] }
0x16ed   :  { %3672 = vmatmul.msk.f32.vlgmr.msra.gmra.mxu0 %vm452_vm9, %v2514_v2 }
0x16ee   :  { %v2486_v59 = vpop.permute.xlu0 %2485 }
0x16ef   :  { %3670 = vmatmul.msk.f32.vlgmr.msra.gmra.mxu3 %vm452_vm9, %v2486_v59 }
0x16f2   :  { %v2282_v34 = vpop.f32.mrf.mxu1 }
0x16f3   :  { %v2285_v38 = vpack.c.bf16 %v2282_v34, %v4689_v55 }
0x16f5   :  { %3660 = vmatmul.msk.bf16.vlgmr.msrb.gmra.mxu2 %vm452_vm9, %v2285_v38 }
0x16fa   :  { %v2380_v40 = vpop.f32.mrf.mxu1 }
0x16fb   :  { %v2384_v41 = vmul.f32 0.35355338, %v2380_v40 }
0x16fd   :  { %v2386_v60 = vadd.f32 %v4651_v12, %v2384_v41 }
0x16ff   :  { %v2390_v42 = vsel %vm452_vm9, %v2386_v60, -inf }
0x1700   :  { %2391 = vmax.xlane.f32.xlu1 %v2390_v42 }
0x1721   :  { %v4719_v43 = vpop.f32.mrf.mxu3 }
0x1729   :  { %v4723_v45 = vpop.f32.mrf.mxu3 }
0x1762   :  { %v4721_v30 = vpop.f32.mrf.mxu0 }
0x176a   :  { %v2538_v28 = vpop.f32.mrf.mxu0 }
0x176b   :  { %v2542_v46 = vmul.f32 0.35355338, %v2538_v28 }
0x176d   :  { %v2544_v47 = vadd.f32 %v4651_v12, %v2542_v46  ;;  %v3743_v46 = vld [vmem:[#allocation2 + $0x200] ss:$0 sm:$0xff] }
0x176f   :  { %v2548_v48 = vsel %vm452_vm9, %v2544_v47, -inf }
0x1770   :  { %2549 = vmax.xlane.f32.xlu0 %v2548_v48 }
0x1772   :  { %v2510_v4 = vpop.f32.mrf.mxu3 }
0x1773   :  { %v2541_v49 = vmul.f32 0.35355338, %v2510_v4  ;;  %v2392_v53 = vpop.xlane.xlu1 %2391 }
0x1774   :  { %v2394_v54 = vsub.f32 %v2386_v60, %v2392_v53 }
0x1775   :  { %v2543_v55 = vadd.f32 %v4651_v12, %v2541_v49 }
0x1776   :  { %v2397_v56 = vmul.f32 1.442695, %v2394_v54 }
0x1777   :  { %v2545_v58 = vsel %vm452_vm9, %v2543_v55, -inf }
0x1778   :  { %3854 = vpow2.f32 %v2397_v56  ;;  %2546 = vmax.xlane.f32.xlu2 %v2545_v58  ;;  %v2302_v38 = vpop.f32.mrf.mxu2 }
0x1779   :  { %v2323_v41 = vadd.f32 %v4719_v43, %v2302_v38  ;;  %v3744_v43 = vld [vmem:[#allocation2 + $0x1b0] ss:$0 sm:$0xff]  ;;  %v3746_v38 = vld [vmem:[#allocation2 + $0x2a8] ss:$0 sm:$0xff] }
0x177e   :  { %v3855_v61 = vpop.eup %3854 }
0x177f   :  { %v2402_v6 = vsel %vm452_vm9, %v3855_v61, 0.0 }
0x1780   :  { %2403 = vadd.xlane.f32.xlu1 %v2402_v6  ;;  %v2304_v40 = vpop.f32.mrf.mxu2 }
0x1799   :  { %2435 = vrot.lane.b32.xlu1 %v4633_v50, %s3952_s23 }
0x17e3   :  { %v2550_v7 = vpop.xlane.xlu0 %2549 }
0x17e4   :  { %v2552_v44 = vsub.f32 %v2544_v47, %v2550_v7 }
0x17e6   :  { %v2555_v52 = vmul.f32 1.442695, %v2552_v44 }
0x17e8   :  { %3856 = vpow2.f32 %v2555_v52 }
0x17eb   :  { %v2547_v63 = vpop.xlane.xlu2 %2546 }
0x17ec   :  { %v2551_v8 = vsub.f32 %v2543_v55, %v2547_v63 }
0x17ee   :  { %v3857_v51 = vpop.eup %3856  ;;  %v2553_v12 = vmul.f32 1.442695, %v2551_v8 }
0x17ef   :  { %v2560_v62 = vsel %vm452_vm9, %v3857_v51, 0.0 }
0x17f0   :  { %3858 = vpow2.f32 %v2553_v12  ;;  %2561 = vadd.xlane.f32.xlu0 %v2560_v62 }
0x17f3   :  { %v2404_v10 = vpop.xlane.xlu1 %2403 }
0x17f4   :  { %3860 = vrcp.f32 %v2404_v10 }
0x17f6   :  { %v3859_v57 = vpop.eup %3858 }
0x17f7   :  { %v2557_v24 = vsel %vm452_vm9, %v3859_v57, 0.0 }
0x17f8   :  { %2558 = vadd.xlane.f32.xlu2 %v2557_v24 }
0x17fa   :  { %v3861_v9 = vpop.eup %3860 }
0x17fb   :  { %v2408_v37 = vmul.f32 %v3861_v9, %v3855_v61  ;;  %v2702_v9 = vld [vmem:[#allocation2 + $0x1c8] sm:$0xff] }
0x1804   :  { %2593 = vrot.lane.b32.xlu0 %v4633_v50, %s3953_s24  ;;  %v2729_v50 = vld [vmem:[#allocation2 + $0x1f8] sm:$0xff] }
0x1805   :  { %v2731_v21 = vpack.c.bf16 %v2729_v50, %v2728_v18 }
0x1807   :  { %2740 = vmatpush.bf16.msrb.mxu2 %v2731_v21 }
0x180b   :  { %v2436_v25 = vpop.permute.xlu1 %2435  ;;  %2741 = vmatpush.bf16.msrb.mxu2 %v2730_v23 }
0x180c   :  { %2456 = vmatpush.msra.mxu1 %v2436_v25 }
0x180d   :  { %3667 = vmatmul.msk.f32.vlgmr.msra.gmra.mxu1 %vm452_vm9, %v2408_v37  ;;  %v2703_v37 = vld [vmem:[#allocation2 + $0x1d0] sm:$0xff] }
0x180e   :  { %v2706_v25 = vpack.c.bf16 %v2703_v37, %v2702_v9 }
0x1810   :  { %2567 = vrot.lane.b32.xlu2 %v4625_v35, %s3953_s24 }
0x1863   :  { %v2562_v15 = vpop.xlane.xlu0 %2561 }
0x186b   :  { %v2559_v16 = vpop.xlane.xlu2 %2558 }
0x186c   :  { %3862 = vrcp.f32 %v2559_v16 }
0x186d   :  { %3864 = vrcp.f32 %v2562_v15  ;;  %v2700_v15 = vld [vmem:[#allocation2 + $0x1b8] sm:$0xff] }
0x186e   :  { %v2705_v18 = vpack.c.bf16 %v2701_v17, %v2700_v15 }
0x1872   :  { %v3863_v13 = vpop.eup %3862 }
0x1873   :  { %v3865_v26 = vpop.eup %3864  ;;  %v2565_v27 = vmul.f32 %v3863_v13, %v3859_v57  ;;  %v2568_v35 = vpop.permute.xlu2 %2567 }
0x1874   :  { %2588 = vmatpush.msrb.mxu1 %v2568_v35  ;;  %v2566_v29 = vmul.f32 %v3865_v26, %v3857_v51 }
0x1875   :  { %3673 = vmatmul.msk.f32.vlgmr.msrb.gmra.mxu1 %vm452_vm9, %v2565_v27 }
0x1876   :  { %v2594_v31 = vpop.permute.xlu0 %2593  ;;  %2718 = vmatpush.bf16.msra.mxu1 %v2706_v25 }
0x1877   :  { %2614 = vmatpush.msrb.mxu3 %v2594_v31 }
0x1878   :  { %3674 = vmatmul.msk.f32.vlgmr.msrb.gmra.mxu3 %vm452_vm9, %v2566_v29 }
0x187a   :  { %2719 = vmatpush.bf16.msra.mxu1 %v2705_v18 }
0x188a   :  { %v2458_v32 = vpop.f32.mrf.mxu1 }
0x188b   :  { %v2461_v19 = vpack.c.bf16 %v2458_v32, %v4721_v30  ;;  %v2325_v30 = vadd.f32 %v4723_v45, %v2304_v40 }
0x188d   :  { %3668 = vmatmul.msk.bf16.vlgmr.msra.gmra.mxu2 %vm452_vm9, %v2461_v19 }
0x189d   :  { %3677 = vmatmul.msk.bf16.vlgmr.msrb.gmra.mxu2 %vm426_vm8, %v4465_v11 }
0x18f2   :  { %v2590_v2 = vpop.f32.mrf.mxu1 }
0x18fb   :  { %v2616_v59 = vpop.f32.mrf.mxu3 }
0x18fc   :  { %v2619_v34 = vpack.c.bf16 %v2616_v59, %v2590_v2 }
0x18fe   :  { %3675 = vmatmul.msk.bf16.vlgmr.msrb.gmra.mxu0 %vm452_vm9, %v2619_v34 }
0x1910   :  { %v2478_v60 = vpop.f32.mrf.mxu2 }
0x1911   :  { %v2483_v42 = vadd.f32 %v2478_v60, %v2323_v41 }
0x1918   :  { %v2480_v28 = vpop.f32.mrf.mxu2 }
0x1919   :  { %v2484_v11 = vadd.f32 %v2480_v28, %v2325_v30 }
0x1920   :  { %v2743_v47 = vpop.f32.mrf.mxu2 }
0x1921   :  { %v4750_v48 = vadd.f32 %v3743_v46, %v2743_v47 }
0x1923   :  { %3678 = vmatpush.xpose.msk.msra.mxu3 %vm452_vm9, %v4750_v48 }
0x1928   :  { %v2745_v4 = vpop.f32.mrf.mxu2 }
0x1929   :  { %v4754_v49 = vadd.f32 %v3743_v46, %v2745_v4 }
0x192b   :  { %3680 = vmatpush.xpose.msk.msrb.mxu3 %vm452_vm9, %v4754_v49 }
0x197b   :  { %v2636_v53 = vpop.f32.mrf.mxu0 }
0x197c   :  { %v2641_v54 = vadd.f32 %v2636_v53, %v2483_v42 }
0x197e   :  { %v2644_v55 = vadd.f32 %v3744_v43, %v2641_v54 }
0x1980   :  { %v2646_v45 = vadd.f32 %v2644_v55, %v4618_v3 }
0x1982   :  { %v2650_v56 = vsel %vm426_vm8, %v2646_v45, 0.0 }
0x1983   :  { %2651 = vadd.xlane.f32.xlu0 %v2650_v56  ;;  %v2638_v58 = vpop.f32.mrf.mxu0 }
0x1984   :  { %v2642_v61 = vadd.f32 %v2638_v58, %v2484_v11  ;;  %v3747_v11 = vld [vmem:[#allocation2 + $0x1d8] ss:$0 sm:$0xff] }
0x1986   :  { %v2645_v6 = vadd.f32 %v3744_v43, %v2642_v61 }
0x1988   :  { %v2647_v7 = vadd.f32 %v2645_v6, %v4620_v5 }
0x198a   :  { %v2653_v44 = vsel %vm426_vm8, %v2647_v7, 0.0 }
0x198b   :  { %2654 = vadd.xlane.f32.xlu1 %v2653_v44 }
0x19a4   :  { %2885 = vrot.lane.b32.xlu1 %v4750_v48, %s3943_s2 }
0x19f6   :  { %v2652_v52 = vpop.xlane.xlu0 %2651 }
0x19f7   :  { %v2656_v63 = vmul.f32 %v2652_v52, %v4487_v39 }
0x19f9   :  { %v2658_v8 = vsub.f32 %v2646_v45, %v2656_v63 }
0x19fb   :  { %v2660_v51 = vmul.f32 %v2658_v8, %v2658_v8 }
0x19fd   :  { %v2662_v3 = vsel %vm426_vm8, %v2660_v51, 0.0 }
0x19fe   :  { %2663 = vadd.xlane.f32.xlu2 %v2662_v3  ;;  %v2655_v12 = vpop.xlane.xlu1 %2654 }
0x19ff   :  { %v2657_v62 = vmul.f32 %v2655_v12, %v4487_v39 }
0x1a01   :  { %v2659_v57 = vsub.f32 %v2647_v7, %v2657_v62 }
0x1a03   :  { %v2661_v24 = vmul.f32 %v2659_v57, %v2659_v57 }
0x1a05   :  { %v2665_v5 = vsel %vm426_vm8, %v2661_v24, 0.0 }
0x1a06   :  { %2666 = vadd.xlane.f32.xlu0 %v2665_v5 }
0x1a16   :  { %v2886_v10 = vpop.permute.xlu1 %2885 }
0x1a17   :  { %3684 = vmatpush.xpose.msk.msra.mxu2 %vm452_vm9, %v2886_v10 }
0x1a71   :  { %v2664_v36 = vpop.xlane.xlu2 %2663 }
0x1a72   :  { %v2668_v14 = vmul.f32 %v2664_v36, %v4487_v39 }
0x1a74   :  { %v2670_v16 = vadd.f32 1e-05, %v2668_v14 }
0x1a76   :  { %3866 = vrsqrt.f32 %v2670_v16  ;;  %vm2678_vm3 = vweird.f32 %v2670_v16 }
0x1a79   :  { %v2667_v50 = vpop.xlane.xlu0 %2666 }
0x1a7a   :  { %v2669_v20 = vmul.f32 %v2667_v50, %v4487_v39 }
0x1a7c   :  { %v3867_v21 = vpop.eup %3866  ;;  %v2671_v22 = vadd.f32 1e-05, %v2669_v20 }
0x1a7d   :  { %v2673_v23 = vmul.f32 %v3867_v21, %v2670_v16  ;;  %vm2679_vm2 = vweird.f32 %v3867_v21 }
0x1a7e   :  { %3868 = vrsqrt.f32 %v2671_v22  ;;  %vm2680_vm4 = vmor %vm2678_vm3, %vm2679_vm2  ;;  %vm2688_vm6 = vweird.f32 %v2671_v22 }
0x1a7f   :  { %v2674_v13 = vmul.f32 %v3867_v21, %v2673_v23 }
0x1a81   :  { %v2675_v26 = vmul.f32 0.5, %v2674_v13 }
0x1a83   :  { %v2676_v27 = vsub.f32 1.5, %v2675_v26 }
0x1a84   :  { %v3869_v35 = vpop.eup %3868 }
0x1a85   :  { %v2677_v29 = vmul.f32 %v3867_v21, %v2676_v27  ;;  %v2683_v31 = vmul.f32 %v3869_v35, %v2671_v22  ;;  %vm2689_vm5 = vweird.f32 %v3869_v35 }
0x1a86   :  { %vm2690_vm7 = vmor %vm2688_vm6, %vm2689_vm5 }
0x1a87   :  { %v2684_v32 = vmul.f32 %v3869_v35, %v2683_v31  ;;  %v2681_v19 = vsel %vm2680_vm4, %v3867_v21, %v2677_v29 }
0x1a88   :  { %v2692_v2 = vmul.f32 %v2681_v19, %v2658_v8 }
0x1a89   :  { %v2685_v0 = vmul.f32 0.5, %v2684_v32 }
0x1a8a   :  { %v2695_v40 = vmul.f32 %v3745_v1, %v2692_v2 }
0x1a8b   :  { %v2686_v33 = vsub.f32 1.5, %v2685_v0 }
0x1a8c   :  { %v4771_v42 = vadd.f32 %v3746_v38, %v2695_v40 }
0x1a8d   :  { %v2687_v59 = vmul.f32 %v3869_v35, %v2686_v33 }
0x1a8f   :  { %v2691_v34 = vsel %vm2690_vm7, %v3869_v35, %v2687_v59 }
0x1a90   :  { %v2693_v41 = vmul.f32 %v2691_v34, %v2659_v57 }
0x1a92   :  { %v2696_v60 = vmul.f32 %v3745_v1, %v2693_v41 }
0x1a94   :  { %v4773_v30 = vadd.f32 %v3746_v38, %v2696_v60  ;;  %v2748_v60 = vld [vmem:[#allocation2 + $0x208] sm:$0xff] }
0x1a96   :  { %v2704_v28 = vpack.c.bf16 %v4773_v30, %v4771_v42 }
0x1a98   :  { %3676 = vmatmul.msk.bf16.vlgmr.msra.gmra.mxu1 %vm426_vm8, %v2704_v28  ;;  %v2882_v28 = vpack.c.bf16 %v2748_v60, %v2748_v60 }
0x1b15   :  { %v2721_v46 = vpop.f32.mrf.mxu1 }
0x1b16   :  { %v4778_v47 = vadd.f32 %v3747_v11, %v2721_v46 }
0x1b18   :  { %2883 = vrot.lane.b32.xlu2 %v4778_v47, %s3943_s2  ;;  %3679 = vmatmul.msk.f32.vlgmr.msra.gmra.mxu3 %vm452_vm9, %v4778_v47 }
0x1b1d   :  { %v2723_v4 = vpop.f32.mrf.mxu1 }
0x1b1e   :  { %v4784_v43 = vadd.f32 %v3747_v11, %v2723_v4  ;;  %v3041_v11 = vsel %vm723_vm10, %v2882_v28, 0 }
0x1b20   :  { %2829 = vrot.lane.b32.xlu2 %v4750_v48, %s3944_s14  ;;  %3681 = vmatmul.msk.f32.vlgmr.msrb.gmra.mxu3 %vm452_vm9, %v4784_v43 }
0x1b28   :  { %2963 = vrot.lane.b32.xlu2 %v4750_v48, %s3945_s15 }
0x1b30   :  { %2911 = vrot.lane.b32.xlu2 %v4784_v43, %s3943_s2 }
0x1b38   :  { %3057 = vrot.lane.b32.xlu2 %v4778_v47, %s3947_s19 }
0x1b72   :  { %v2884_v53 = vpop.permute.xlu2 %2883 }
0x1b73   :  { %3685 = vmatmul.msk.f32.vlgmr.msra.gmra.mxu2 %vm452_vm9, %v2884_v53 }
0x1b7a   :  { %v2830_v54 = vpop.permute.xlu2 %2829 }
0x1b7b   :  { %2850 = vmatpush.msra.mxu0 %v2830_v54 }
0x1b82   :  { %v2964_v55 = vpop.permute.xlu2 %2963 }
0x1b83   :  { %2984 = vmatpush.msrb.mxu0 %v2964_v55 }
0x1b8a   :  { %v2912_v15 = vpop.permute.xlu2 %2911 }
0x1b92   :  { %v3058_v27 = vpop.permute.xlu2 %3057 }
0x1b9b   :  { %v2776_v45 = vpop.f32.mrf.mxu3 }
0x1b9c   :  { %v2805_v56 = vmul.f32 0.35355338, %v2776_v45 }
0x1b9e   :  { %v2807_v58 = vsel %vm452_vm9, %v2805_v56, -inf }
0x1b9f   :  { %2808 = vmax.xlane.f32.xlu0 %v2807_v58 }
0x1ba3   :  { %v2802_v3 = vpop.f32.mrf.mxu3 }
0x1ba4   :  { %v2806_v12 = vmul.f32 0.35355338, %v2802_v3 }
0x1ba6   :  { %v2810_v62 = vsel %vm452_vm9, %v2806_v12, -inf }
0x1bf6   :  { %v2908_v61 = vpop.f32.mrf.mxu2 }
0x1bf7   :  { %v2939_v6 = vmul.f32 0.35355338, %v2908_v61 }
0x1bf9   :  { %v2941_v7 = vsel %vm452_vm9, %v2939_v6, -inf }
0x1bfa   :  { %2942 = vmax.xlane.f32.xlu0 %v2941_v7 }
0x1c12   :  { %v2809_v44 = vpop.xlane.xlu0 %2808 }
0x1c13   :  { %v2813_v52 = vsub.f32 %v2805_v56, %v2809_v44 }
0x1c15   :  { %v2815_v63 = vmul.f32 1.442695, %v2813_v52 }
0x1c17   :  { %3870 = vpow2.f32 %v2815_v63 }
0x1c1d   :  { %v3871_v8 = vpop.eup %3870 }
0x1c1e   :  { %v2819_v51 = vsel %vm452_vm9, %v3871_v8, 0.0 }
0x1c1f   :  { %2820 = vadd.xlane.f32.xlu0 %v2819_v51 }
0x1c33   :  { %2913 = vrot.lane.b32.xlu0 %v4754_v49, %s3943_s2 }
0x1c3b   :  { %3059 = vrot.lane.b32.xlu0 %v4750_v48, %s3947_s19 }
0x1c65   :  { %2811 = vmax.xlane.f32.xlu0 %v2810_v62 }
0x1c6d   :  { %v2943_v57 = vpop.xlane.xlu0 %2942 }
0x1c6e   :  { %v2947_v24 = vsub.f32 %v2939_v6, %v2943_v57 }
0x1c70   :  { %v2949_v5 = vmul.f32 1.442695, %v2947_v24 }
0x1c72   :  { %3872 = vpow2.f32 %v2949_v5 }
0x1c78   :  { %v3873_v10 = vpop.eup %3872 }
0x1c79   :  { %3137 = vrot.lane.b32.xlu0 %v4750_v48, %s3948_s20  ;;  %v2953_v9 = vsel %vm452_vm9, %v3873_v10, 0.0 }
0x1c7a   :  { %2954 = vadd.xlane.f32.xlu1 %v2953_v9 }
0x1c92   :  { %v2821_v37 = vpop.xlane.xlu0 %2820 }
0x1c93   :  { %3874 = vrcp.f32 %v2821_v37  ;;  %2855 = vrot.lane.b32.xlu1 %v4754_v49, %s3944_s14 }
0x1c99   :  { %v3875_v25 = vpop.eup %3874 }
0x1c9a   :  { %v2827_v36 = vmul.f32 %v3875_v25, %v3871_v8 }
0x1c9c   :  { %3682 = vmatmul.msk.f32.vlgmr.msra.gmra.mxu0 %vm452_vm9, %v2827_v36 }
0x1ca5   :  { %v2914_v14 = vpop.permute.xlu0 %2913 }
0x1ca6   :  { %3686 = vmatpush.xpose.msk.msra.mxu3 %vm452_vm9, %v2914_v14 }
0x1ca9   :  { %3687 = vmatmul.msk.f32.vlgmr.msra.gmra.mxu3 %vm452_vm9, %v2912_v15 }
0x1caa   :  { %3050 = vmatpush.bf16.msrb.mxu3 %v3041_v11 }
0x1cad   :  { %v3060_v17 = vpop.permute.xlu0 %3059 }
0x1cae   :  { %3692 = vmatpush.xpose.msk.msra.mxu0 %vm452_vm9, %v3060_v17 }
0x1cd8   :  { %v2812_v16 = vpop.xlane.xlu0 %2811 }
0x1cd9   :  { %v2814_v18 = vsub.f32 %v2806_v12, %v2812_v16 }
0x1cdb   :  { %v2817_v50 = vmul.f32 1.442695, %v2814_v18 }
0x1cdd   :  { %3876 = vpow2.f32 %v2817_v50 }
0x1ce3   :  { %v3877_v20 = vpop.eup %3876 }
0x1ce4   :  { %v2822_v21 = vsel %vm452_vm9, %v3877_v20, 0.0 }
0x1ce5   :  { %2823 = vadd.xlane.f32.xlu2 %v2822_v21 }
0x1ceb   :  { %v3138_v26 = vpop.permute.xlu0 %3137 }
0x1ced   :  { %v2955_v22 = vpop.xlane.xlu1 %2954 }
0x1cee   :  { %3878 = vrcp.f32 %v2955_v22 }
0x1cf4   :  { %v3879_v23 = vpop.eup %3878 }
0x1cf5   :  { %v2961_v13 = vmul.f32 %v3879_v23, %v3873_v10 }
0x1cf7   :  { %3688 = vmatmul.msk.f32.vlgmr.msrb.gmra.mxu0 %vm452_vm9, %v2961_v13 }
0x1cf8   :  { %3158 = vmatpush.msrb.mxu0 %v3138_v26 }
0x1cfd   :  { %2989 = vrot.lane.b32.xlu2 %v4754_v49, %s3945_s15 }
0x1cff   :  { %3693 = vmatmul.msk.f32.vlgmr.msra.gmra.mxu0 %vm452_vm9, %v3058_v27 }
0x1d05   :  { %v2856_v35 = vpop.permute.xlu1 %2855  ;;  %3087 = vrot.lane.b32.xlu2 %v4754_v49, %s3947_s19 }
0x1d06   :  { %2876 = vmatpush.msrb.mxu1 %v2856_v35 }
0x1d19   :  { %v2852_v59 = vpop.f32.mrf.mxu0 }
0x1d2c   :  { %v2936_v29 = vpop.f32.mrf.mxu3 }
0x1d2d   :  { %v2940_v31 = vmul.f32 0.35355338, %v2936_v29 }
0x1d2f   :  { %v2944_v32 = vsel %vm452_vm9, %v2940_v31, -inf }
0x1d30   :  { %2945 = vmax.xlane.f32.xlu1 %v2944_v32 }
0x1d49   :  { %3215 = vrot.lane.b32.xlu1 %v4750_v48, %s3951_s22 }
0x1d58   :  { %v2824_v19 = vpop.xlane.xlu2 %2823 }
0x1d59   :  { %3880 = vrcp.f32 %v2824_v19 }
0x1d5f   :  { %v3881_v0 = vpop.eup %3880 }
0x1d60   :  { %v2828_v33 = vmul.f32 %v3881_v0, %v3877_v20  ;;  %v2990_v1 = vpop.permute.xlu2 %2989 }
0x1d61   :  { %3010 = vmatpush.msra.mxu1 %v2990_v1 }
0x1d62   :  { %3683 = vmatmul.msk.f32.vlgmr.msrb.gmra.mxu1 %vm452_vm9, %v2828_v33 }
0x1d68   :  { %v3088_v2 = vpop.permute.xlu2 %3087 }
0x1d69   :  { %3694 = vmatpush.xpose.msk.msrb.mxu1 %vm452_vm9, %v3088_v2 }
0x1d74   :  { %v2986_v34 = vpop.f32.mrf.mxu0 }
0x1d7c   :  { %v3082_v38 = vpop.f32.mrf.mxu0 }
0x1d7d   :  { %v3113_v40 = vmul.f32 0.35355338, %v3082_v38 }
0x1d7f   :  { %v3115_v41 = vsel %vm452_vm9, %v3113_v40, -inf }
0x1d80   :  { %3116 = vmax.xlane.f32.xlu0 %v3115_v41 }
0x1d94   :  { %3243 = vrot.lane.b32.xlu0 %v4754_v49, %s3951_s22 }
0x1da3   :  { %v2946_v46 = vpop.xlane.xlu1 %2945 }
0x1da4   :  { %v2948_v4 = vsub.f32 %v2940_v31, %v2946_v46 }
0x1da6   :  { %v2951_v53 = vmul.f32 1.442695, %v2948_v4 }
0x1da8   :  { %3882 = vpow2.f32 %v2951_v53 }
0x1dae   :  { %v3883_v54 = vpop.eup %3882 }
0x1daf   :  { %v2956_v55 = vsel %vm452_vm9, %v3883_v54, 0.0 }
0x1db0   :  { %2957 = vadd.xlane.f32.xlu2 %v2956_v55 }
0x1dbb   :  { %v3216_v45 = vpop.permute.xlu1 %3215 }
0x1dbc   :  { %3699 = vmatpush.xpose.msk.msra.mxu3 %vm452_vm9, %v3216_v45 }
0x1dc8   :  { %3085 = vrot.lane.b32.xlu2 %v4784_v43, %s3947_s19 }
0x1dd0   :  { %3241 = vrot.lane.b32.xlu2 %v4784_v43, %s3951_s22 }
0x1ddf   :  { %v2878_v56 = vpop.f32.mrf.mxu1 }
0x1de0   :  { %v2881_v58 = vpack.c.bf16 %v2878_v56, %v2852_v59 }
0x1de2   :  { %3691 = vmatmul.msk.bf16.vlgmr.msrb.gmra.mxu3 %vm452_vm9, %v2881_v58 }
0x1df3   :  { %v3117_v61 = vpop.xlane.xlu0 %3116 }
0x1df4   :  { %v3121_v6 = vsub.f32 %v3113_v40, %v3117_v61 }
0x1df6   :  { %v3123_v7 = vmul.f32 1.442695, %v3121_v6 }
0x1df8   :  { %3884 = vpow2.f32 %v3123_v7 }
0x1dfe   :  { %v3885_v44 = vpop.eup %3884 }
0x1dff   :  { %v3127_v52 = vsel %vm452_vm9, %v3885_v44, 0.0 }
0x1e00   :  { %3128 = vadd.xlane.f32.xlu0 %v3127_v52 }
0x1e06   :  { %v3244_v63 = vpop.permute.xlu0 %3243 }
0x1e07   :  { %3701 = vmatpush.xpose.msk.msra.mxu0 %vm452_vm9, %v3244_v63 }
0x1e14   :  { %3213 = vrot.lane.b32.xlu0 %v4778_v47, %s3951_s22  ;;  %v2749_v47 = vld [vmem:[#allocation2 + $0x210] sm:$0xff] }
0x1e15   :  { %v3016_v10 = vpack.c.bf16 %v2749_v47, %v2749_v47 }
0x1e17   :  { %v3021_v9 = vsel %vm723_vm10, %v3016_v10, 0 }
0x1e18   :  { %3030 = vmatpush.bf16.msrb.mxu2 %v3021_v9 }
0x1e23   :  { %v2958_v8 = vpop.xlane.xlu2 %2957 }
0x1e24   :  { %3886 = vrcp.f32 %v2958_v8 }
0x1e2a   :  { %v3887_v43 = vpop.eup %3886 }
0x1e2b   :  { %v2962_v51 = vmul.f32 %v3887_v43, %v3883_v54  ;;  %v3086_v3 = vpop.permute.xlu2 %3085 }
0x1e2d   :  { %3689 = vmatmul.msk.f32.vlgmr.msra.gmra.mxu1 %vm452_vm9, %v2962_v51 }
0x1e33   :  { %v3242_v24 = vpop.permute.xlu2 %3241 }
0x1e35   :  { %3695 = vmatmul.msk.f32.vlgmr.msrb.gmra.mxu1 %vm452_vm9, %v3086_v3 }
0x1e65   :  { %v4849_v17 = vpop.f32.mrf.mxu3 }
0x1e6d   :  { %v4851_v18 = vpop.f32.mrf.mxu3 }
0x1e73   :  { %v3129_v12 = vpop.xlane.xlu0 %3128 }
0x1e74   :  { %3888 = vrcp.f32 %v3129_v12 }
0x1e7a   :  { %v3889_v62 = vpop.eup %3888 }
0x1e7b   :  { %v3135_v57 = vmul.f32 %v3889_v62, %v3885_v44  ;;  %v2751_v44 = vld [vmem:[#allocation2 + $0x220] sm:$0xff] }
0x1e7c   :  { %v3346_v52 = vpack.c.bf16 %v2751_v44, %v2751_v44  ;;  %v3750_v44 = vld [vmem:[#allocation2 + $0x2b8] ss:$0 sm:$0xff] }
0x1e7d   :  { %3696 = vmatmul.msk.f32.vlgmr.msrb.gmra.mxu0 %vm452_vm9, %v3135_v57 }
0x1e7e   :  { %v3351_v63 = vsel %vm723_vm10, %v3346_v52, 0 }
0x1e7f   :  { %3360 = vmatpush.bf16.msrb.mxu0 %v3351_v63 }
0x1e85   :  { %3702 = vmatmul.msk.f32.vlgmr.msra.gmra.mxu0 %vm452_vm9, %v3242_v24 }
0x1e86   :  { %v3214_v5 = vpop.permute.xlu0 %3213 }
0x1e87   :  { %3700 = vmatmul.msk.f32.vlgmr.msra.gmra.mxu3 %vm452_vm9, %v3214_v5  ;;  %v3748_v5 = vld [vmem:[#allocation2 + $0x228] ss:$0 sm:$0xff] }
0x1eaa   :  { %v3012_v37 = vpop.f32.mrf.mxu1 }
0x1eab   :  { %v3015_v25 = vpack.c.bf16 %v3012_v37, %v2986_v34 }
0x1ead   :  { %3690 = vmatmul.msk.bf16.vlgmr.msrb.gmra.mxu2 %vm452_vm9, %v3015_v25 }
0x1eb2   :  { %v3110_v36 = vpop.f32.mrf.mxu1 }
0x1eb3   :  { %v3114_v14 = vmul.f32 0.35355338, %v3110_v36 }
0x1eb5   :  { %v3118_v15 = vsel %vm452_vm9, %v3114_v14, -inf }
0x1eb6   :  { %3119 = vmax.xlane.f32.xlu0 %v3118_v15 }
0x1efa   :  { %v3160_v16 = vpop.f32.mrf.mxu0 }
0x1f02   :  { %v3266_v50 = vpop.f32.mrf.mxu0 }
0x1f03   :  { %v3270_v20 = vmul.f32 0.35355338, %v3266_v50 }
0x1f05   :  { %v3274_v21 = vsel %vm452_vm9, %v3270_v20, -inf }
0x1f06   :  { %3275 = vmax.xlane.f32.xlu2 %v3274_v21 }
0x1f0a   :  { %v3238_v22 = vpop.f32.mrf.mxu3 }
0x1f0b   :  { %v3269_v23 = vmul.f32 0.35355338, %v3238_v22 }
0x1f0d   :  { %v3271_v13 = vsel %vm452_vm9, %v3269_v23, -inf }
0x1f0e   :  { %3272 = vmax.xlane.f32.xlu1 %v3271_v13 }
0x1f29   :  { %v3120_v26 = vpop.xlane.xlu0 %3119 }
0x1f2a   :  { %v3122_v27 = vsub.f32 %v3114_v14, %v3120_v26 }
0x1f2c   :  { %v3125_v35 = vmul.f32 1.442695, %v3122_v27 }
0x1f2e   :  { %3890 = vpow2.f32 %v3125_v35 }
0x1f30   :  { %v3032_v3 = vpop.f32.mrf.mxu2 }
0x1f31   :  { %v3053_v57 = vadd.f32 %v4849_v17, %v3032_v3 }
0x1f34   :  { %v3891_v29 = vpop.eup %3890 }
0x1f35   :  { %v3130_v31 = vsel %vm452_vm9, %v3891_v29, 0.0 }
0x1f36   :  { %3131 = vadd.xlane.f32.xlu0 %v3130_v31 }
0x1f38   :  { %v3034_v12 = vpop.f32.mrf.mxu2 }
0x1f39   :  { %v3055_v25 = vadd.f32 %v4851_v18, %v3034_v12  ;;  %v3460_v12 = vld [vmem:[#allocation2 + $0x288] sm:$0xff] }
0x1f4a   :  { %3163 = vrot.lane.b32.xlu0 %v4754_v49, %s3948_s20 }
0x1f79   :  { %v3276_v32 = vpop.xlane.xlu2 %3275 }
0x1f7a   :  { %v3278_v19 = vsub.f32 %v3270_v20, %v3276_v32  ;;  %v3429_v32 = vld [vmem:[#allocation2 + $0x248] sm:$0xff] }
0x1f7c   :  { %v3281_v0 = vmul.f32 1.442695, %v3278_v19 }
0x1f7e   :  { %3892 = vpow2.f32 %v3281_v0 }
0x1f81   :  { %v3273_v33 = vpop.xlane.xlu1 %3272 }
0x1f82   :  { %v3277_v1 = vsub.f32 %v3269_v23, %v3273_v33 }
0x1f84   :  { %v3893_v2 = vpop.eup %3892  ;;  %v3279_v59 = vmul.f32 1.442695, %v3277_v1  ;;  %v3426_v1 = vld [vmem:[#allocation2 + $0x230] sm:$0xff] }
0x1f85   :  { %v3286_v34 = vsel %vm452_vm9, %v3893_v2, 0.0 }
0x1f86   :  { %3894 = vpow2.f32 %v3279_v59  ;;  %3287 = vadd.xlane.f32.xlu2 %v3286_v34 }
0x1f8c   :  { %v3895_v38 = vpop.eup %3894 }
0x1f8d   :  { %v3283_v40 = vsel %vm452_vm9, %v3895_v38, 0.0 }
0x1f8e   :  { %3284 = vadd.xlane.f32.xlu1 %v3283_v40 }
0x1f9e   :  { %3319 = vrot.lane.b32.xlu2 %v4754_v49, %s3950_s21 }
0x1fa7   :  { %3293 = vrot.lane.b32.xlu1 %v4750_v48, %s3950_s21  ;;  %v2750_v48 = vld [vmem:[#allocation2 + $0x218] sm:$0xff] }
0x1fa8   :  { %v3190_v58 = vpack.c.bf16 %v2750_v48, %v2750_v48 }
0x1fa9   :  { %v3132_v41 = vpop.xlane.xlu0 %3131 }
0x1faa   :  { %3896 = vrcp.f32 %v3132_v41  ;;  %v3195_v61 = vsel %vm723_vm10, %v3190_v58, 0  ;;  %v3749_v58 = vld [vmem:[#allocation2 + $0x2b0] ss:$0 sm:$0xff] }
0x1fab   :  { %3204 = vmatpush.bf16.msra.mxu2 %v3195_v61 }
0x1fb0   :  { %v3897_v60 = vpop.eup %3896 }
0x1fb1   :  { %v3136_v28 = vmul.f32 %v3897_v60, %v3891_v29 }
0x1fbc   :  { %v3164_v11 = vpop.permute.xlu0 %3163 }
0x1fbd   :  { %3184 = vmatpush.msra.mxu1 %v3164_v11 }
0x1fbe   :  { %3697 = vmatmul.msk.f32.vlgmr.msra.gmra.mxu1 %vm452_vm9, %v3136_v28 }
0x1ff9   :  { %v3288_v46 = vpop.xlane.xlu2 %3287 }
0x1ffa   :  { %3898 = vrcp.f32 %v3288_v46 }
0x2000   :  { %v3899_v4 = vpop.eup %3898 }
0x2001   :  { %v3292_v53 = vmul.f32 %v3899_v4, %v3893_v2  ;;  %v3320_v54 = vpop.permute.xlu2 %3319  ;;  %v3285_v49 = vpop.xlane.xlu1 %3284  ;;  %v3427_v2 = vld [vmem:[#allocation2 + $0x238] sm:$0xff] }
0x2002   :  { %3340 = vmatpush.msrb.mxu3 %v3320_v54  ;;  %3900 = vrcp.f32 %v3285_v49  ;;  %v3431_v34 = vpack.c.bf16 %v3427_v2, %v3426_v1 }
0x2003   :  { %3704 = vmatmul.msk.f32.vlgmr.msrb.gmra.mxu3 %vm452_vm9, %v3292_v53 }
0x2008   :  { %v3901_v55 = vpop.eup %3900 }
0x2009   :  { %v3291_v45 = vmul.f32 %v3901_v55, %v3895_v38 }
0x2019   :  { %v3294_v56 = vpop.permute.xlu1 %3293 }
0x201a   :  { %3314 = vmatpush.msrb.mxu1 %v3294_v56 }
0x201b   :  { %3703 = vmatmul.msk.f32.vlgmr.msrb.gmra.mxu1 %vm452_vm9, %v3291_v45 }
0x203b   :  { %v3186_v6 = vpop.f32.mrf.mxu1 }
0x203c   :  { %v3189_v7 = vpack.c.bf16 %v3186_v6, %v3160_v16 }
0x203e   :  { %3698 = vmatmul.msk.bf16.vlgmr.msra.gmra.mxu2 %vm452_vm9, %v3189_v7 }
0x2086   :  { %v3342_v8 = vpop.f32.mrf.mxu3 }
0x2098   :  { %v3316_v43 = vpop.f32.mrf.mxu1 }
0x2099   :  { %v3345_v51 = vpack.c.bf16 %v3342_v8, %v3316_v43 }
0x209b   :  { %3705 = vmatmul.msk.bf16.vlgmr.msrb.gmra.mxu0 %vm452_vm9, %v3345_v51 }
0x20c1   :  { %v3206_v62 = vpop.f32.mrf.mxu2 }
0x20c2   :  { %v3211_v24 = vadd.f32 %v3206_v62, %v3053_v57  ;;  %v3461_v62 = vld [vmem:[#allocation2 + $0x290] sm:$0xff] }
0x20c3   :  { %v3466_v57 = vpack.c.bf16 %v3461_v62, %v3460_v12  ;;  %v3753_v12 = vld [vmem:[#allocation2 + $0x2c0] ss:$0 sm:$0xff] }
0x20c5   :  { %3476 = vmatpush.bf16.msrb.mxu2 %v3466_v57 }
0x20c9   :  { %v3208_v37 = vpop.f32.mrf.mxu2 }
0x20ca   :  { %v3212_v14 = vadd.f32 %v3208_v37, %v3055_v25  ;;  %v3454_v25 = vld [vmem:[#allocation2 + $0x258] sm:$0xff] }
0x2118   :  { %v3362_v47 = vpop.f32.mrf.mxu0 }
0x2119   :  { %v3367_v10 = vadd.f32 %v3362_v47, %v3211_v24  ;;  %v3458_v24 = vld [vmem:[#allocation2 + $0x278] sm:$0xff] }
0x211b   :  { %v3370_v9 = vadd.f32 %v3748_v5, %v3367_v10  ;;  %v3456_v10 = vld [vmem:[#allocation2 + $0x268] sm:$0xff] }
0x211d   :  { %v3372_v36 = vadd.f32 %v3370_v9, %v4771_v42  ;;  %v3457_v9 = vld [vmem:[#allocation2 + $0x270] sm:$0xff] }
0x211e   :  { %v3464_v37 = vpack.c.bf16 %v3457_v9, %v3456_v10 }
0x211f   :  { %v3376_v15 = vsel %vm426_vm8, %v3372_v36, 0.0 }
0x2120   :  { %v3364_v16 = vpop.f32.mrf.mxu0  ;;  %3377 = vadd.xlane.f32.xlu0 %v3376_v15 }
0x2121   :  { %v3368_v50 = vadd.f32 %v3364_v16, %v3212_v14  ;;  %v3751_v16 = vld [vmem:[#allocation2 + $0x250] ss:$0 sm:$0xff] }
0x2123   :  { %v3371_v20 = vadd.f32 %v3748_v5, %v3368_v50  ;;  %v3459_v5 = vld [vmem:[#allocation2 + $0x280] sm:$0xff] }
0x2124   :  { %v3465_v47 = vpack.c.bf16 %v3459_v5, %v3458_v24  ;;  %v3754_v24 = vld [vmem:[#allocation2 + $0x2c8] ss:$0 sm:$0xff] }
0x2125   :  { %v3373_v21 = vadd.f32 %v3371_v20, %v4773_v30  ;;  %v3428_v30 = vld [vmem:[#allocation2 + $0x240] sm:$0xff] }
0x2126   :  { %v3432_v19 = vpack.c.bf16 %v3429_v32, %v3428_v30  ;;  %3477 = vmatpush.bf16.msrb.mxu2 %v3465_v47 }
0x2127   :  { %v3379_v17 = vsel %vm426_vm8, %v3373_v21, 0.0 }
0x2128   :  { %3380 = vadd.xlane.f32.xlu2 %v3379_v17  ;;  %3444 = vmatpush.bf16.msra.mxu1 %v3432_v19 }
0x212a   :  { %3478 = vmatpush.bf16.msrb.mxu2 %v3464_v37 }
0x212c   :  { %3445 = vmatpush.bf16.msra.mxu1 %v3431_v34 }
0x2193   :  { %v3378_v22 = vpop.xlane.xlu0 %3377 }
0x2194   :  { %v3382_v23 = vmul.f32 %v3378_v22, %v4487_v39 }
0x2196   :  { %v3384_v13 = vsub.f32 %v3372_v36, %v3382_v23  ;;  %v3455_v36 = vld [vmem:[#allocation2 + $0x260] sm:$0xff] }
0x2197   :  { %v3463_v14 = vpack.c.bf16 %v3455_v36, %v3454_v25  ;;  %v3755_v36 = vld [vmem:[%s4926_s11] ss:$0 sm:$0xff] }
0x2198   :  { %v3386_v26 = vmul.f32 %v3384_v13, %v3384_v13 }
0x2199   :  { %3479 = vmatpush.bf16.msrb.mxu2 %v3463_v14 }
0x219a   :  { %v3388_v18 = vsel %vm426_vm8, %v3386_v26, 0.0 }
0x219b   :  { %3389 = vadd.xlane.f32.xlu1 %v3388_v18  ;;  %v3381_v42 = vpop.xlane.xlu2 %3380 }
0x219c   :  { %v3383_v27 = vmul.f32 %v3381_v42, %v4487_v39 }
0x219e   :  { %v3385_v35 = vsub.f32 %v3373_v21, %v3383_v27 }
0x21a0   :  { %v3387_v29 = vmul.f32 %v3385_v35, %v3385_v35 }
0x21a2   :  { %v3391_v31 = vsel %vm426_vm8, %v3387_v29, 0.0 }
0x21a3   :  { %3392 = vadd.xlane.f32.xlu0 %v3391_v31 }
0x220e   :  { %v3390_v0 = vpop.xlane.xlu1 %3389 }
0x220f   :  { %v3394_v33 = vmul.f32 %v3390_v0, %v4487_v39 }
0x2211   :  { %v3396_v59 = vadd.f32 1e-05, %v3394_v33 }
0x2213   :  { %3902 = vrsqrt.f32 %v3396_v59  ;;  %vm3404_vm10 = vweird.f32 %v3396_v59 }
0x2216   :  { %v3393_v38 = vpop.xlane.xlu0 %3392 }
0x2217   :  { %v3395_v40 = vmul.f32 %v3393_v38, %v4487_v39 }
0x2219   :  { %v3903_v41 = vpop.eup %3902  ;;  %v3397_v60 = vadd.f32 1e-05, %v3395_v40 }
0x221a   :  { %v3399_v28 = vmul.f32 %v3903_v41, %v3396_v59  ;;  %vm3405_vm9 = vweird.f32 %v3903_v41 }
0x221b   :  { %3904 = vrsqrt.f32 %v3397_v60  ;;  %vm3406_vm12 = vmor %vm3404_vm10, %vm3405_vm9  ;;  %vm3414_vm14 = vweird.f32 %v3397_v60 }
0x221c   :  { %v3400_v11 = vmul.f32 %v3903_v41, %v3399_v28 }
0x221e   :  { %v3401_v46 = vmul.f32 0.5, %v3400_v11 }
0x2220   :  { %v3402_v4 = vsub.f32 1.5, %v3401_v46 }
0x2221   :  { %v3905_v53 = vpop.eup %3904 }
0x2222   :  { %v3403_v54 = vmul.f32 %v3903_v41, %v3402_v4  ;;  %v3409_v49 = vmul.f32 %v3905_v53, %v3397_v60  ;;  %vm3415_vm13 = vweird.f32 %v3905_v53  ;;  %v3543_v60 = vld [vmem:[%s4925_s10 + $0x18] sm:$0xff]  ;;  %v3540_v4 = vld [vmem:[%s4925_s10] sm:$0xff] }
0x2223   :  { %vm3416_vm15 = vmor %vm3414_vm14, %vm3415_vm13 }
0x2224   :  { %v3410_v55 = vmul.f32 %v3905_v53, %v3409_v49  ;;  %v3407_v48 = vsel %vm3406_vm12, %v3903_v41, %v3403_v54  ;;  %v3542_v41 = vld [vmem:[%s4925_s10 + $0x10] sm:$0xff] }
0x2225   :  { %v3418_v61 = vmul.f32 %v3407_v48, %v3384_v13  ;;  %v3752_v13 = vld [vmem:[#allocation2 + $0x298] ss:$0 sm:$0xff]  ;;  %v3546_v28 = vpack.c.bf16 %v3543_v60, %v3542_v41 }
0x2226   :  { %v3411_v45 = vmul.f32 0.5, %v3410_v55 }
0x2227   :  { %v3421_v52 = vmul.f32 %v3749_v58, %v3418_v61  ;;  %3560 = vmatpush.bf16.msra.mxu3 %v3546_v28 }
0x2228   :  { %v3412_v56 = vsub.f32 1.5, %v3411_v45 }
0x2229   :  { %v3424_v43 = vadd.f32 %v3750_v44, %v3421_v52 }
0x222a   :  { %v3413_v6 = vmul.f32 %v3905_v53, %v3412_v56 }
0x222c   :  { %v3417_v7 = vsel %vm3416_vm15, %v3905_v53, %v3413_v6  ;;  %v3541_v53 = vld [vmem:[%s4925_s10 + $0x8] sm:$0xff] }
0x222d   :  { %v3419_v63 = vmul.f32 %v3417_v7, %v3385_v35  ;;  %v3545_v49 = vpack.c.bf16 %v3541_v53, %v3540_v4 }
0x222f   :  { %v3422_v8 = vmul.f32 %v3749_v58, %v3419_v63  ;;  %3561 = vmatpush.bf16.msra.mxu3 %v3545_v49 }
0x2231   :  { %v3425_v51 = vadd.f32 %v3750_v44, %v3422_v8 }
0x2233   :  { %v3430_v3 = vpack.c.bf16 %v3425_v51, %v3424_v43 }
0x2235   :  { %3706 = vmatmul.msk.bf16.vlgmr.msra.gmra.mxu1 %vm426_vm8, %v3430_v3 }
0x22b2   :  { %v3447_v15 = vpop.f32.mrf.mxu1 }
0x22b3   :  { %v3448_v50 = vadd.f32 %v3751_v16, %v3447_v15 }
0x22b5   :  { %v3452_v17 = vmax.f32 %v3448_v50, 0.0 }
0x22ba   :  { %v3449_v20 = vpop.f32.mrf.mxu1 }
0x22bb   :  { %v3450_v21 = vadd.f32 %v3751_v16, %v3449_v20 }
0x22bd   :  { %v3453_v22 = vmax.f32 %v3450_v21, 0.0 }
0x22bf   :  { %v3462_v23 = vpack.c.bf16 %v3453_v22, %v3452_v17 }
0x22c1   :  { %3707 = vmatmul.msk.bf16.vlgmr.msrb.gmra.mxu2 %vm1914_vm11, %v3462_v23 }
0x2344   :  { %v3481_v26 = vpop.f32.mrf.mxu2 }
0x2345   :  { %v3482_v18 = vadd.f32 %v3752_v13, %v3481_v26 }
0x2347   :  { %v3486_v42 = vadd.f32 %v3482_v18, %v3424_v43 }
0x2349   :  { %v3490_v27 = vsel %vm426_vm8, %v3486_v42, 0.0 }
0x234a   :  { %3491 = vadd.xlane.f32.xlu2 %v3490_v27 }
0x234c   :  { %v3483_v35 = vpop.f32.mrf.mxu2 }
0x234d   :  { %v3484_v29 = vadd.f32 %v3752_v13, %v3483_v35 }
0x234f   :  { %v3487_v31 = vadd.f32 %v3484_v29, %v3425_v51 }
0x2351   :  { %v3493_v30 = vsel %vm426_vm8, %v3487_v31, 0.0 }
0x2352   :  { %3494 = vadd.xlane.f32.xlu0 %v3493_v30 }
0x23bd   :  { %v3492_v32 = vpop.xlane.xlu2 %3491 }
0x23be   :  { %v3496_v19 = vmul.f32 %v3492_v32, %v4487_v39 }
0x23c0   :  { %v3498_v0 = vsub.f32 %v3486_v42, %v3496_v19 }
0x23c2   :  { %v3500_v33 = vmul.f32 %v3498_v0, %v3498_v0 }
0x23c4   :  { %v3502_v1 = vsel %vm426_vm8, %v3500_v33, 0.0 }
0x23c5   :  { %v3495_v2 = vpop.xlane.xlu0 %3494  ;;  %3503 = vadd.xlane.f32.xlu1 %v3502_v1 }
0x23c6   :  { %v3497_v59 = vmul.f32 %v3495_v2, %v4487_v39 }
0x23c8   :  { %v3499_v34 = vsub.f32 %v3487_v31, %v3497_v59 }
0x23ca   :  { %v3501_v38 = vmul.f32 %v3499_v34, %v3499_v34 }
0x23cc   :  { %v3505_v40 = vsel %vm426_vm8, %v3501_v38, 0.0 }
0x23cd   :  { %3506 = vadd.xlane.f32.xlu2 %v3505_v40 }
0x2438   :  { %v3504_v11 = vpop.xlane.xlu1 %3503 }
0x2439   :  { %v3508_v46 = vmul.f32 %v3504_v11, %v4487_v39 }
0x243b   :  { %v3510_v54 = vadd.f32 1e-05, %v3508_v46 }
0x243d   :  { %3906 = vrsqrt.f32 %v3510_v54  ;;  %vm3518_vm0 = vweird.f32 %v3510_v54 }
0x2440   :  { %v3507_v55 = vpop.xlane.xlu2 %3506 }
0x2441   :  { %v3509_v48 = vmul.f32 %v3507_v55, %v4487_v39 }
0x2443   :  { %v3907_v45 = vpop.eup %3906  ;;  %v3511_v56 = vadd.f32 1e-05, %v3509_v48 }
0x2444   :  { %v3513_v58 = vmul.f32 %v3907_v45, %v3510_v54  ;;  %vm3519_vm11 = vweird.f32 %v3907_v45 }
0x2445   :  { %3908 = vrsqrt.f32 %v3511_v56  ;;  %vm3520_vm1 = vmor %vm3518_vm0, %vm3519_vm11  ;;  %vm3528_vm3 = vweird.f32 %v3511_v56 }
0x2446   :  { %v3514_v61 = vmul.f32 %v3907_v45, %v3513_v58 }
0x2448   :  { %v3515_v6 = vmul.f32 0.5, %v3514_v61 }
0x244a   :  { %v3516_v7 = vsub.f32 1.5, %v3515_v6 }
0x244b   :  { %v3909_v44 = vpop.eup %3908 }
0x244c   :  { %v3517_v52 = vmul.f32 %v3907_v45, %v3516_v7  ;;  %v3523_v63 = vmul.f32 %v3909_v44, %v3511_v56  ;;  %vm3529_vm2 = vweird.f32 %v3909_v44 }
0x244d   :  { %vm3530_vm4 = vmor %vm3528_vm3, %vm3529_vm2 }
0x244e   :  { %v3524_v8 = vmul.f32 %v3909_v44, %v3523_v63  ;;  %v3521_v43 = vsel %vm3520_vm1, %v3907_v45, %v3517_v52 }
0x244f   :  { %v3532_v39 = vmul.f32 %v3521_v43, %v3498_v0 }
0x2450   :  { %v3525_v51 = vmul.f32 0.5, %v3524_v8 }
0x2451   :  { %v3535_v5 = vmul.f32 %v3753_v12, %v3532_v39 }
0x2452   :  { %v3526_v3 = vsub.f32 1.5, %v3525_v51 }
0x2453   :  { %v3538_v9 = vadd.f32 %v3754_v24, %v3535_v5 }
0x2454   :  { %v3527_v62 = vmul.f32 %v3909_v44, %v3526_v3 }
0x2456   :  { %v3531_v57 = vsel %vm3530_vm4, %v3909_v44, %v3527_v62 }
0x2457   :  { %v3533_v47 = vmul.f32 %v3531_v57, %v3499_v34 }
0x2459   :  { %v3536_v10 = vmul.f32 %v3753_v12, %v3533_v47 }
0x245b   :  { %v3539_v37 = vadd.f32 %v3754_v24, %v3536_v10 }
0x245d   :  { %v3544_v25 = vpack.c.bf16 %v3539_v37, %v3538_v9 }
0x245f   :  { %3708 = vmatmul.msk.bf16.vlgmr.msra.gmra.mxu3 %vm426_vm8, %v3544_v25 }
0x24e2   :  { %v3563_v14 = vpop.f32.mrf.mxu3 }
0x24e3   :  { %v3564_v15 = vadd.f32 %v3755_v36, %v3563_v14 }
0x24e5   :  { %3568 = vst [vmem:[%s4927_s12] sm:$0xff] %v3564_v15 }
0x24ea   :  { %v3565_v16 = vpop.f32.mrf.mxu3 }
0x24eb   :  { %v3566_v50 = vadd.f32 %v3755_v36, %v3565_v16 }
0x24ed   :  { %3569 = vst [vmem:[%s4927_s12 + $0x8] sm:$0xff] %v3566_v50 }
0x24ee   :  { %3574 = vsyncpa [#allocation3], 1 }

</bundles_post_ra>
